<compile_context>
chip_gen: v5e
topology: v5e:2x2
jax: 0.10.0
libtpu: 0.0.40
codegen_flags: <defaults>
</compile_context>

<pallas_src>
import functools

import jax
import jax.numpy as jnp
from jax.experimental import pallas as pl
from jax.experimental.pallas import tpu as pltpu


def _round_up(x, m):
    return (x + m - 1) // m * m


def _pick_n_block(n):
    """Row-tile size. Prefer a divisor of n (no padding); otherwise pad n up to a multiple."""
    for c in (32, 24, 16, 8):
        if n % c == 0:
            return c, n
    n_blk = min(32, _round_up(n, 8))
    return n_blk, _round_up(n, n_blk)


def _pick_e_block(e):
    """Output-channel tile (power of two, <= 32)."""
    for c in (32, 16, 8, 4, 2, 1):
        if e % c == 0:
            return c
    return 1


def _conv3x3_relu_kernel(x_ref, w_ref, b_ref, o_ref, taps_ref, *,
                         N_pad, D, N_blk, E_blk, EG):
    """Grid = (B, row_tiles, E_tiles).

    x_ref   : (1, N_pad, D)          lane-aligned input for this batch element (VMEM-resident
                                     across all row / channel tiles; index_map ignores n, e).
    w_ref   : (E*9,)  SMEM           conv weights flattened (e, dh, dw) row-major.
    b_ref   : (E,)    SMEM           conv bias.
    o_ref   : (1, E_blk, N_blk, D)   output tile (NCHW).
    taps_ref: (9, N_blk, D) VMEM     the 9 shifted input taps for the current (batch, row-tile);
                                     rebuilt only when the E-tile index wraps to 0.
    """
    n = pl.program_id(1)
    e_t = pl.program_id(2)
    r0 = pl.multiple_of(n * N_blk, N_blk)

    # ---- build the 9 taps once per (batch, row-tile); amortized over all E tiles ----
    @pl.when(e_t == 0)
    def _build_taps():
        center = x_ref[0, pl.ds(r0, N_blk), :]                              # (N_blk, D)

        # Row halo straight from the resident input (no padded-column layout, lanes stay aligned).
        up_row = x_ref[0, pl.ds(jnp.maximum(r0 - 1, 0), 1), :]              # row r0-1 (dummy if r0==0)
        up_row = up_row * (r0 > 0).astype(jnp.float32)
        dn_row = x_ref[0, pl.ds(jnp.minimum(r0 + N_blk, N_pad - 1), 1), :]  # row r0+N_blk (dummy at end)
        dn_row = dn_row * (r0 + N_blk < N_pad).astype(jnp.float32)

        row_ids = jax.lax.broadcasted_iota(jnp.int32, (N_blk, D), 0)
        col_ids = jax.lax.broadcasted_iota(jnp.int32, (N_blk, D), 1)

        # pltpu.roll requires non-negative shifts: shift of -1 along size S == shift of S-1.
        up = jnp.where(row_ids == 0, up_row, pltpu.roll(center, 1, 0))                   # x[r0+i-1, j]
        dn = jnp.where(row_ids == N_blk - 1, dn_row, pltpu.roll(center, N_blk - 1, 0))   # x[r0+i+1, j]

        for dh, rows in enumerate((up, center, dn)):
            left = jnp.where(col_ids == 0, 0.0, pltpu.roll(rows, 1, 1))                  # x[.., j-1]
            right = jnp.where(col_ids == D - 1, 0.0, pltpu.roll(rows, D - 1, 1))         # x[.., j+1]
            taps_ref[3 * dh + 0] = left
            taps_ref[3 * dh + 1] = rows
            taps_ref[3 * dh + 2] = right

    # ---- tap-outer / channel-inner MAC over groups of EG channels ----
    # Each taps_ref[k] tile is loaded ONCE per group and reused by all EG accumulators
    # (vld relief); accumulators live in vregs (EG * N_blk/8 <= 32), bias+ReLU in the epilogue.
    woff = e_t * (E_blk * 9)    # dynamic base into the flat (E*9,) SMEM weights
    boff = e_t * E_blk
    for g in range(E_blk // EG):
        t0 = taps_ref[0]
        accs = [w_ref[woff + (g * EG + el) * 9] * t0 for el in range(EG)]
        for k in range(1, 9):
            tk = taps_ref[k]
            for el in range(EG):
                accs[el] = accs[el] + w_ref[woff + (g * EG + el) * 9 + k] * tk
        for el in range(EG):
            ch = g * EG + el
            o_ref[0, ch] = jnp.maximum(accs[el] + b_ref[boff + ch], 0.0).astype(o_ref.dtype)


def time_cnn_forward(x, weight, bias, *, out_dtype=jnp.float32):
    """x: (B, N, D); weight: (E, 1, 3, 3); bias: (E,). Matches TimeCNN.forward.

    out_dtype can be set to jnp.bfloat16 to halve the output writeback (numerics/API decision).
    """
    B, N, D = x.shape
    E = weight.shape[0]
    assert weight.shape == (E, 1, 3, 3), "TimeCNN forward requires in_channel == 1"

    N_blk, N_pad = _pick_n_block(N)
    E_blk = _pick_e_block(E)
    EG = min(8, E_blk)          # channel-group size; E_blk is a power of two so EG | E_blk

    xf = x.astype(jnp.float32)
    if N_pad != N:
        # Zero rows at the bottom reproduce the conv's own zero padding for the last real row;
        # the extra output rows are sliced off below.
        xf = jnp.pad(xf, ((0, 0), (0, N_pad - N), (0, 0)))

    w_flat = weight.reshape(E * 9).astype(jnp.float32)   # flat 1-D SMEM layout (no (E,9) pad waste)
    b1 = bias.astype(jnp.float32)

    kernel = functools.partial(_conv3x3_relu_kernel, N_pad=N_pad, D=D,
                               N_blk=N_blk, E_blk=E_blk, EG=EG)

    # Rough VMEM budget: double-buffered resident input + output tiles + taps scratch + headroom.
    est_vmem = (2 * N_pad * D * 4
                + 2 * E_blk * N_blk * D * 4
                + 9 * N_blk * D * 4
                + (4 << 20))
    # Never request the full 64 MiB of a v7x TensorCore; 48 MiB leaves compiler headroom and is
    # harmless on v5e/v6e (128 MiB physical).
    vmem_limit = int(min(max(est_vmem, 32 << 20), 48 << 20))

    out = pl.pallas_call(
        kernel,
        out_shape=jax.ShapeDtypeStruct((B, E, N_pad, D), out_dtype),
        grid_spec=pltpu.PrefetchScalarGridSpec(
            num_scalar_prefetch=0,
            grid=(B, N_pad // N_blk, E // E_blk),
            in_specs=[
                # Full lane-aligned input per batch element; stays resident across n / e tiles.
                pl.BlockSpec((1, N_pad, D), lambda b, n, e: (b, 0, 0)),
                pl.BlockSpec(memory_space=pltpu.MemorySpace.SMEM),   # weights (E*9,)
                pl.BlockSpec(memory_space=pltpu.MemorySpace.SMEM),   # bias (E,)
            ],
            out_specs=pl.BlockSpec((1, E_blk, N_blk, D), lambda b, n, e: (b, e, n, 0)),
            scratch_shapes=[pltpu.VMEM((9, N_blk, D), jnp.float32)],
        ),
        compiler_params=pltpu.CompilerParams(
            dimension_semantics=("parallel", "parallel", "arbitrary"),
            vmem_limit_bytes=vmem_limit,
        ),
    )(xf, w_flat, b1)

    if N_pad != N:
        out = out[:, :, :N, :]
    # torch's x.squeeze(1): only drops the channel axis when embed_size == 1.
    if E == 1:
        out = out[:, 0]
    return out


def _reference(x, weight, bias):
    """Pure-JAX reference of TimeCNN.forward."""
    E = weight.shape[0]
    y = jax.lax.conv_general_dilated(
        x[:, None, :, :], weight,
        window_strides=(1, 1), padding=((1, 1), (1, 1)),
        dimension_numbers=("NCHW", "OIHW", "NCHW"),
    )
    y = jnp.maximum(y + bias[None, :, None, None], 0.0)
    if E == 1:
        y = y[:, 0]
    return y


if __name__ == "__main__":
    # Small shapes consistent with the module (x is (B, N, D); in_channel must be 1).
    # N=48 exercises multiple row tiles (halo across tile edges); E=16 exercises the in-kernel
    # channel-group loop (two groups of 8 channels sharing the taps scratch).
    B, N, D = 2, 48, 128
    in_channel, embed_size = 1, 16

    key = jax.random.PRNGKey(0)
    kx, kw, kb = jax.random.split(key, 3)
    x = jax.random.normal(kx, (B, N, D), dtype=jnp.float32)
    weight = 0.1 * jax.random.normal(kw, (embed_size, in_channel, 3, 3), dtype=jnp.float32)
    bias = 0.1 * jax.random.normal(kb, (embed_size,), dtype=jnp.float32)

    out = time_cnn_forward(x, weight, bias)
    out = jax.block_until_ready(out)

    ref = _reference(x, weight, bias)
    assert out.shape == ref.shape, (out.shape, ref.shape)
    assert jnp.allclose(out, ref, atol=1e-4, rtol=1e-4), "Pallas conv mismatch vs reference"

    print("KERNEL_OK")
</pallas_src>

<mosaic_0001>
module attributes {stable_mosaic.version = 11 : i64} {
  func.func @_conv3x3_relu_kernel(%arg0: i32, %arg1: i32, %arg2: i32, %arg3: memref<1x48x128xf32, #tpu.memory_space<vmem>>, %arg4: memref<144xf32, #tpu.memory_space<smem>>, %arg5: memref<16xf32, #tpu.memory_space<smem>>, %arg6: memref<1x16x24x128xf32, #tpu.memory_space<vmem>>, %arg7: memref<9x24x128xf32, #tpu.memory_space<vmem>>) attributes {dimension_semantics = [#tpu.dimension_semantics<parallel>, #tpu.dimension_semantics<parallel>, #tpu.dimension_semantics<arbitrary>], iteration_bounds = array<i64: 2, 2, 1>, scalar_prefetch = 0 : i64, scratch_operands = 1 : i64, tpu.core_type = #tpu.core_type<tc>, window_params = [{transform_indices = @transform_0, window_bounds = array<i64: 1, 48, 128>}, {transform_indices = @transform_1, window_bounds = array<i64: 144>}, {transform_indices = @transform_2, window_bounds = array<i64: 16>}, {transform_indices = @transform_3, window_bounds = array<i64: 1, 16, 24, 128>}]} {
    %c24_i32 = arith.constant 24 : i32
    %0 = arith.muli %arg1, %c24_i32 : i32
    %1 = tpu.assume_multiple %0, 24 : i32
    %c0_i32 = arith.constant 0 : i32
    %2 = arith.cmpi eq, %arg2, %c0_i32 : i32
    %3 = arith.extui %2 : i1 to i32
    %c0_i32_0 = arith.constant 0 : i32
    %4 = arith.cmpi ne, %3, %c0_i32_0 : i32
    scf.if %4 {
      %c0_377 = arith.constant 0 : index
      %1179 = arith.index_cast %1 : i32 to index
      %c0_378 = arith.constant 0 : index
      %1180 = vector.load %arg3[%c0_377, %1179, %c0_378] : memref<1x48x128xf32, #tpu.memory_space<vmem>>, vector<1x24x128xf32>
      %1181 = vector.shape_cast %1180 : vector<1x24x128xf32> to vector<24x128xf32>
      %c1_i32_379 = arith.constant 1 : i32
      %1182 = arith.subi %1, %c1_i32_379 : i32
      %c0_i32_380 = arith.constant 0 : i32
      %1183 = arith.maxsi %1182, %c0_i32_380 : i32
      %c0_381 = arith.constant 0 : index
      %1184 = arith.index_cast %1183 : i32 to index
      %c0_382 = arith.constant 0 : index
      %1185 = vector.load %arg3[%c0_381, %1184, %c0_382] : memref<1x48x128xf32, #tpu.memory_space<vmem>>, vector<1x1x128xf32>
      %1186 = vector.shape_cast %1185 : vector<1x1x128xf32> to vector<1x128xf32>
      %c0_i32_383 = arith.constant 0 : i32
      %1187 = arith.cmpi sgt, %1, %c0_i32_383 : i32
      %1188 = arith.extui %1187 : i1 to i32
      %1189 = arith.sitofp %1188 : i32 to f32
      %1190 = vector.broadcast %1189 : f32 to vector<1x128xf32>
      %1191 = arith.mulf %1186, %1190 : vector<1x128xf32>
      %c24_i32_384 = arith.constant 24 : i32
      %1192 = arith.addi %1, %c24_i32_384 : i32
      %c47_i32 = arith.constant 47 : i32
      %1193 = arith.minsi %1192, %c47_i32 : i32
      %c0_385 = arith.constant 0 : index
      %1194 = arith.index_cast %1193 : i32 to index
      %c0_386 = arith.constant 0 : index
      %1195 = vector.load %arg3[%c0_385, %1194, %c0_386] : memref<1x48x128xf32, #tpu.memory_space<vmem>>, vector<1x1x128xf32>
      %1196 = vector.shape_cast %1195 : vector<1x1x128xf32> to vector<1x128xf32>
      %c24_i32_387 = arith.constant 24 : i32
      %1197 = arith.addi %1, %c24_i32_387 : i32
      %c48_i32 = arith.constant 48 : i32
      %1198 = arith.cmpi slt, %1197, %c48_i32 : i32
      %1199 = arith.extui %1198 : i1 to i32
      %1200 = arith.sitofp %1199 : i32 to f32
      %1201 = vector.broadcast %1200 : f32 to vector<1x128xf32>
      %1202 = arith.mulf %1196, %1201 : vector<1x128xf32>
      %1203 = tpu.iota {dimensions = array<i32: 0>} : vector<24x128xi32>
      %1204 = tpu.iota {dimensions = array<i32: 1>} : vector<24x128xi32>
      %c0_i32_388 = arith.constant 0 : i32
      %1205 = vector.broadcast %c0_i32_388 : i32 to vector<24x128xi32>
      %1206 = arith.cmpi eq, %1203, %1205 : vector<24x128xi32>
      %c1_i32_389 = arith.constant 1 : i32
      %1207 = tpu.dynamic_rotate %1181 by %c1_i32_389 dim 0 : vector<24x128xf32>, i32 -> vector<24x128xf32>
      %1208 = vector.shape_cast %1191 : vector<1x128xf32> to vector<1x128xf32>
      %1209 = vector.broadcast %1208 : vector<1x128xf32> to vector<24x128xf32>
      %1210 = arith.select %1206, %1209, %1207 : vector<24x128xi1>, vector<24x128xf32>
      %c23_i32 = arith.constant 23 : i32
      %1211 = vector.broadcast %c23_i32 : i32 to vector<24x128xi32>
      %1212 = arith.cmpi eq, %1203, %1211 : vector<24x128xi32>
      %c23_i32_390 = arith.constant 23 : i32
      %1213 = tpu.dynamic_rotate %1181 by %c23_i32_390 dim 0 : vector<24x128xf32>, i32 -> vector<24x128xf32>
      %1214 = vector.shape_cast %1202 : vector<1x128xf32> to vector<1x128xf32>
      %1215 = vector.broadcast %1214 : vector<1x128xf32> to vector<24x128xf32>
      %1216 = arith.select %1212, %1215, %1213 : vector<24x128xi1>, vector<24x128xf32>
      %c0_i32_391 = arith.constant 0 : i32
      %1217 = vector.broadcast %c0_i32_391 : i32 to vector<24x128xi32>
      %1218 = arith.cmpi eq, %1204, %1217 : vector<24x128xi32>
      %c1_i32_392 = arith.constant 1 : i32
      %1219 = tpu.dynamic_rotate %1210 by %c1_i32_392 dim 1 : vector<24x128xf32>, i32 -> vector<24x128xf32>
      %cst_393 = arith.constant 0.000000e+00 : f32
      %1220 = vector.broadcast %cst_393 : f32 to vector<24x128xf32>
      %1221 = arith.select %1218, %1220, %1219 : vector<24x128xi1>, vector<24x128xf32>
      %c127_i32 = arith.constant 127 : i32
      %1222 = vector.broadcast %c127_i32 : i32 to vector<24x128xi32>
      %1223 = arith.cmpi eq, %1204, %1222 : vector<24x128xi32>
      %c127_i32_394 = arith.constant 127 : i32
      %1224 = tpu.dynamic_rotate %1210 by %c127_i32_394 dim 1 : vector<24x128xf32>, i32 -> vector<24x128xf32>
      %cst_395 = arith.constant 0.000000e+00 : f32
      %1225 = vector.broadcast %cst_395 : f32 to vector<24x128xf32>
      %1226 = arith.select %1223, %1225, %1224 : vector<24x128xi1>, vector<24x128xf32>
      %c0_396 = arith.constant 0 : index
      %c0_397 = arith.constant 0 : index
      %c0_398 = arith.constant 0 : index
      %1227 = vector.load %arg7[%c0_396, %c0_397, %c0_398] : memref<9x24x128xf32, #tpu.memory_space<vmem>>, vector<1x24x128xf32>
      %1228 = vector.shape_cast %1227 : vector<1x24x128xf32> to vector<24x128xf32>
      %1229 = vector.shape_cast %1221 : vector<24x128xf32> to vector<1x24x128xf32>
      tpu.vector_store %arg7[%c0_396, %c0_397, %c0_398], %1229 {strides = array<i32>} : memref<9x24x128xf32, #tpu.memory_space<vmem>>, vector<1x24x128xf32>,
      %c1_399 = arith.constant 1 : index
      %c0_400 = arith.constant 0 : index
      %c0_401 = arith.constant 0 : index
      %1230 = vector.load %arg7[%c1_399, %c0_400, %c0_401] : memref<9x24x128xf32, #tpu.memory_space<vmem>>, vector<1x24x128xf32>
      %1231 = vector.shape_cast %1230 : vector<1x24x128xf32> to vector<24x128xf32>
      %1232 = vector.shape_cast %1210 : vector<24x128xf32> to vector<1x24x128xf32>
      tpu.vector_store %arg7[%c1_399, %c0_400, %c0_401], %1232 {strides = array<i32>} : memref<9x24x128xf32, #tpu.memory_space<vmem>>, vector<1x24x128xf32>,
      %c2_402 = arith.constant 2 : index
      %c0_403 = arith.constant 0 : index
      %c0_404 = arith.constant 0 : index
      %1233 = vector.load %arg7[%c2_402, %c0_403, %c0_404] : memref<9x24x128xf32, #tpu.memory_space<vmem>>, vector<1x24x128xf32>
      %1234 = vector.shape_cast %1233 : vector<1x24x128xf32> to vector<24x128xf32>
      %1235 = vector.shape_cast %1226 : vector<24x128xf32> to vector<1x24x128xf32>
      tpu.vector_store %arg7[%c2_402, %c0_403, %c0_404], %1235 {strides = array<i32>} : memref<9x24x128xf32, #tpu.memory_space<vmem>>, vector<1x24x128xf32>,
      %c0_i32_405 = arith.constant 0 : i32
      %1236 = vector.broadcast %c0_i32_405 : i32 to vector<24x128xi32>
      %1237 = arith.cmpi eq, %1204, %1236 : vector<24x128xi32>
      %c1_i32_406 = arith.constant 1 : i32
      %1238 = tpu.dynamic_rotate %1181 by %c1_i32_406 dim 1 : vector<24x128xf32>, i32 -> vector<24x128xf32>
      %cst_407 = arith.constant 0.000000e+00 : f32
      %1239 = vector.broadcast %cst_407 : f32 to vector<24x128xf32>
      %1240 = arith.select %1237, %1239, %1238 : vector<24x128xi1>, vector<24x128xf32>
      %c127_i32_408 = arith.constant 127 : i32
      %1241 = vector.broadcast %c127_i32_408 : i32 to vector<24x128xi32>
      %1242 = arith.cmpi eq, %1204, %1241 : vector<24x128xi32>
      %c127_i32_409 = arith.constant 127 : i32
      %1243 = tpu.dynamic_rotate %1181 by %c127_i32_409 dim 1 : vector<24x128xf32>, i32 -> vector<24x128xf32>
      %cst_410 = arith.constant 0.000000e+00 : f32
      %1244 = vector.broadcast %cst_410 : f32 to vector<24x128xf32>
      %1245 = arith.select %1242, %1244, %1243 : vector<24x128xi1>, vector<24x128xf32>
      %c3_411 = arith.constant 3 : index
      %c0_412 = arith.constant 0 : index
      %c0_413 = arith.constant 0 : index
      %1246 = vector.load %arg7[%c3_411, %c0_412, %c0_413] : memref<9x24x128xf32, #tpu.memory_space<vmem>>, vector<1x24x128xf32>
      %1247 = vector.shape_cast %1246 : vector<1x24x128xf32> to vector<24x128xf32>
      %1248 = vector.shape_cast %1240 : vector<24x128xf32> to vector<1x24x128xf32>
      tpu.vector_store %arg7[%c3_411, %c0_412, %c0_413], %1248 {strides = array<i32>} : memref<9x24x128xf32, #tpu.memory_space<vmem>>, vector<1x24x128xf32>,
      %c4_414 = arith.constant 4 : index
      %c0_415 = arith.constant 0 : index
      %c0_416 = arith.constant 0 : index
      %1249 = vector.load %arg7[%c4_414, %c0_415, %c0_416] : memref<9x24x128xf32, #tpu.memory_space<vmem>>, vector<1x24x128xf32>
      %1250 = vector.shape_cast %1249 : vector<1x24x128xf32> to vector<24x128xf32>
      %1251 = vector.shape_cast %1181 : vector<24x128xf32> to vector<1x24x128xf32>
      tpu.vector_store %arg7[%c4_414, %c0_415, %c0_416], %1251 {strides = array<i32>} : memref<9x24x128xf32, #tpu.memory_space<vmem>>, vector<1x24x128xf32>,
      %c5_417 = arith.constant 5 : index
      %c0_418 = arith.constant 0 : index
      %c0_419 = arith.constant 0 : index
      %1252 = vector.load %arg7[%c5_417, %c0_418, %c0_419] : memref<9x24x128xf32, #tpu.memory_space<vmem>>, vector<1x24x128xf32>
      %1253 = vector.shape_cast %1252 : vector<1x24x128xf32> to vector<24x128xf32>
      %1254 = vector.shape_cast %1245 : vector<24x128xf32> to vector<1x24x128xf32>
      tpu.vector_store %arg7[%c5_417, %c0_418, %c0_419], %1254 {strides = array<i32>} : memref<9x24x128xf32, #tpu.memory_space<vmem>>, vector<1x24x128xf32>,
      %c0_i32_420 = arith.constant 0 : i32
      %1255 = vector.broadcast %c0_i32_420 : i32 to vector<24x128xi32>
      %1256 = arith.cmpi eq, %1204, %1255 : vector<24x128xi32>
      %c1_i32_421 = arith.constant 1 : i32
      %1257 = tpu.dynamic_rotate %1216 by %c1_i32_421 dim 1 : vector<24x128xf32>, i32 -> vector<24x128xf32>
      %cst_422 = arith.constant 0.000000e+00 : f32
      %1258 = vector.broadcast %cst_422 : f32 to vector<24x128xf32>
      %1259 = arith.select %1256, %1258, %1257 : vector<24x128xi1>, vector<24x128xf32>
      %c127_i32_423 = arith.constant 127 : i32
      %1260 = vector.broadcast %c127_i32_423 : i32 to vector<24x128xi32>
      %1261 = arith.cmpi eq, %1204, %1260 : vector<24x128xi32>
      %c127_i32_424 = arith.constant 127 : i32
      %1262 = tpu.dynamic_rotate %1216 by %c127_i32_424 dim 1 : vector<24x128xf32>, i32 -> vector<24x128xf32>
      %cst_425 = arith.constant 0.000000e+00 : f32
      %1263 = vector.broadcast %cst_425 : f32 to vector<24x128xf32>
      %1264 = arith.select %1261, %1263, %1262 : vector<24x128xi1>, vector<24x128xf32>
      %c6_426 = arith.constant 6 : index
      %c0_427 = arith.constant 0 : index
      %c0_428 = arith.constant 0 : index
      %1265 = vector.load %arg7[%c6_426, %c0_427, %c0_428] : memref<9x24x128xf32, #tpu.memory_space<vmem>>, vector<1x24x128xf32>
      %1266 = vector.shape_cast %1265 : vector<1x24x128xf32> to vector<24x128xf32>
      %1267 = vector.shape_cast %1259 : vector<24x128xf32> to vector<1x24x128xf32>
      tpu.vector_store %arg7[%c6_426, %c0_427, %c0_428], %1267 {strides = array<i32>} : memref<9x24x128xf32, #tpu.memory_space<vmem>>, vector<1x24x128xf32>,
      %c7_429 = arith.constant 7 : index
      %c0_430 = arith.constant 0 : index
      %c0_431 = arith.constant 0 : index
      %1268 = vector.load %arg7[%c7_429, %c0_430, %c0_431] : memref<9x24x128xf32, #tpu.memory_space<vmem>>, vector<1x24x128xf32>
      %1269 = vector.shape_cast %1268 : vector<1x24x128xf32> to vector<24x128xf32>
      %1270 = vector.shape_cast %1216 : vector<24x128xf32> to vector<1x24x128xf32>
      tpu.vector_store %arg7[%c7_429, %c0_430, %c0_431], %1270 {strides = array<i32>} : memref<9x24x128xf32, #tpu.memory_space<vmem>>, vector<1x24x128xf32>,
      %c8_432 = arith.constant 8 : index
      %c0_433 = arith.constant 0 : index
      %c0_434 = arith.constant 0 : index
      %1271 = vector.load %arg7[%c8_432, %c0_433, %c0_434] : memref<9x24x128xf32, #tpu.memory_space<vmem>>, vector<1x24x128xf32>
      %1272 = vector.shape_cast %1271 : vector<1x24x128xf32> to vector<24x128xf32>
      %1273 = vector.shape_cast %1264 : vector<24x128xf32> to vector<1x24x128xf32>
      tpu.vector_store %arg7[%c8_432, %c0_433, %c0_434], %1273 {strides = array<i32>} : memref<9x24x128xf32, #tpu.memory_space<vmem>>, vector<1x24x128xf32>,
    } else {
    }
    %c144_i32 = arith.constant 144 : i32
    %5 = arith.muli %arg2, %c144_i32 : i32
    %c16_i32 = arith.constant 16 : i32
    %6 = arith.muli %arg2, %c16_i32 : i32
    %c0 = arith.constant 0 : index
    %c0_1 = arith.constant 0 : index
    %c0_2 = arith.constant 0 : index
    %7 = vector.load %arg7[%c0, %c0_1, %c0_2] : memref<9x24x128xf32, #tpu.memory_space<vmem>>, vector<1x24x128xf32>
    %8 = vector.shape_cast %7 : vector<1x24x128xf32> to vector<24x128xf32>
    %c0_i32_3 = arith.constant 0 : i32
    %9 = arith.addi %5, %c0_i32_3 : i32
    %10 = arith.index_cast %9 : i32 to index
    %11 = memref.load %arg4[%10] : memref<144xf32, #tpu.memory_space<smem>>
    %12 = vector.broadcast %11 : f32 to vector<24x128xf32>
    %13 = arith.mulf %12, %8 : vector<24x128xf32>
    %c9_i32 = arith.constant 9 : i32
    %14 = arith.addi %5, %c9_i32 : i32
    %15 = arith.index_cast %14 : i32 to index
    %16 = memref.load %arg4[%15] : memref<144xf32, #tpu.memory_space<smem>>
    %17 = vector.broadcast %16 : f32 to vector<24x128xf32>
    %18 = arith.mulf %17, %8 : vector<24x128xf32>
    %c18_i32 = arith.constant 18 : i32
    %19 = arith.addi %5, %c18_i32 : i32
    %20 = arith.index_cast %19 : i32 to index
    %21 = memref.load %arg4[%20] : memref<144xf32, #tpu.memory_space<smem>>
    %22 = vector.broadcast %21 : f32 to vector<24x128xf32>
    %23 = arith.mulf %22, %8 : vector<24x128xf32>
    %c27_i32 = arith.constant 27 : i32
    %24 = arith.addi %5, %c27_i32 : i32
    %25 = arith.index_cast %24 : i32 to index
    %26 = memref.load %arg4[%25] : memref<144xf32, #tpu.memory_space<smem>>
    %27 = vector.broadcast %26 : f32 to vector<24x128xf32>
    %28 = arith.mulf %27, %8 : vector<24x128xf32>
    %c36_i32 = arith.constant 36 : i32
    %29 = arith.addi %5, %c36_i32 : i32
    %30 = arith.index_cast %29 : i32 to index
    %31 = memref.load %arg4[%30] : memref<144xf32, #tpu.memory_space<smem>>
    %32 = vector.broadcast %31 : f32 to vector<24x128xf32>
    %33 = arith.mulf %32, %8 : vector<24x128xf32>
    %c45_i32 = arith.constant 45 : i32
    %34 = arith.addi %5, %c45_i32 : i32
    %35 = arith.index_cast %34 : i32 to index
    %36 = memref.load %arg4[%35] : memref<144xf32, #tpu.memory_space<smem>>
    %37 = vector.broadcast %36 : f32 to vector<24x128xf32>
    %38 = arith.mulf %37, %8 : vector<24x128xf32>
    %c54_i32 = arith.constant 54 : i32
    %39 = arith.addi %5, %c54_i32 : i32
    %40 = arith.index_cast %39 : i32 to index
    %41 = memref.load %arg4[%40] : memref<144xf32, #tpu.memory_space<smem>>
    %42 = vector.broadcast %41 : f32 to vector<24x128xf32>
    %43 = arith.mulf %42, %8 : vector<24x128xf32>
    %c63_i32 = arith.constant 63 : i32
    %44 = arith.addi %5, %c63_i32 : i32
    %45 = arith.index_cast %44 : i32 to index
    %46 = memref.load %arg4[%45] : memref<144xf32, #tpu.memory_space<smem>>
    %47 = vector.broadcast %46 : f32 to vector<24x128xf32>
    %48 = arith.mulf %47, %8 : vector<24x128xf32>
    %c1 = arith.constant 1 : index
    %c0_4 = arith.constant 0 : index
    %c0_5 = arith.constant 0 : index
    %49 = vector.load %arg7[%c1, %c0_4, %c0_5] : memref<9x24x128xf32, #tpu.memory_space<vmem>>, vector<1x24x128xf32>
    %50 = vector.shape_cast %49 : vector<1x24x128xf32> to vector<24x128xf32>
    %c0_i32_6 = arith.constant 0 : i32
    %51 = arith.addi %5, %c0_i32_6 : i32
    %c1_i32 = arith.constant 1 : i32
    %52 = arith.addi %51, %c1_i32 : i32
    %53 = arith.index_cast %52 : i32 to index
    %54 = memref.load %arg4[%53] : memref<144xf32, #tpu.memory_space<smem>>
    %55 = vector.broadcast %54 : f32 to vector<24x128xf32>
    %56 = arith.mulf %55, %50 : vector<24x128xf32>
    %57 = arith.addf %13, %56 : vector<24x128xf32>
    %c9_i32_7 = arith.constant 9 : i32
    %58 = arith.addi %5, %c9_i32_7 : i32
    %c1_i32_8 = arith.constant 1 : i32
    %59 = arith.addi %58, %c1_i32_8 : i32
    %60 = arith.index_cast %59 : i32 to index
    %61 = memref.load %arg4[%60] : memref<144xf32, #tpu.memory_space<smem>>
    %62 = vector.broadcast %61 : f32 to vector<24x128xf32>
    %63 = arith.mulf %62, %50 : vector<24x128xf32>
    %64 = arith.addf %18, %63 : vector<24x128xf32>
    %c18_i32_9 = arith.constant 18 : i32
    %65 = arith.addi %5, %c18_i32_9 : i32
    %c1_i32_10 = arith.constant 1 : i32
    %66 = arith.addi %65, %c1_i32_10 : i32
    %67 = arith.index_cast %66 : i32 to index
    %68 = memref.load %arg4[%67] : memref<144xf32, #tpu.memory_space<smem>>
    %69 = vector.broadcast %68 : f32 to vector<24x128xf32>
    %70 = arith.mulf %69, %50 : vector<24x128xf32>
    %71 = arith.addf %23, %70 : vector<24x128xf32>
    %c27_i32_11 = arith.constant 27 : i32
    %72 = arith.addi %5, %c27_i32_11 : i32
    %c1_i32_12 = arith.constant 1 : i32
    %73 = arith.addi %72, %c1_i32_12 : i32
    %74 = arith.index_cast %73 : i32 to index
    %75 = memref.load %arg4[%74] : memref<144xf32, #tpu.memory_space<smem>>
    %76 = vector.broadcast %75 : f32 to vector<24x128xf32>
    %77 = arith.mulf %76, %50 : vector<24x128xf32>
    %78 = arith.addf %28, %77 : vector<24x128xf32>
    %c36_i32_13 = arith.constant 36 : i32
    %79 = arith.addi %5, %c36_i32_13 : i32
    %c1_i32_14 = arith.constant 1 : i32
    %80 = arith.addi %79, %c1_i32_14 : i32
    %81 = arith.index_cast %80 : i32 to index
    %82 = memref.load %arg4[%81] : memref<144xf32, #tpu.memory_space<smem>>
    %83 = vector.broadcast %82 : f32 to vector<24x128xf32>
    %84 = arith.mulf %83, %50 : vector<24x128xf32>
    %85 = arith.addf %33, %84 : vector<24x128xf32>
    %c45_i32_15 = arith.constant 45 : i32
    %86 = arith.addi %5, %c45_i32_15 : i32
    %c1_i32_16 = arith.constant 1 : i32
    %87 = arith.addi %86, %c1_i32_16 : i32
    %88 = arith.index_cast %87 : i32 to index
    %89 = memref.load %arg4[%88] : memref<144xf32, #tpu.memory_space<smem>>
    %90 = vector.broadcast %89 : f32 to vector<24x128xf32>
    %91 = arith.mulf %90, %50 : vector<24x128xf32>
    %92 = arith.addf %38, %91 : vector<24x128xf32>
    %c54_i32_17 = arith.constant 54 : i32
    %93 = arith.addi %5, %c54_i32_17 : i32
    %c1_i32_18 = arith.constant 1 : i32
    %94 = arith.addi %93, %c1_i32_18 : i32
    %95 = arith.index_cast %94 : i32 to index
    %96 = memref.load %arg4[%95] : memref<144xf32, #tpu.memory_space<smem>>
    %97 = vector.broadcast %96 : f32 to vector<24x128xf32>
    %98 = arith.mulf %97, %50 : vector<24x128xf32>
    %99 = arith.addf %43, %98 : vector<24x128xf32>
    %c63_i32_19 = arith.constant 63 : i32
    %100 = arith.addi %5, %c63_i32_19 : i32
    %c1_i32_20 = arith.constant 1 : i32
    %101 = arith.addi %100, %c1_i32_20 : i32
    %102 = arith.index_cast %101 : i32 to index
    %103 = memref.load %arg4[%102] : memref<144xf32, #tpu.memory_space<smem>>
    %104 = vector.broadcast %103 : f32 to vector<24x128xf32>
    %105 = arith.mulf %104, %50 : vector<24x128xf32>
    %106 = arith.addf %48, %105 : vector<24x128xf32>
    %c2 = arith.constant 2 : index
    %c0_21 = arith.constant 0 : index
    %c0_22 = arith.constant 0 : index
    %107 = vector.load %arg7[%c2, %c0_21, %c0_22] : memref<9x24x128xf32, #tpu.memory_space<vmem>>, vector<1x24x128xf32>
    %108 = vector.shape_cast %107 : vector<1x24x128xf32> to vector<24x128xf32>
    %c0_i32_23 = arith.constant 0 : i32
    %109 = arith.addi %5, %c0_i32_23 : i32
    %c2_i32 = arith.constant 2 : i32
    %110 = arith.addi %109, %c2_i32 : i32
    %111 = arith.index_cast %110 : i32 to index
    %112 = memref.load %arg4[%111] : memref<144xf32, #tpu.memory_space<smem>>
    %113 = vector.broadcast %112 : f32 to vector<24x128xf32>
    %114 = arith.mulf %113, %108 : vector<24x128xf32>
    %115 = arith.addf %57, %114 : vector<24x128xf32>
    %c9_i32_24 = arith.constant 9 : i32
    %116 = arith.addi %5, %c9_i32_24 : i32
    %c2_i32_25 = arith.constant 2 : i32
    %117 = arith.addi %116, %c2_i32_25 : i32
    %118 = arith.index_cast %117 : i32 to index
    %119 = memref.load %arg4[%118] : memref<144xf32, #tpu.memory_space<smem>>
    %120 = vector.broadcast %119 : f32 to vector<24x128xf32>
    %121 = arith.mulf %120, %108 : vector<24x128xf32>
    %122 = arith.addf %64, %121 : vector<24x128xf32>
    %c18_i32_26 = arith.constant 18 : i32
    %123 = arith.addi %5, %c18_i32_26 : i32
    %c2_i32_27 = arith.constant 2 : i32
    %124 = arith.addi %123, %c2_i32_27 : i32
    %125 = arith.index_cast %124 : i32 to index
    %126 = memref.load %arg4[%125] : memref<144xf32, #tpu.memory_space<smem>>
    %127 = vector.broadcast %126 : f32 to vector<24x128xf32>
    %128 = arith.mulf %127, %108 : vector<24x128xf32>
    %129 = arith.addf %71, %128 : vector<24x128xf32>
    %c27_i32_28 = arith.constant 27 : i32
    %130 = arith.addi %5, %c27_i32_28 : i32
    %c2_i32_29 = arith.constant 2 : i32
    %131 = arith.addi %130, %c2_i32_29 : i32
    %132 = arith.index_cast %131 : i32 to index
    %133 = memref.load %arg4[%132] : memref<144xf32, #tpu.memory_space<smem>>
    %134 = vector.broadcast %133 : f32 to vector<24x128xf32>
    %135 = arith.mulf %134, %108 : vector<24x128xf32>
    %136 = arith.addf %78, %135 : vector<24x128xf32>
    %c36_i32_30 = arith.constant 36 : i32
    %137 = arith.addi %5, %c36_i32_30 : i32
    %c2_i32_31 = arith.constant 2 : i32
    %138 = arith.addi %137, %c2_i32_31 : i32
    %139 = arith.index_cast %138 : i32 to index
    %140 = memref.load %arg4[%139] : memref<144xf32, #tpu.memory_space<smem>>
    %141 = vector.broadcast %140 : f32 to vector<24x128xf32>
    %142 = arith.mulf %141, %108 : vector<24x128xf32>
    %143 = arith.addf %85, %142 : vector<24x128xf32>
    %c45_i32_32 = arith.constant 45 : i32
    %144 = arith.addi %5, %c45_i32_32 : i32
    %c2_i32_33 = arith.constant 2 : i32
    %145 = arith.addi %144, %c2_i32_33 : i32
    %146 = arith.index_cast %145 : i32 to index
    %147 = memref.load %arg4[%146] : memref<144xf32, #tpu.memory_space<smem>>
    %148 = vector.broadcast %147 : f32 to vector<24x128xf32>
    %149 = arith.mulf %148, %108 : vector<24x128xf32>
    %150 = arith.addf %92, %149 : vector<24x128xf32>
    %c54_i32_34 = arith.constant 54 : i32
    %151 = arith.addi %5, %c54_i32_34 : i32
    %c2_i32_35 = arith.constant 2 : i32
    %152 = arith.addi %151, %c2_i32_35 : i32
    %153 = arith.index_cast %152 : i32 to index
    %154 = memref.load %arg4[%153] : memref<144xf32, #tpu.memory_space<smem>>
    %155 = vector.broadcast %154 : f32 to vector<24x128xf32>
    %156 = arith.mulf %155, %108 : vector<24x128xf32>
    %157 = arith.addf %99, %156 : vector<24x128xf32>
    %c63_i32_36 = arith.constant 63 : i32
    %158 = arith.addi %5, %c63_i32_36 : i32
    %c2_i32_37 = arith.constant 2 : i32
    %159 = arith.addi %158, %c2_i32_37 : i32
    %160 = arith.index_cast %159 : i32 to index
    %161 = memref.load %arg4[%160] : memref<144xf32, #tpu.memory_space<smem>>
    %162 = vector.broadcast %161 : f32 to vector<24x128xf32>
    %163 = arith.mulf %162, %108 : vector<24x128xf32>
    %164 = arith.addf %106, %163 : vector<24x128xf32>
    %c3 = arith.constant 3 : index
    %c0_38 = arith.constant 0 : index
    %c0_39 = arith.constant 0 : index
    %165 = vector.load %arg7[%c3, %c0_38, %c0_39] : memref<9x24x128xf32, #tpu.memory_space<vmem>>, vector<1x24x128xf32>
    %166 = vector.shape_cast %165 : vector<1x24x128xf32> to vector<24x128xf32>
    %c0_i32_40 = arith.constant 0 : i32
    %167 = arith.addi %5, %c0_i32_40 : i32
    %c3_i32 = arith.constant 3 : i32
    %168 = arith.addi %167, %c3_i32 : i32
    %169 = arith.index_cast %168 : i32 to index
    %170 = memref.load %arg4[%169] : memref<144xf32, #tpu.memory_space<smem>>
    %171 = vector.broadcast %170 : f32 to vector<24x128xf32>
    %172 = arith.mulf %171, %166 : vector<24x128xf32>
    %173 = arith.addf %115, %172 : vector<24x128xf32>
    %c9_i32_41 = arith.constant 9 : i32
    %174 = arith.addi %5, %c9_i32_41 : i32
    %c3_i32_42 = arith.constant 3 : i32
    %175 = arith.addi %174, %c3_i32_42 : i32
    %176 = arith.index_cast %175 : i32 to index
    %177 = memref.load %arg4[%176] : memref<144xf32, #tpu.memory_space<smem>>
    %178 = vector.broadcast %177 : f32 to vector<24x128xf32>
    %179 = arith.mulf %178, %166 : vector<24x128xf32>
    %180 = arith.addf %122, %179 : vector<24x128xf32>
    %c18_i32_43 = arith.constant 18 : i32
    %181 = arith.addi %5, %c18_i32_43 : i32
    %c3_i32_44 = arith.constant 3 : i32
    %182 = arith.addi %181, %c3_i32_44 : i32
    %183 = arith.index_cast %182 : i32 to index
    %184 = memref.load %arg4[%183] : memref<144xf32, #tpu.memory_space<smem>>
    %185 = vector.broadcast %184 : f32 to vector<24x128xf32>
    %186 = arith.mulf %185, %166 : vector<24x128xf32>
    %187 = arith.addf %129, %186 : vector<24x128xf32>
    %c27_i32_45 = arith.constant 27 : i32
    %188 = arith.addi %5, %c27_i32_45 : i32
    %c3_i32_46 = arith.constant 3 : i32
    %189 = arith.addi %188, %c3_i32_46 : i32
    %190 = arith.index_cast %189 : i32 to index
    %191 = memref.load %arg4[%190] : memref<144xf32, #tpu.memory_space<smem>>
    %192 = vector.broadcast %191 : f32 to vector<24x128xf32>
    %193 = arith.mulf %192, %166 : vector<24x128xf32>
    %194 = arith.addf %136, %193 : vector<24x128xf32>
    %c36_i32_47 = arith.constant 36 : i32
    %195 = arith.addi %5, %c36_i32_47 : i32
    %c3_i32_48 = arith.constant 3 : i32
    %196 = arith.addi %195, %c3_i32_48 : i32
    %197 = arith.index_cast %196 : i32 to index
    %198 = memref.load %arg4[%197] : memref<144xf32, #tpu.memory_space<smem>>
    %199 = vector.broadcast %198 : f32 to vector<24x128xf32>
    %200 = arith.mulf %199, %166 : vector<24x128xf32>
    %201 = arith.addf %143, %200 : vector<24x128xf32>
    %c45_i32_49 = arith.constant 45 : i32
    %202 = arith.addi %5, %c45_i32_49 : i32
    %c3_i32_50 = arith.constant 3 : i32
    %203 = arith.addi %202, %c3_i32_50 : i32
    %204 = arith.index_cast %203 : i32 to index
    %205 = memref.load %arg4[%204] : memref<144xf32, #tpu.memory_space<smem>>
    %206 = vector.broadcast %205 : f32 to vector<24x128xf32>
    %207 = arith.mulf %206, %166 : vector<24x128xf32>
    %208 = arith.addf %150, %207 : vector<24x128xf32>
    %c54_i32_51 = arith.constant 54 : i32
    %209 = arith.addi %5, %c54_i32_51 : i32
    %c3_i32_52 = arith.constant 3 : i32
    %210 = arith.addi %209, %c3_i32_52 : i32
    %211 = arith.index_cast %210 : i32 to index
    %212 = memref.load %arg4[%211] : memref<144xf32, #tpu.memory_space<smem>>
    %213 = vector.broadcast %212 : f32 to vector<24x128xf32>
    %214 = arith.mulf %213, %166 : vector<24x128xf32>
    %215 = arith.addf %157, %214 : vector<24x128xf32>
    %c63_i32_53 = arith.constant 63 : i32
    %216 = arith.addi %5, %c63_i32_53 : i32
    %c3_i32_54 = arith.constant 3 : i32
    %217 = arith.addi %216, %c3_i32_54 : i32
    %218 = arith.index_cast %217 : i32 to index
    %219 = memref.load %arg4[%218] : memref<144xf32, #tpu.memory_space<smem>>
    %220 = vector.broadcast %219 : f32 to vector<24x128xf32>
    %221 = arith.mulf %220, %166 : vector<24x128xf32>
    %222 = arith.addf %164, %221 : vector<24x128xf32>
    %c4 = arith.constant 4 : index
    %c0_55 = arith.constant 0 : index
    %c0_56 = arith.constant 0 : index
    %223 = vector.load %arg7[%c4, %c0_55, %c0_56] : memref<9x24x128xf32, #tpu.memory_space<vmem>>, vector<1x24x128xf32>
    %224 = vector.shape_cast %223 : vector<1x24x128xf32> to vector<24x128xf32>
    %c0_i32_57 = arith.constant 0 : i32
    %225 = arith.addi %5, %c0_i32_57 : i32
    %c4_i32 = arith.constant 4 : i32
    %226 = arith.addi %225, %c4_i32 : i32
    %227 = arith.index_cast %226 : i32 to index
    %228 = memref.load %arg4[%227] : memref<144xf32, #tpu.memory_space<smem>>
    %229 = vector.broadcast %228 : f32 to vector<24x128xf32>
    %230 = arith.mulf %229, %224 : vector<24x128xf32>
    %231 = arith.addf %173, %230 : vector<24x128xf32>
    %c9_i32_58 = arith.constant 9 : i32
    %232 = arith.addi %5, %c9_i32_58 : i32
    %c4_i32_59 = arith.constant 4 : i32
    %233 = arith.addi %232, %c4_i32_59 : i32
    %234 = arith.index_cast %233 : i32 to index
    %235 = memref.load %arg4[%234] : memref<144xf32, #tpu.memory_space<smem>>
    %236 = vector.broadcast %235 : f32 to vector<24x128xf32>
    %237 = arith.mulf %236, %224 : vector<24x128xf32>
    %238 = arith.addf %180, %237 : vector<24x128xf32>
    %c18_i32_60 = arith.constant 18 : i32
    %239 = arith.addi %5, %c18_i32_60 : i32
    %c4_i32_61 = arith.constant 4 : i32
    %240 = arith.addi %239, %c4_i32_61 : i32
    %241 = arith.index_cast %240 : i32 to index
    %242 = memref.load %arg4[%241] : memref<144xf32, #tpu.memory_space<smem>>
    %243 = vector.broadcast %242 : f32 to vector<24x128xf32>
    %244 = arith.mulf %243, %224 : vector<24x128xf32>
    %245 = arith.addf %187, %244 : vector<24x128xf32>
    %c27_i32_62 = arith.constant 27 : i32
    %246 = arith.addi %5, %c27_i32_62 : i32
    %c4_i32_63 = arith.constant 4 : i32
    %247 = arith.addi %246, %c4_i32_63 : i32
    %248 = arith.index_cast %247 : i32 to index
    %249 = memref.load %arg4[%248] : memref<144xf32, #tpu.memory_space<smem>>
    %250 = vector.broadcast %249 : f32 to vector<24x128xf32>
    %251 = arith.mulf %250, %224 : vector<24x128xf32>
    %252 = arith.addf %194, %251 : vector<24x128xf32>
    %c36_i32_64 = arith.constant 36 : i32
    %253 = arith.addi %5, %c36_i32_64 : i32
    %c4_i32_65 = arith.constant 4 : i32
    %254 = arith.addi %253, %c4_i32_65 : i32
    %255 = arith.index_cast %254 : i32 to index
    %256 = memref.load %arg4[%255] : memref<144xf32, #tpu.memory_space<smem>>
    %257 = vector.broadcast %256 : f32 to vector<24x128xf32>
    %258 = arith.mulf %257, %224 : vector<24x128xf32>
    %259 = arith.addf %201, %258 : vector<24x128xf32>
    %c45_i32_66 = arith.constant 45 : i32
    %260 = arith.addi %5, %c45_i32_66 : i32
    %c4_i32_67 = arith.constant 4 : i32
    %261 = arith.addi %260, %c4_i32_67 : i32
    %262 = arith.index_cast %261 : i32 to index
    %263 = memref.load %arg4[%262] : memref<144xf32, #tpu.memory_space<smem>>
    %264 = vector.broadcast %263 : f32 to vector<24x128xf32>
    %265 = arith.mulf %264, %224 : vector<24x128xf32>
    %266 = arith.addf %208, %265 : vector<24x128xf32>
    %c54_i32_68 = arith.constant 54 : i32
    %267 = arith.addi %5, %c54_i32_68 : i32
    %c4_i32_69 = arith.constant 4 : i32
    %268 = arith.addi %267, %c4_i32_69 : i32
    %269 = arith.index_cast %268 : i32 to index
    %270 = memref.load %arg4[%269] : memref<144xf32, #tpu.memory_space<smem>>
    %271 = vector.broadcast %270 : f32 to vector<24x128xf32>
    %272 = arith.mulf %271, %224 : vector<24x128xf32>
    %273 = arith.addf %215, %272 : vector<24x128xf32>
    %c63_i32_70 = arith.constant 63 : i32
    %274 = arith.addi %5, %c63_i32_70 : i32
    %c4_i32_71 = arith.constant 4 : i32
    %275 = arith.addi %274, %c4_i32_71 : i32
    %276 = arith.index_cast %275 : i32 to index
    %277 = memref.load %arg4[%276] : memref<144xf32, #tpu.memory_space<smem>>
    %278 = vector.broadcast %277 : f32 to vector<24x128xf32>
    %279 = arith.mulf %278, %224 : vector<24x128xf32>
    %280 = arith.addf %222, %279 : vector<24x128xf32>
    %c5 = arith.constant 5 : index
    %c0_72 = arith.constant 0 : index
    %c0_73 = arith.constant 0 : index
    %281 = vector.load %arg7[%c5, %c0_72, %c0_73] : memref<9x24x128xf32, #tpu.memory_space<vmem>>, vector<1x24x128xf32>
    %282 = vector.shape_cast %281 : vector<1x24x128xf32> to vector<24x128xf32>
    %c0_i32_74 = arith.constant 0 : i32
    %283 = arith.addi %5, %c0_i32_74 : i32
    %c5_i32 = arith.constant 5 : i32
    %284 = arith.addi %283, %c5_i32 : i32
    %285 = arith.index_cast %284 : i32 to index
    %286 = memref.load %arg4[%285] : memref<144xf32, #tpu.memory_space<smem>>
    %287 = vector.broadcast %286 : f32 to vector<24x128xf32>
    %288 = arith.mulf %287, %282 : vector<24x128xf32>
    %289 = arith.addf %231, %288 : vector<24x128xf32>
    %c9_i32_75 = arith.constant 9 : i32
    %290 = arith.addi %5, %c9_i32_75 : i32
    %c5_i32_76 = arith.constant 5 : i32
    %291 = arith.addi %290, %c5_i32_76 : i32
    %292 = arith.index_cast %291 : i32 to index
    %293 = memref.load %arg4[%292] : memref<144xf32, #tpu.memory_space<smem>>
    %294 = vector.broadcast %293 : f32 to vector<24x128xf32>
    %295 = arith.mulf %294, %282 : vector<24x128xf32>
    %296 = arith.addf %238, %295 : vector<24x128xf32>
    %c18_i32_77 = arith.constant 18 : i32
    %297 = arith.addi %5, %c18_i32_77 : i32
    %c5_i32_78 = arith.constant 5 : i32
    %298 = arith.addi %297, %c5_i32_78 : i32
    %299 = arith.index_cast %298 : i32 to index
    %300 = memref.load %arg4[%299] : memref<144xf32, #tpu.memory_space<smem>>
    %301 = vector.broadcast %300 : f32 to vector<24x128xf32>
    %302 = arith.mulf %301, %282 : vector<24x128xf32>
    %303 = arith.addf %245, %302 : vector<24x128xf32>
    %c27_i32_79 = arith.constant 27 : i32
    %304 = arith.addi %5, %c27_i32_79 : i32
    %c5_i32_80 = arith.constant 5 : i32
    %305 = arith.addi %304, %c5_i32_80 : i32
    %306 = arith.index_cast %305 : i32 to index
    %307 = memref.load %arg4[%306] : memref<144xf32, #tpu.memory_space<smem>>
    %308 = vector.broadcast %307 : f32 to vector<24x128xf32>
    %309 = arith.mulf %308, %282 : vector<24x128xf32>
    %310 = arith.addf %252, %309 : vector<24x128xf32>
    %c36_i32_81 = arith.constant 36 : i32
    %311 = arith.addi %5, %c36_i32_81 : i32
    %c5_i32_82 = arith.constant 5 : i32
    %312 = arith.addi %311, %c5_i32_82 : i32
    %313 = arith.index_cast %312 : i32 to index
    %314 = memref.load %arg4[%313] : memref<144xf32, #tpu.memory_space<smem>>
    %315 = vector.broadcast %314 : f32 to vector<24x128xf32>
    %316 = arith.mulf %315, %282 : vector<24x128xf32>
    %317 = arith.addf %259, %316 : vector<24x128xf32>
    %c45_i32_83 = arith.constant 45 : i32
    %318 = arith.addi %5, %c45_i32_83 : i32
    %c5_i32_84 = arith.constant 5 : i32
    %319 = arith.addi %318, %c5_i32_84 : i32
    %320 = arith.index_cast %319 : i32 to index
    %321 = memref.load %arg4[%320] : memref<144xf32, #tpu.memory_space<smem>>
    %322 = vector.broadcast %321 : f32 to vector<24x128xf32>
    %323 = arith.mulf %322, %282 : vector<24x128xf32>
    %324 = arith.addf %266, %323 : vector<24x128xf32>
    %c54_i32_85 = arith.constant 54 : i32
    %325 = arith.addi %5, %c54_i32_85 : i32
    %c5_i32_86 = arith.constant 5 : i32
    %326 = arith.addi %325, %c5_i32_86 : i32
    %327 = arith.index_cast %326 : i32 to index
    %328 = memref.load %arg4[%327] : memref<144xf32, #tpu.memory_space<smem>>
    %329 = vector.broadcast %328 : f32 to vector<24x128xf32>
    %330 = arith.mulf %329, %282 : vector<24x128xf32>
    %331 = arith.addf %273, %330 : vector<24x128xf32>
    %c63_i32_87 = arith.constant 63 : i32
    %332 = arith.addi %5, %c63_i32_87 : i32
    %c5_i32_88 = arith.constant 5 : i32
    %333 = arith.addi %332, %c5_i32_88 : i32
    %334 = arith.index_cast %333 : i32 to index
    %335 = memref.load %arg4[%334] : memref<144xf32, #tpu.memory_space<smem>>
    %336 = vector.broadcast %335 : f32 to vector<24x128xf32>
    %337 = arith.mulf %336, %282 : vector<24x128xf32>
    %338 = arith.addf %280, %337 : vector<24x128xf32>
    %c6 = arith.constant 6 : index
    %c0_89 = arith.constant 0 : index
    %c0_90 = arith.constant 0 : index
    %339 = vector.load %arg7[%c6, %c0_89, %c0_90] : memref<9x24x128xf32, #tpu.memory_space<vmem>>, vector<1x24x128xf32>
    %340 = vector.shape_cast %339 : vector<1x24x128xf32> to vector<24x128xf32>
    %c0_i32_91 = arith.constant 0 : i32
    %341 = arith.addi %5, %c0_i32_91 : i32
    %c6_i32 = arith.constant 6 : i32
    %342 = arith.addi %341, %c6_i32 : i32
    %343 = arith.index_cast %342 : i32 to index
    %344 = memref.load %arg4[%343] : memref<144xf32, #tpu.memory_space<smem>>
    %345 = vector.broadcast %344 : f32 to vector<24x128xf32>
    %346 = arith.mulf %345, %340 : vector<24x128xf32>
    %347 = arith.addf %289, %346 : vector<24x128xf32>
    %c9_i32_92 = arith.constant 9 : i32
    %348 = arith.addi %5, %c9_i32_92 : i32
    %c6_i32_93 = arith.constant 6 : i32
    %349 = arith.addi %348, %c6_i32_93 : i32
    %350 = arith.index_cast %349 : i32 to index
    %351 = memref.load %arg4[%350] : memref<144xf32, #tpu.memory_space<smem>>
    %352 = vector.broadcast %351 : f32 to vector<24x128xf32>
    %353 = arith.mulf %352, %340 : vector<24x128xf32>
    %354 = arith.addf %296, %353 : vector<24x128xf32>
    %c18_i32_94 = arith.constant 18 : i32
    %355 = arith.addi %5, %c18_i32_94 : i32
    %c6_i32_95 = arith.constant 6 : i32
    %356 = arith.addi %355, %c6_i32_95 : i32
    %357 = arith.index_cast %356 : i32 to index
    %358 = memref.load %arg4[%357] : memref<144xf32, #tpu.memory_space<smem>>
    %359 = vector.broadcast %358 : f32 to vector<24x128xf32>
    %360 = arith.mulf %359, %340 : vector<24x128xf32>
    %361 = arith.addf %303, %360 : vector<24x128xf32>
    %c27_i32_96 = arith.constant 27 : i32
    %362 = arith.addi %5, %c27_i32_96 : i32
    %c6_i32_97 = arith.constant 6 : i32
    %363 = arith.addi %362, %c6_i32_97 : i32
    %364 = arith.index_cast %363 : i32 to index
    %365 = memref.load %arg4[%364] : memref<144xf32, #tpu.memory_space<smem>>
    %366 = vector.broadcast %365 : f32 to vector<24x128xf32>
    %367 = arith.mulf %366, %340 : vector<24x128xf32>
    %368 = arith.addf %310, %367 : vector<24x128xf32>
    %c36_i32_98 = arith.constant 36 : i32
    %369 = arith.addi %5, %c36_i32_98 : i32
    %c6_i32_99 = arith.constant 6 : i32
    %370 = arith.addi %369, %c6_i32_99 : i32
    %371 = arith.index_cast %370 : i32 to index
    %372 = memref.load %arg4[%371] : memref<144xf32, #tpu.memory_space<smem>>
    %373 = vector.broadcast %372 : f32 to vector<24x128xf32>
    %374 = arith.mulf %373, %340 : vector<24x128xf32>
    %375 = arith.addf %317, %374 : vector<24x128xf32>
    %c45_i32_100 = arith.constant 45 : i32
    %376 = arith.addi %5, %c45_i32_100 : i32
    %c6_i32_101 = arith.constant 6 : i32
    %377 = arith.addi %376, %c6_i32_101 : i32
    %378 = arith.index_cast %377 : i32 to index
    %379 = memref.load %arg4[%378] : memref<144xf32, #tpu.memory_space<smem>>
    %380 = vector.broadcast %379 : f32 to vector<24x128xf32>
    %381 = arith.mulf %380, %340 : vector<24x128xf32>
    %382 = arith.addf %324, %381 : vector<24x128xf32>
    %c54_i32_102 = arith.constant 54 : i32
    %383 = arith.addi %5, %c54_i32_102 : i32
    %c6_i32_103 = arith.constant 6 : i32
    %384 = arith.addi %383, %c6_i32_103 : i32
    %385 = arith.index_cast %384 : i32 to index
    %386 = memref.load %arg4[%385] : memref<144xf32, #tpu.memory_space<smem>>
    %387 = vector.broadcast %386 : f32 to vector<24x128xf32>
    %388 = arith.mulf %387, %340 : vector<24x128xf32>
    %389 = arith.addf %331, %388 : vector<24x128xf32>
    %c63_i32_104 = arith.constant 63 : i32
    %390 = arith.addi %5, %c63_i32_104 : i32
    %c6_i32_105 = arith.constant 6 : i32
    %391 = arith.addi %390, %c6_i32_105 : i32
    %392 = arith.index_cast %391 : i32 to index
    %393 = memref.load %arg4[%392] : memref<144xf32, #tpu.memory_space<smem>>
    %394 = vector.broadcast %393 : f32 to vector<24x128xf32>
    %395 = arith.mulf %394, %340 : vector<24x128xf32>
    %396 = arith.addf %338, %395 : vector<24x128xf32>
    %c7 = arith.constant 7 : index
    %c0_106 = arith.constant 0 : index
    %c0_107 = arith.constant 0 : index
    %397 = vector.load %arg7[%c7, %c0_106, %c0_107] : memref<9x24x128xf32, #tpu.memory_space<vmem>>, vector<1x24x128xf32>
    %398 = vector.shape_cast %397 : vector<1x24x128xf32> to vector<24x128xf32>
    %c0_i32_108 = arith.constant 0 : i32
    %399 = arith.addi %5, %c0_i32_108 : i32
    %c7_i32 = arith.constant 7 : i32
    %400 = arith.addi %399, %c7_i32 : i32
    %401 = arith.index_cast %400 : i32 to index
    %402 = memref.load %arg4[%401] : memref<144xf32, #tpu.memory_space<smem>>
    %403 = vector.broadcast %402 : f32 to vector<24x128xf32>
    %404 = arith.mulf %403, %398 : vector<24x128xf32>
    %405 = arith.addf %347, %404 : vector<24x128xf32>
    %c9_i32_109 = arith.constant 9 : i32
    %406 = arith.addi %5, %c9_i32_109 : i32
    %c7_i32_110 = arith.constant 7 : i32
    %407 = arith.addi %406, %c7_i32_110 : i32
    %408 = arith.index_cast %407 : i32 to index
    %409 = memref.load %arg4[%408] : memref<144xf32, #tpu.memory_space<smem>>
    %410 = vector.broadcast %409 : f32 to vector<24x128xf32>
    %411 = arith.mulf %410, %398 : vector<24x128xf32>
    %412 = arith.addf %354, %411 : vector<24x128xf32>
    %c18_i32_111 = arith.constant 18 : i32
    %413 = arith.addi %5, %c18_i32_111 : i32
    %c7_i32_112 = arith.constant 7 : i32
    %414 = arith.addi %413, %c7_i32_112 : i32
    %415 = arith.index_cast %414 : i32 to index
    %416 = memref.load %arg4[%415] : memref<144xf32, #tpu.memory_space<smem>>
    %417 = vector.broadcast %416 : f32 to vector<24x128xf32>
    %418 = arith.mulf %417, %398 : vector<24x128xf32>
    %419 = arith.addf %361, %418 : vector<24x128xf32>
    %c27_i32_113 = arith.constant 27 : i32
    %420 = arith.addi %5, %c27_i32_113 : i32
    %c7_i32_114 = arith.constant 7 : i32
    %421 = arith.addi %420, %c7_i32_114 : i32
    %422 = arith.index_cast %421 : i32 to index
    %423 = memref.load %arg4[%422] : memref<144xf32, #tpu.memory_space<smem>>
    %424 = vector.broadcast %423 : f32 to vector<24x128xf32>
    %425 = arith.mulf %424, %398 : vector<24x128xf32>
    %426 = arith.addf %368, %425 : vector<24x128xf32>
    %c36_i32_115 = arith.constant 36 : i32
    %427 = arith.addi %5, %c36_i32_115 : i32
    %c7_i32_116 = arith.constant 7 : i32
    %428 = arith.addi %427, %c7_i32_116 : i32
    %429 = arith.index_cast %428 : i32 to index
    %430 = memref.load %arg4[%429] : memref<144xf32, #tpu.memory_space<smem>>
    %431 = vector.broadcast %430 : f32 to vector<24x128xf32>
    %432 = arith.mulf %431, %398 : vector<24x128xf32>
    %433 = arith.addf %375, %432 : vector<24x128xf32>
    %c45_i32_117 = arith.constant 45 : i32
    %434 = arith.addi %5, %c45_i32_117 : i32
    %c7_i32_118 = arith.constant 7 : i32
    %435 = arith.addi %434, %c7_i32_118 : i32
    %436 = arith.index_cast %435 : i32 to index
    %437 = memref.load %arg4[%436] : memref<144xf32, #tpu.memory_space<smem>>
    %438 = vector.broadcast %437 : f32 to vector<24x128xf32>
    %439 = arith.mulf %438, %398 : vector<24x128xf32>
    %440 = arith.addf %382, %439 : vector<24x128xf32>
    %c54_i32_119 = arith.constant 54 : i32
    %441 = arith.addi %5, %c54_i32_119 : i32
    %c7_i32_120 = arith.constant 7 : i32
    %442 = arith.addi %441, %c7_i32_120 : i32
    %443 = arith.index_cast %442 : i32 to index
    %444 = memref.load %arg4[%443] : memref<144xf32, #tpu.memory_space<smem>>
    %445 = vector.broadcast %444 : f32 to vector<24x128xf32>
    %446 = arith.mulf %445, %398 : vector<24x128xf32>
    %447 = arith.addf %389, %446 : vector<24x128xf32>
    %c63_i32_121 = arith.constant 63 : i32
    %448 = arith.addi %5, %c63_i32_121 : i32
    %c7_i32_122 = arith.constant 7 : i32
    %449 = arith.addi %448, %c7_i32_122 : i32
    %450 = arith.index_cast %449 : i32 to index
    %451 = memref.load %arg4[%450] : memref<144xf32, #tpu.memory_space<smem>>
    %452 = vector.broadcast %451 : f32 to vector<24x128xf32>
    %453 = arith.mulf %452, %398 : vector<24x128xf32>
    %454 = arith.addf %396, %453 : vector<24x128xf32>
    %c8 = arith.constant 8 : index
    %c0_123 = arith.constant 0 : index
    %c0_124 = arith.constant 0 : index
    %455 = vector.load %arg7[%c8, %c0_123, %c0_124] : memref<9x24x128xf32, #tpu.memory_space<vmem>>, vector<1x24x128xf32>
    %456 = vector.shape_cast %455 : vector<1x24x128xf32> to vector<24x128xf32>
    %c0_i32_125 = arith.constant 0 : i32
    %457 = arith.addi %5, %c0_i32_125 : i32
    %c8_i32 = arith.constant 8 : i32
    %458 = arith.addi %457, %c8_i32 : i32
    %459 = arith.index_cast %458 : i32 to index
    %460 = memref.load %arg4[%459] : memref<144xf32, #tpu.memory_space<smem>>
    %461 = vector.broadcast %460 : f32 to vector<24x128xf32>
    %462 = arith.mulf %461, %456 : vector<24x128xf32>
    %463 = arith.addf %405, %462 : vector<24x128xf32>
    %c9_i32_126 = arith.constant 9 : i32
    %464 = arith.addi %5, %c9_i32_126 : i32
    %c8_i32_127 = arith.constant 8 : i32
    %465 = arith.addi %464, %c8_i32_127 : i32
    %466 = arith.index_cast %465 : i32 to index
    %467 = memref.load %arg4[%466] : memref<144xf32, #tpu.memory_space<smem>>
    %468 = vector.broadcast %467 : f32 to vector<24x128xf32>
    %469 = arith.mulf %468, %456 : vector<24x128xf32>
    %470 = arith.addf %412, %469 : vector<24x128xf32>
    %c18_i32_128 = arith.constant 18 : i32
    %471 = arith.addi %5, %c18_i32_128 : i32
    %c8_i32_129 = arith.constant 8 : i32
    %472 = arith.addi %471, %c8_i32_129 : i32
    %473 = arith.index_cast %472 : i32 to index
    %474 = memref.load %arg4[%473] : memref<144xf32, #tpu.memory_space<smem>>
    %475 = vector.broadcast %474 : f32 to vector<24x128xf32>
    %476 = arith.mulf %475, %456 : vector<24x128xf32>
    %477 = arith.addf %419, %476 : vector<24x128xf32>
    %c27_i32_130 = arith.constant 27 : i32
    %478 = arith.addi %5, %c27_i32_130 : i32
    %c8_i32_131 = arith.constant 8 : i32
    %479 = arith.addi %478, %c8_i32_131 : i32
    %480 = arith.index_cast %479 : i32 to index
    %481 = memref.load %arg4[%480] : memref<144xf32, #tpu.memory_space<smem>>
    %482 = vector.broadcast %481 : f32 to vector<24x128xf32>
    %483 = arith.mulf %482, %456 : vector<24x128xf32>
    %484 = arith.addf %426, %483 : vector<24x128xf32>
    %c36_i32_132 = arith.constant 36 : i32
    %485 = arith.addi %5, %c36_i32_132 : i32
    %c8_i32_133 = arith.constant 8 : i32
    %486 = arith.addi %485, %c8_i32_133 : i32
    %487 = arith.index_cast %486 : i32 to index
    %488 = memref.load %arg4[%487] : memref<144xf32, #tpu.memory_space<smem>>
    %489 = vector.broadcast %488 : f32 to vector<24x128xf32>
    %490 = arith.mulf %489, %456 : vector<24x128xf32>
    %491 = arith.addf %433, %490 : vector<24x128xf32>
    %c45_i32_134 = arith.constant 45 : i32
    %492 = arith.addi %5, %c45_i32_134 : i32
    %c8_i32_135 = arith.constant 8 : i32
    %493 = arith.addi %492, %c8_i32_135 : i32
    %494 = arith.index_cast %493 : i32 to index
    %495 = memref.load %arg4[%494] : memref<144xf32, #tpu.memory_space<smem>>
    %496 = vector.broadcast %495 : f32 to vector<24x128xf32>
    %497 = arith.mulf %496, %456 : vector<24x128xf32>
    %498 = arith.addf %440, %497 : vector<24x128xf32>
    %c54_i32_136 = arith.constant 54 : i32
    %499 = arith.addi %5, %c54_i32_136 : i32
    %c8_i32_137 = arith.constant 8 : i32
    %500 = arith.addi %499, %c8_i32_137 : i32
    %501 = arith.index_cast %500 : i32 to index
    %502 = memref.load %arg4[%501] : memref<144xf32, #tpu.memory_space<smem>>
    %503 = vector.broadcast %502 : f32 to vector<24x128xf32>
    %504 = arith.mulf %503, %456 : vector<24x128xf32>
    %505 = arith.addf %447, %504 : vector<24x128xf32>
    %c63_i32_138 = arith.constant 63 : i32
    %506 = arith.addi %5, %c63_i32_138 : i32
    %c8_i32_139 = arith.constant 8 : i32
    %507 = arith.addi %506, %c8_i32_139 : i32
    %508 = arith.index_cast %507 : i32 to index
    %509 = memref.load %arg4[%508] : memref<144xf32, #tpu.memory_space<smem>>
    %510 = vector.broadcast %509 : f32 to vector<24x128xf32>
    %511 = arith.mulf %510, %456 : vector<24x128xf32>
    %512 = arith.addf %454, %511 : vector<24x128xf32>
    %c0_i32_140 = arith.constant 0 : i32
    %513 = arith.addi %6, %c0_i32_140 : i32
    %514 = arith.index_cast %513 : i32 to index
    %515 = memref.load %arg5[%514] : memref<16xf32, #tpu.memory_space<smem>>
    %516 = vector.broadcast %515 : f32 to vector<24x128xf32>
    %517 = arith.addf %463, %516 : vector<24x128xf32>
    %cst = arith.constant 0.000000e+00 : f32
    %518 = vector.broadcast %cst : f32 to vector<24x128xf32>
    %519 = arith.maximumf %517, %518 : vector<24x128xf32>
    %c0_141 = arith.constant 0 : index
    %c0_142 = arith.constant 0 : index
    %c0_143 = arith.constant 0 : index
    %c0_144 = arith.constant 0 : index
    %520 = vector.load %arg6[%c0_141, %c0_142, %c0_143, %c0_144] : memref<1x16x24x128xf32, #tpu.memory_space<vmem>>, vector<1x1x24x128xf32>
    %521 = vector.shape_cast %520 : vector<1x1x24x128xf32> to vector<24x128xf32>
    %522 = vector.shape_cast %519 : vector<24x128xf32> to vector<1x1x24x128xf32>
    tpu.vector_store %arg6[%c0_141, %c0_142, %c0_143, %c0_144], %522 {strides = array<i32>} : memref<1x16x24x128xf32, #tpu.memory_space<vmem>>, vector<1x1x24x128xf32>,
    %c1_i32_145 = arith.constant 1 : i32
    %523 = arith.addi %6, %c1_i32_145 : i32
    %524 = arith.index_cast %523 : i32 to index
    %525 = memref.load %arg5[%524] : memref<16xf32, #tpu.memory_space<smem>>
    %526 = vector.broadcast %525 : f32 to vector<24x128xf32>
    %527 = arith.addf %470, %526 : vector<24x128xf32>
    %cst_146 = arith.constant 0.000000e+00 : f32
    %528 = vector.broadcast %cst_146 : f32 to vector<24x128xf32>
    %529 = arith.maximumf %527, %528 : vector<24x128xf32>
    %c0_147 = arith.constant 0 : index
    %c1_148 = arith.constant 1 : index
    %c0_149 = arith.constant 0 : index
    %c0_150 = arith.constant 0 : index
    %530 = vector.load %arg6[%c0_147, %c1_148, %c0_149, %c0_150] : memref<1x16x24x128xf32, #tpu.memory_space<vmem>>, vector<1x1x24x128xf32>
    %531 = vector.shape_cast %530 : vector<1x1x24x128xf32> to vector<24x128xf32>
    %532 = vector.shape_cast %529 : vector<24x128xf32> to vector<1x1x24x128xf32>
    tpu.vector_store %arg6[%c0_147, %c1_148, %c0_149, %c0_150], %532 {strides = array<i32>} : memref<1x16x24x128xf32, #tpu.memory_space<vmem>>, vector<1x1x24x128xf32>,
    %c2_i32_151 = arith.constant 2 : i32
    %533 = arith.addi %6, %c2_i32_151 : i32
    %534 = arith.index_cast %533 : i32 to index
    %535 = memref.load %arg5[%534] : memref<16xf32, #tpu.memory_space<smem>>
    %536 = vector.broadcast %535 : f32 to vector<24x128xf32>
    %537 = arith.addf %477, %536 : vector<24x128xf32>
    %cst_152 = arith.constant 0.000000e+00 : f32
    %538 = vector.broadcast %cst_152 : f32 to vector<24x128xf32>
    %539 = arith.maximumf %537, %538 : vector<24x128xf32>
    %c0_153 = arith.constant 0 : index
    %c2_154 = arith.constant 2 : index
    %c0_155 = arith.constant 0 : index
    %c0_156 = arith.constant 0 : index
    %540 = vector.load %arg6[%c0_153, %c2_154, %c0_155, %c0_156] : memref<1x16x24x128xf32, #tpu.memory_space<vmem>>, vector<1x1x24x128xf32>
    %541 = vector.shape_cast %540 : vector<1x1x24x128xf32> to vector<24x128xf32>
    %542 = vector.shape_cast %539 : vector<24x128xf32> to vector<1x1x24x128xf32>
    tpu.vector_store %arg6[%c0_153, %c2_154, %c0_155, %c0_156], %542 {strides = array<i32>} : memref<1x16x24x128xf32, #tpu.memory_space<vmem>>, vector<1x1x24x128xf32>,
    %c3_i32_157 = arith.constant 3 : i32
    %543 = arith.addi %6, %c3_i32_157 : i32
    %544 = arith.index_cast %543 : i32 to index
    %545 = memref.load %arg5[%544] : memref<16xf32, #tpu.memory_space<smem>>
    %546 = vector.broadcast %545 : f32 to vector<24x128xf32>
    %547 = arith.addf %484, %546 : vector<24x128xf32>
    %cst_158 = arith.constant 0.000000e+00 : f32
    %548 = vector.broadcast %cst_158 : f32 to vector<24x128xf32>
    %549 = arith.maximumf %547, %548 : vector<24x128xf32>
    %c0_159 = arith.constant 0 : index
    %c3_160 = arith.constant 3 : index
    %c0_161 = arith.constant 0 : index
    %c0_162 = arith.constant 0 : index
    %550 = vector.load %arg6[%c0_159, %c3_160, %c0_161, %c0_162] : memref<1x16x24x128xf32, #tpu.memory_space<vmem>>, vector<1x1x24x128xf32>
    %551 = vector.shape_cast %550 : vector<1x1x24x128xf32> to vector<24x128xf32>
    %552 = vector.shape_cast %549 : vector<24x128xf32> to vector<1x1x24x128xf32>
    tpu.vector_store %arg6[%c0_159, %c3_160, %c0_161, %c0_162], %552 {strides = array<i32>} : memref<1x16x24x128xf32, #tpu.memory_space<vmem>>, vector<1x1x24x128xf32>,
    %c4_i32_163 = arith.constant 4 : i32
    %553 = arith.addi %6, %c4_i32_163 : i32
    %554 = arith.index_cast %553 : i32 to index
    %555 = memref.load %arg5[%554] : memref<16xf32, #tpu.memory_space<smem>>
    %556 = vector.broadcast %555 : f32 to vector<24x128xf32>
    %557 = arith.addf %491, %556 : vector<24x128xf32>
    %cst_164 = arith.constant 0.000000e+00 : f32
    %558 = vector.broadcast %cst_164 : f32 to vector<24x128xf32>
    %559 = arith.maximumf %557, %558 : vector<24x128xf32>
    %c0_165 = arith.constant 0 : index
    %c4_166 = arith.constant 4 : index
    %c0_167 = arith.constant 0 : index
    %c0_168 = arith.constant 0 : index
    %560 = vector.load %arg6[%c0_165, %c4_166, %c0_167, %c0_168] : memref<1x16x24x128xf32, #tpu.memory_space<vmem>>, vector<1x1x24x128xf32>
    %561 = vector.shape_cast %560 : vector<1x1x24x128xf32> to vector<24x128xf32>
    %562 = vector.shape_cast %559 : vector<24x128xf32> to vector<1x1x24x128xf32>
    tpu.vector_store %arg6[%c0_165, %c4_166, %c0_167, %c0_168], %562 {strides = array<i32>} : memref<1x16x24x128xf32, #tpu.memory_space<vmem>>, vector<1x1x24x128xf32>,
    %c5_i32_169 = arith.constant 5 : i32
    %563 = arith.addi %6, %c5_i32_169 : i32
    %564 = arith.index_cast %563 : i32 to index
    %565 = memref.load %arg5[%564] : memref<16xf32, #tpu.memory_space<smem>>
    %566 = vector.broadcast %565 : f32 to vector<24x128xf32>
    %567 = arith.addf %498, %566 : vector<24x128xf32>
    %cst_170 = arith.constant 0.000000e+00 : f32
    %568 = vector.broadcast %cst_170 : f32 to vector<24x128xf32>
    %569 = arith.maximumf %567, %568 : vector<24x128xf32>
    %c0_171 = arith.constant 0 : index
    %c5_172 = arith.constant 5 : index
    %c0_173 = arith.constant 0 : index
    %c0_174 = arith.constant 0 : index
    %570 = vector.load %arg6[%c0_171, %c5_172, %c0_173, %c0_174] : memref<1x16x24x128xf32, #tpu.memory_space<vmem>>, vector<1x1x24x128xf32>
    %571 = vector.shape_cast %570 : vector<1x1x24x128xf32> to vector<24x128xf32>
    %572 = vector.shape_cast %569 : vector<24x128xf32> to vector<1x1x24x128xf32>
    tpu.vector_store %arg6[%c0_171, %c5_172, %c0_173, %c0_174], %572 {strides = array<i32>} : memref<1x16x24x128xf32, #tpu.memory_space<vmem>>, vector<1x1x24x128xf32>,
    %c6_i32_175 = arith.constant 6 : i32
    %573 = arith.addi %6, %c6_i32_175 : i32
    %574 = arith.index_cast %573 : i32 to index
    %575 = memref.load %arg5[%574] : memref<16xf32, #tpu.memory_space<smem>>
    %576 = vector.broadcast %575 : f32 to vector<24x128xf32>
    %577 = arith.addf %505, %576 : vector<24x128xf32>
    %cst_176 = arith.constant 0.000000e+00 : f32
    %578 = vector.broadcast %cst_176 : f32 to vector<24x128xf32>
    %579 = arith.maximumf %577, %578 : vector<24x128xf32>
    %c0_177 = arith.constant 0 : index
    %c6_178 = arith.constant 6 : index
    %c0_179 = arith.constant 0 : index
    %c0_180 = arith.constant 0 : index
    %580 = vector.load %arg6[%c0_177, %c6_178, %c0_179, %c0_180] : memref<1x16x24x128xf32, #tpu.memory_space<vmem>>, vector<1x1x24x128xf32>
    %581 = vector.shape_cast %580 : vector<1x1x24x128xf32> to vector<24x128xf32>
    %582 = vector.shape_cast %579 : vector<24x128xf32> to vector<1x1x24x128xf32>
    tpu.vector_store %arg6[%c0_177, %c6_178, %c0_179, %c0_180], %582 {strides = array<i32>} : memref<1x16x24x128xf32, #tpu.memory_space<vmem>>, vector<1x1x24x128xf32>,
    %c7_i32_181 = arith.constant 7 : i32
    %583 = arith.addi %6, %c7_i32_181 : i32
    %584 = arith.index_cast %583 : i32 to index
    %585 = memref.load %arg5[%584] : memref<16xf32, #tpu.memory_space<smem>>
    %586 = vector.broadcast %585 : f32 to vector<24x128xf32>
    %587 = arith.addf %512, %586 : vector<24x128xf32>
    %cst_182 = arith.constant 0.000000e+00 : f32
    %588 = vector.broadcast %cst_182 : f32 to vector<24x128xf32>
    %589 = arith.maximumf %587, %588 : vector<24x128xf32>
    %c0_183 = arith.constant 0 : index
    %c7_184 = arith.constant 7 : index
    %c0_185 = arith.constant 0 : index
    %c0_186 = arith.constant 0 : index
    %590 = vector.load %arg6[%c0_183, %c7_184, %c0_185, %c0_186] : memref<1x16x24x128xf32, #tpu.memory_space<vmem>>, vector<1x1x24x128xf32>
    %591 = vector.shape_cast %590 : vector<1x1x24x128xf32> to vector<24x128xf32>
    %592 = vector.shape_cast %589 : vector<24x128xf32> to vector<1x1x24x128xf32>
    tpu.vector_store %arg6[%c0_183, %c7_184, %c0_185, %c0_186], %592 {strides = array<i32>} : memref<1x16x24x128xf32, #tpu.memory_space<vmem>>, vector<1x1x24x128xf32>,
    %c0_187 = arith.constant 0 : index
    %c0_188 = arith.constant 0 : index
    %c0_189 = arith.constant 0 : index
    %593 = vector.load %arg7[%c0_187, %c0_188, %c0_189] : memref<9x24x128xf32, #tpu.memory_space<vmem>>, vector<1x24x128xf32>
    %594 = vector.shape_cast %593 : vector<1x24x128xf32> to vector<24x128xf32>
    %c72_i32 = arith.constant 72 : i32
    %595 = arith.addi %5, %c72_i32 : i32
    %596 = arith.index_cast %595 : i32 to index
    %597 = memref.load %arg4[%596] : memref<144xf32, #tpu.memory_space<smem>>
    %598 = vector.broadcast %597 : f32 to vector<24x128xf32>
    %599 = arith.mulf %598, %594 : vector<24x128xf32>
    %c81_i32 = arith.constant 81 : i32
    %600 = arith.addi %5, %c81_i32 : i32
    %601 = arith.index_cast %600 : i32 to index
    %602 = memref.load %arg4[%601] : memref<144xf32, #tpu.memory_space<smem>>
    %603 = vector.broadcast %602 : f32 to vector<24x128xf32>
    %604 = arith.mulf %603, %594 : vector<24x128xf32>
    %c90_i32 = arith.constant 90 : i32
    %605 = arith.addi %5, %c90_i32 : i32
    %606 = arith.index_cast %605 : i32 to index
    %607 = memref.load %arg4[%606] : memref<144xf32, #tpu.memory_space<smem>>
    %608 = vector.broadcast %607 : f32 to vector<24x128xf32>
    %609 = arith.mulf %608, %594 : vector<24x128xf32>
    %c99_i32 = arith.constant 99 : i32
    %610 = arith.addi %5, %c99_i32 : i32
    %611 = arith.index_cast %610 : i32 to index
    %612 = memref.load %arg4[%611] : memref<144xf32, #tpu.memory_space<smem>>
    %613 = vector.broadcast %612 : f32 to vector<24x128xf32>
    %614 = arith.mulf %613, %594 : vector<24x128xf32>
    %c108_i32 = arith.constant 108 : i32
    %615 = arith.addi %5, %c108_i32 : i32
    %616 = arith.index_cast %615 : i32 to index
    %617 = memref.load %arg4[%616] : memref<144xf32, #tpu.memory_space<smem>>
    %618 = vector.broadcast %617 : f32 to vector<24x128xf32>
    %619 = arith.mulf %618, %594 : vector<24x128xf32>
    %c117_i32 = arith.constant 117 : i32
    %620 = arith.addi %5, %c117_i32 : i32
    %621 = arith.index_cast %620 : i32 to index
    %622 = memref.load %arg4[%621] : memref<144xf32, #tpu.memory_space<smem>>
    %623 = vector.broadcast %622 : f32 to vector<24x128xf32>
    %624 = arith.mulf %623, %594 : vector<24x128xf32>
    %c126_i32 = arith.constant 126 : i32
    %625 = arith.addi %5, %c126_i32 : i32
    %626 = arith.index_cast %625 : i32 to index
    %627 = memref.load %arg4[%626] : memref<144xf32, #tpu.memory_space<smem>>
    %628 = vector.broadcast %627 : f32 to vector<24x128xf32>
    %629 = arith.mulf %628, %594 : vector<24x128xf32>
    %c135_i32 = arith.constant 135 : i32
    %630 = arith.addi %5, %c135_i32 : i32
    %631 = arith.index_cast %630 : i32 to index
    %632 = memref.load %arg4[%631] : memref<144xf32, #tpu.memory_space<smem>>
    %633 = vector.broadcast %632 : f32 to vector<24x128xf32>
    %634 = arith.mulf %633, %594 : vector<24x128xf32>
    %c1_190 = arith.constant 1 : index
    %c0_191 = arith.constant 0 : index
    %c0_192 = arith.constant 0 : index
    %635 = vector.load %arg7[%c1_190, %c0_191, %c0_192] : memref<9x24x128xf32, #tpu.memory_space<vmem>>, vector<1x24x128xf32>
    %636 = vector.shape_cast %635 : vector<1x24x128xf32> to vector<24x128xf32>
    %c72_i32_193 = arith.constant 72 : i32
    %637 = arith.addi %5, %c72_i32_193 : i32
    %c1_i32_194 = arith.constant 1 : i32
    %638 = arith.addi %637, %c1_i32_194 : i32
    %639 = arith.index_cast %638 : i32 to index
    %640 = memref.load %arg4[%639] : memref<144xf32, #tpu.memory_space<smem>>
    %641 = vector.broadcast %640 : f32 to vector<24x128xf32>
    %642 = arith.mulf %641, %636 : vector<24x128xf32>
    %643 = arith.addf %599, %642 : vector<24x128xf32>
    %c81_i32_195 = arith.constant 81 : i32
    %644 = arith.addi %5, %c81_i32_195 : i32
    %c1_i32_196 = arith.constant 1 : i32
    %645 = arith.addi %644, %c1_i32_196 : i32
    %646 = arith.index_cast %645 : i32 to index
    %647 = memref.load %arg4[%646] : memref<144xf32, #tpu.memory_space<smem>>
    %648 = vector.broadcast %647 : f32 to vector<24x128xf32>
    %649 = arith.mulf %648, %636 : vector<24x128xf32>
    %650 = arith.addf %604, %649 : vector<24x128xf32>
    %c90_i32_197 = arith.constant 90 : i32
    %651 = arith.addi %5, %c90_i32_197 : i32
    %c1_i32_198 = arith.constant 1 : i32
    %652 = arith.addi %651, %c1_i32_198 : i32
    %653 = arith.index_cast %652 : i32 to index
    %654 = memref.load %arg4[%653] : memref<144xf32, #tpu.memory_space<smem>>
    %655 = vector.broadcast %654 : f32 to vector<24x128xf32>
    %656 = arith.mulf %655, %636 : vector<24x128xf32>
    %657 = arith.addf %609, %656 : vector<24x128xf32>
    %c99_i32_199 = arith.constant 99 : i32
    %658 = arith.addi %5, %c99_i32_199 : i32
    %c1_i32_200 = arith.constant 1 : i32
    %659 = arith.addi %658, %c1_i32_200 : i32
    %660 = arith.index_cast %659 : i32 to index
    %661 = memref.load %arg4[%660] : memref<144xf32, #tpu.memory_space<smem>>
    %662 = vector.broadcast %661 : f32 to vector<24x128xf32>
    %663 = arith.mulf %662, %636 : vector<24x128xf32>
    %664 = arith.addf %614, %663 : vector<24x128xf32>
    %c108_i32_201 = arith.constant 108 : i32
    %665 = arith.addi %5, %c108_i32_201 : i32
    %c1_i32_202 = arith.constant 1 : i32
    %666 = arith.addi %665, %c1_i32_202 : i32
    %667 = arith.index_cast %666 : i32 to index
    %668 = memref.load %arg4[%667] : memref<144xf32, #tpu.memory_space<smem>>
    %669 = vector.broadcast %668 : f32 to vector<24x128xf32>
    %670 = arith.mulf %669, %636 : vector<24x128xf32>
    %671 = arith.addf %619, %670 : vector<24x128xf32>
    %c117_i32_203 = arith.constant 117 : i32
    %672 = arith.addi %5, %c117_i32_203 : i32
    %c1_i32_204 = arith.constant 1 : i32
    %673 = arith.addi %672, %c1_i32_204 : i32
    %674 = arith.index_cast %673 : i32 to index
    %675 = memref.load %arg4[%674] : memref<144xf32, #tpu.memory_space<smem>>
    %676 = vector.broadcast %675 : f32 to vector<24x128xf32>
    %677 = arith.mulf %676, %636 : vector<24x128xf32>
    %678 = arith.addf %624, %677 : vector<24x128xf32>
    %c126_i32_205 = arith.constant 126 : i32
    %679 = arith.addi %5, %c126_i32_205 : i32
    %c1_i32_206 = arith.constant 1 : i32
    %680 = arith.addi %679, %c1_i32_206 : i32
    %681 = arith.index_cast %680 : i32 to index
    %682 = memref.load %arg4[%681] : memref<144xf32, #tpu.memory_space<smem>>
    %683 = vector.broadcast %682 : f32 to vector<24x128xf32>
    %684 = arith.mulf %683, %636 : vector<24x128xf32>
    %685 = arith.addf %629, %684 : vector<24x128xf32>
    %c135_i32_207 = arith.constant 135 : i32
    %686 = arith.addi %5, %c135_i32_207 : i32
    %c1_i32_208 = arith.constant 1 : i32
    %687 = arith.addi %686, %c1_i32_208 : i32
    %688 = arith.index_cast %687 : i32 to index
    %689 = memref.load %arg4[%688] : memref<144xf32, #tpu.memory_space<smem>>
    %690 = vector.broadcast %689 : f32 to vector<24x128xf32>
    %691 = arith.mulf %690, %636 : vector<24x128xf32>
    %692 = arith.addf %634, %691 : vector<24x128xf32>
    %c2_209 = arith.constant 2 : index
    %c0_210 = arith.constant 0 : index
    %c0_211 = arith.constant 0 : index
    %693 = vector.load %arg7[%c2_209, %c0_210, %c0_211] : memref<9x24x128xf32, #tpu.memory_space<vmem>>, vector<1x24x128xf32>
    %694 = vector.shape_cast %693 : vector<1x24x128xf32> to vector<24x128xf32>
    %c72_i32_212 = arith.constant 72 : i32
    %695 = arith.addi %5, %c72_i32_212 : i32
    %c2_i32_213 = arith.constant 2 : i32
    %696 = arith.addi %695, %c2_i32_213 : i32
    %697 = arith.index_cast %696 : i32 to index
    %698 = memref.load %arg4[%697] : memref<144xf32, #tpu.memory_space<smem>>
    %699 = vector.broadcast %698 : f32 to vector<24x128xf32>
    %700 = arith.mulf %699, %694 : vector<24x128xf32>
    %701 = arith.addf %643, %700 : vector<24x128xf32>
    %c81_i32_214 = arith.constant 81 : i32
    %702 = arith.addi %5, %c81_i32_214 : i32
    %c2_i32_215 = arith.constant 2 : i32
    %703 = arith.addi %702, %c2_i32_215 : i32
    %704 = arith.index_cast %703 : i32 to index
    %705 = memref.load %arg4[%704] : memref<144xf32, #tpu.memory_space<smem>>
    %706 = vector.broadcast %705 : f32 to vector<24x128xf32>
    %707 = arith.mulf %706, %694 : vector<24x128xf32>
    %708 = arith.addf %650, %707 : vector<24x128xf32>
    %c90_i32_216 = arith.constant 90 : i32
    %709 = arith.addi %5, %c90_i32_216 : i32
    %c2_i32_217 = arith.constant 2 : i32
    %710 = arith.addi %709, %c2_i32_217 : i32
    %711 = arith.index_cast %710 : i32 to index
    %712 = memref.load %arg4[%711] : memref<144xf32, #tpu.memory_space<smem>>
    %713 = vector.broadcast %712 : f32 to vector<24x128xf32>
    %714 = arith.mulf %713, %694 : vector<24x128xf32>
    %715 = arith.addf %657, %714 : vector<24x128xf32>
    %c99_i32_218 = arith.constant 99 : i32
    %716 = arith.addi %5, %c99_i32_218 : i32
    %c2_i32_219 = arith.constant 2 : i32
    %717 = arith.addi %716, %c2_i32_219 : i32
    %718 = arith.index_cast %717 : i32 to index
    %719 = memref.load %arg4[%718] : memref<144xf32, #tpu.memory_space<smem>>
    %720 = vector.broadcast %719 : f32 to vector<24x128xf32>
    %721 = arith.mulf %720, %694 : vector<24x128xf32>
    %722 = arith.addf %664, %721 : vector<24x128xf32>
    %c108_i32_220 = arith.constant 108 : i32
    %723 = arith.addi %5, %c108_i32_220 : i32
    %c2_i32_221 = arith.constant 2 : i32
    %724 = arith.addi %723, %c2_i32_221 : i32
    %725 = arith.index_cast %724 : i32 to index
    %726 = memref.load %arg4[%725] : memref<144xf32, #tpu.memory_space<smem>>
    %727 = vector.broadcast %726 : f32 to vector<24x128xf32>
    %728 = arith.mulf %727, %694 : vector<24x128xf32>
    %729 = arith.addf %671, %728 : vector<24x128xf32>
    %c117_i32_222 = arith.constant 117 : i32
    %730 = arith.addi %5, %c117_i32_222 : i32
    %c2_i32_223 = arith.constant 2 : i32
    %731 = arith.addi %730, %c2_i32_223 : i32
    %732 = arith.index_cast %731 : i32 to index
    %733 = memref.load %arg4[%732] : memref<144xf32, #tpu.memory_space<smem>>
    %734 = vector.broadcast %733 : f32 to vector<24x128xf32>
    %735 = arith.mulf %734, %694 : vector<24x128xf32>
    %736 = arith.addf %678, %735 : vector<24x128xf32>
    %c126_i32_224 = arith.constant 126 : i32
    %737 = arith.addi %5, %c126_i32_224 : i32
    %c2_i32_225 = arith.constant 2 : i32
    %738 = arith.addi %737, %c2_i32_225 : i32
    %739 = arith.index_cast %738 : i32 to index
    %740 = memref.load %arg4[%739] : memref<144xf32, #tpu.memory_space<smem>>
    %741 = vector.broadcast %740 : f32 to vector<24x128xf32>
    %742 = arith.mulf %741, %694 : vector<24x128xf32>
    %743 = arith.addf %685, %742 : vector<24x128xf32>
    %c135_i32_226 = arith.constant 135 : i32
    %744 = arith.addi %5, %c135_i32_226 : i32
    %c2_i32_227 = arith.constant 2 : i32
    %745 = arith.addi %744, %c2_i32_227 : i32
    %746 = arith.index_cast %745 : i32 to index
    %747 = memref.load %arg4[%746] : memref<144xf32, #tpu.memory_space<smem>>
    %748 = vector.broadcast %747 : f32 to vector<24x128xf32>
    %749 = arith.mulf %748, %694 : vector<24x128xf32>
    %750 = arith.addf %692, %749 : vector<24x128xf32>
    %c3_228 = arith.constant 3 : index
    %c0_229 = arith.constant 0 : index
    %c0_230 = arith.constant 0 : index
    %751 = vector.load %arg7[%c3_228, %c0_229, %c0_230] : memref<9x24x128xf32, #tpu.memory_space<vmem>>, vector<1x24x128xf32>
    %752 = vector.shape_cast %751 : vector<1x24x128xf32> to vector<24x128xf32>
    %c72_i32_231 = arith.constant 72 : i32
    %753 = arith.addi %5, %c72_i32_231 : i32
    %c3_i32_232 = arith.constant 3 : i32
    %754 = arith.addi %753, %c3_i32_232 : i32
    %755 = arith.index_cast %754 : i32 to index
    %756 = memref.load %arg4[%755] : memref<144xf32, #tpu.memory_space<smem>>
    %757 = vector.broadcast %756 : f32 to vector<24x128xf32>
    %758 = arith.mulf %757, %752 : vector<24x128xf32>
    %759 = arith.addf %701, %758 : vector<24x128xf32>
    %c81_i32_233 = arith.constant 81 : i32
    %760 = arith.addi %5, %c81_i32_233 : i32
    %c3_i32_234 = arith.constant 3 : i32
    %761 = arith.addi %760, %c3_i32_234 : i32
    %762 = arith.index_cast %761 : i32 to index
    %763 = memref.load %arg4[%762] : memref<144xf32, #tpu.memory_space<smem>>
    %764 = vector.broadcast %763 : f32 to vector<24x128xf32>
    %765 = arith.mulf %764, %752 : vector<24x128xf32>
    %766 = arith.addf %708, %765 : vector<24x128xf32>
    %c90_i32_235 = arith.constant 90 : i32
    %767 = arith.addi %5, %c90_i32_235 : i32
    %c3_i32_236 = arith.constant 3 : i32
    %768 = arith.addi %767, %c3_i32_236 : i32
    %769 = arith.index_cast %768 : i32 to index
    %770 = memref.load %arg4[%769] : memref<144xf32, #tpu.memory_space<smem>>
    %771 = vector.broadcast %770 : f32 to vector<24x128xf32>
    %772 = arith.mulf %771, %752 : vector<24x128xf32>
    %773 = arith.addf %715, %772 : vector<24x128xf32>
    %c99_i32_237 = arith.constant 99 : i32
    %774 = arith.addi %5, %c99_i32_237 : i32
    %c3_i32_238 = arith.constant 3 : i32
    %775 = arith.addi %774, %c3_i32_238 : i32
    %776 = arith.index_cast %775 : i32 to index
    %777 = memref.load %arg4[%776] : memref<144xf32, #tpu.memory_space<smem>>
    %778 = vector.broadcast %777 : f32 to vector<24x128xf32>
    %779 = arith.mulf %778, %752 : vector<24x128xf32>
    %780 = arith.addf %722, %779 : vector<24x128xf32>
    %c108_i32_239 = arith.constant 108 : i32
    %781 = arith.addi %5, %c108_i32_239 : i32
    %c3_i32_240 = arith.constant 3 : i32
    %782 = arith.addi %781, %c3_i32_240 : i32
    %783 = arith.index_cast %782 : i32 to index
    %784 = memref.load %arg4[%783] : memref<144xf32, #tpu.memory_space<smem>>
    %785 = vector.broadcast %784 : f32 to vector<24x128xf32>
    %786 = arith.mulf %785, %752 : vector<24x128xf32>
    %787 = arith.addf %729, %786 : vector<24x128xf32>
    %c117_i32_241 = arith.constant 117 : i32
    %788 = arith.addi %5, %c117_i32_241 : i32
    %c3_i32_242 = arith.constant 3 : i32
    %789 = arith.addi %788, %c3_i32_242 : i32
    %790 = arith.index_cast %789 : i32 to index
    %791 = memref.load %arg4[%790] : memref<144xf32, #tpu.memory_space<smem>>
    %792 = vector.broadcast %791 : f32 to vector<24x128xf32>
    %793 = arith.mulf %792, %752 : vector<24x128xf32>
    %794 = arith.addf %736, %793 : vector<24x128xf32>
    %c126_i32_243 = arith.constant 126 : i32
    %795 = arith.addi %5, %c126_i32_243 : i32
    %c3_i32_244 = arith.constant 3 : i32
    %796 = arith.addi %795, %c3_i32_244 : i32
    %797 = arith.index_cast %796 : i32 to index
    %798 = memref.load %arg4[%797] : memref<144xf32, #tpu.memory_space<smem>>
    %799 = vector.broadcast %798 : f32 to vector<24x128xf32>
    %800 = arith.mulf %799, %752 : vector<24x128xf32>
    %801 = arith.addf %743, %800 : vector<24x128xf32>
    %c135_i32_245 = arith.constant 135 : i32
    %802 = arith.addi %5, %c135_i32_245 : i32
    %c3_i32_246 = arith.constant 3 : i32
    %803 = arith.addi %802, %c3_i32_246 : i32
    %804 = arith.index_cast %803 : i32 to index
    %805 = memref.load %arg4[%804] : memref<144xf32, #tpu.memory_space<smem>>
    %806 = vector.broadcast %805 : f32 to vector<24x128xf32>
    %807 = arith.mulf %806, %752 : vector<24x128xf32>
    %808 = arith.addf %750, %807 : vector<24x128xf32>
    %c4_247 = arith.constant 4 : index
    %c0_248 = arith.constant 0 : index
    %c0_249 = arith.constant 0 : index
    %809 = vector.load %arg7[%c4_247, %c0_248, %c0_249] : memref<9x24x128xf32, #tpu.memory_space<vmem>>, vector<1x24x128xf32>
    %810 = vector.shape_cast %809 : vector<1x24x128xf32> to vector<24x128xf32>
    %c72_i32_250 = arith.constant 72 : i32
    %811 = arith.addi %5, %c72_i32_250 : i32
    %c4_i32_251 = arith.constant 4 : i32
    %812 = arith.addi %811, %c4_i32_251 : i32
    %813 = arith.index_cast %812 : i32 to index
    %814 = memref.load %arg4[%813] : memref<144xf32, #tpu.memory_space<smem>>
    %815 = vector.broadcast %814 : f32 to vector<24x128xf32>
    %816 = arith.mulf %815, %810 : vector<24x128xf32>
    %817 = arith.addf %759, %816 : vector<24x128xf32>
    %c81_i32_252 = arith.constant 81 : i32
    %818 = arith.addi %5, %c81_i32_252 : i32
    %c4_i32_253 = arith.constant 4 : i32
    %819 = arith.addi %818, %c4_i32_253 : i32
    %820 = arith.index_cast %819 : i32 to index
    %821 = memref.load %arg4[%820] : memref<144xf32, #tpu.memory_space<smem>>
    %822 = vector.broadcast %821 : f32 to vector<24x128xf32>
    %823 = arith.mulf %822, %810 : vector<24x128xf32>
    %824 = arith.addf %766, %823 : vector<24x128xf32>
    %c90_i32_254 = arith.constant 90 : i32
    %825 = arith.addi %5, %c90_i32_254 : i32
    %c4_i32_255 = arith.constant 4 : i32
    %826 = arith.addi %825, %c4_i32_255 : i32
    %827 = arith.index_cast %826 : i32 to index
    %828 = memref.load %arg4[%827] : memref<144xf32, #tpu.memory_space<smem>>
    %829 = vector.broadcast %828 : f32 to vector<24x128xf32>
    %830 = arith.mulf %829, %810 : vector<24x128xf32>
    %831 = arith.addf %773, %830 : vector<24x128xf32>
    %c99_i32_256 = arith.constant 99 : i32
    %832 = arith.addi %5, %c99_i32_256 : i32
    %c4_i32_257 = arith.constant 4 : i32
    %833 = arith.addi %832, %c4_i32_257 : i32
    %834 = arith.index_cast %833 : i32 to index
    %835 = memref.load %arg4[%834] : memref<144xf32, #tpu.memory_space<smem>>
    %836 = vector.broadcast %835 : f32 to vector<24x128xf32>
    %837 = arith.mulf %836, %810 : vector<24x128xf32>
    %838 = arith.addf %780, %837 : vector<24x128xf32>
    %c108_i32_258 = arith.constant 108 : i32
    %839 = arith.addi %5, %c108_i32_258 : i32
    %c4_i32_259 = arith.constant 4 : i32
    %840 = arith.addi %839, %c4_i32_259 : i32
    %841 = arith.index_cast %840 : i32 to index
    %842 = memref.load %arg4[%841] : memref<144xf32, #tpu.memory_space<smem>>
    %843 = vector.broadcast %842 : f32 to vector<24x128xf32>
    %844 = arith.mulf %843, %810 : vector<24x128xf32>
    %845 = arith.addf %787, %844 : vector<24x128xf32>
    %c117_i32_260 = arith.constant 117 : i32
    %846 = arith.addi %5, %c117_i32_260 : i32
    %c4_i32_261 = arith.constant 4 : i32
    %847 = arith.addi %846, %c4_i32_261 : i32
    %848 = arith.index_cast %847 : i32 to index
    %849 = memref.load %arg4[%848] : memref<144xf32, #tpu.memory_space<smem>>
    %850 = vector.broadcast %849 : f32 to vector<24x128xf32>
    %851 = arith.mulf %850, %810 : vector<24x128xf32>
    %852 = arith.addf %794, %851 : vector<24x128xf32>
    %c126_i32_262 = arith.constant 126 : i32
    %853 = arith.addi %5, %c126_i32_262 : i32
    %c4_i32_263 = arith.constant 4 : i32
    %854 = arith.addi %853, %c4_i32_263 : i32
    %855 = arith.index_cast %854 : i32 to index
    %856 = memref.load %arg4[%855] : memref<144xf32, #tpu.memory_space<smem>>
    %857 = vector.broadcast %856 : f32 to vector<24x128xf32>
    %858 = arith.mulf %857, %810 : vector<24x128xf32>
    %859 = arith.addf %801, %858 : vector<24x128xf32>
    %c135_i32_264 = arith.constant 135 : i32
    %860 = arith.addi %5, %c135_i32_264 : i32
    %c4_i32_265 = arith.constant 4 : i32
    %861 = arith.addi %860, %c4_i32_265 : i32
    %862 = arith.index_cast %861 : i32 to index
    %863 = memref.load %arg4[%862] : memref<144xf32, #tpu.memory_space<smem>>
    %864 = vector.broadcast %863 : f32 to vector<24x128xf32>
    %865 = arith.mulf %864, %810 : vector<24x128xf32>
    %866 = arith.addf %808, %865 : vector<24x128xf32>
    %c5_266 = arith.constant 5 : index
    %c0_267 = arith.constant 0 : index
    %c0_268 = arith.constant 0 : index
    %867 = vector.load %arg7[%c5_266, %c0_267, %c0_268] : memref<9x24x128xf32, #tpu.memory_space<vmem>>, vector<1x24x128xf32>
    %868 = vector.shape_cast %867 : vector<1x24x128xf32> to vector<24x128xf32>
    %c72_i32_269 = arith.constant 72 : i32
    %869 = arith.addi %5, %c72_i32_269 : i32
    %c5_i32_270 = arith.constant 5 : i32
    %870 = arith.addi %869, %c5_i32_270 : i32
    %871 = arith.index_cast %870 : i32 to index
    %872 = memref.load %arg4[%871] : memref<144xf32, #tpu.memory_space<smem>>
    %873 = vector.broadcast %872 : f32 to vector<24x128xf32>
    %874 = arith.mulf %873, %868 : vector<24x128xf32>
    %875 = arith.addf %817, %874 : vector<24x128xf32>
    %c81_i32_271 = arith.constant 81 : i32
    %876 = arith.addi %5, %c81_i32_271 : i32
    %c5_i32_272 = arith.constant 5 : i32
    %877 = arith.addi %876, %c5_i32_272 : i32
    %878 = arith.index_cast %877 : i32 to index
    %879 = memref.load %arg4[%878] : memref<144xf32, #tpu.memory_space<smem>>
    %880 = vector.broadcast %879 : f32 to vector<24x128xf32>
    %881 = arith.mulf %880, %868 : vector<24x128xf32>
    %882 = arith.addf %824, %881 : vector<24x128xf32>
    %c90_i32_273 = arith.constant 90 : i32
    %883 = arith.addi %5, %c90_i32_273 : i32
    %c5_i32_274 = arith.constant 5 : i32
    %884 = arith.addi %883, %c5_i32_274 : i32
    %885 = arith.index_cast %884 : i32 to index
    %886 = memref.load %arg4[%885] : memref<144xf32, #tpu.memory_space<smem>>
    %887 = vector.broadcast %886 : f32 to vector<24x128xf32>
    %888 = arith.mulf %887, %868 : vector<24x128xf32>
    %889 = arith.addf %831, %888 : vector<24x128xf32>
    %c99_i32_275 = arith.constant 99 : i32
    %890 = arith.addi %5, %c99_i32_275 : i32
    %c5_i32_276 = arith.constant 5 : i32
    %891 = arith.addi %890, %c5_i32_276 : i32
    %892 = arith.index_cast %891 : i32 to index
    %893 = memref.load %arg4[%892] : memref<144xf32, #tpu.memory_space<smem>>
    %894 = vector.broadcast %893 : f32 to vector<24x128xf32>
    %895 = arith.mulf %894, %868 : vector<24x128xf32>
    %896 = arith.addf %838, %895 : vector<24x128xf32>
    %c108_i32_277 = arith.constant 108 : i32
    %897 = arith.addi %5, %c108_i32_277 : i32
    %c5_i32_278 = arith.constant 5 : i32
    %898 = arith.addi %897, %c5_i32_278 : i32
    %899 = arith.index_cast %898 : i32 to index
    %900 = memref.load %arg4[%899] : memref<144xf32, #tpu.memory_space<smem>>
    %901 = vector.broadcast %900 : f32 to vector<24x128xf32>
    %902 = arith.mulf %901, %868 : vector<24x128xf32>
    %903 = arith.addf %845, %902 : vector<24x128xf32>
    %c117_i32_279 = arith.constant 117 : i32
    %904 = arith.addi %5, %c117_i32_279 : i32
    %c5_i32_280 = arith.constant 5 : i32
    %905 = arith.addi %904, %c5_i32_280 : i32
    %906 = arith.index_cast %905 : i32 to index
    %907 = memref.load %arg4[%906] : memref<144xf32, #tpu.memory_space<smem>>
    %908 = vector.broadcast %907 : f32 to vector<24x128xf32>
    %909 = arith.mulf %908, %868 : vector<24x128xf32>
    %910 = arith.addf %852, %909 : vector<24x128xf32>
    %c126_i32_281 = arith.constant 126 : i32
    %911 = arith.addi %5, %c126_i32_281 : i32
    %c5_i32_282 = arith.constant 5 : i32
    %912 = arith.addi %911, %c5_i32_282 : i32
    %913 = arith.index_cast %912 : i32 to index
    %914 = memref.load %arg4[%913] : memref<144xf32, #tpu.memory_space<smem>>
    %915 = vector.broadcast %914 : f32 to vector<24x128xf32>
    %916 = arith.mulf %915, %868 : vector<24x128xf32>
    %917 = arith.addf %859, %916 : vector<24x128xf32>
    %c135_i32_283 = arith.constant 135 : i32
    %918 = arith.addi %5, %c135_i32_283 : i32
    %c5_i32_284 = arith.constant 5 : i32
    %919 = arith.addi %918, %c5_i32_284 : i32
    %920 = arith.index_cast %919 : i32 to index
    %921 = memref.load %arg4[%920] : memref<144xf32, #tpu.memory_space<smem>>
    %922 = vector.broadcast %921 : f32 to vector<24x128xf32>
    %923 = arith.mulf %922, %868 : vector<24x128xf32>
    %924 = arith.addf %866, %923 : vector<24x128xf32>
    %c6_285 = arith.constant 6 : index
    %c0_286 = arith.constant 0 : index
    %c0_287 = arith.constant 0 : index
    %925 = vector.load %arg7[%c6_285, %c0_286, %c0_287] : memref<9x24x128xf32, #tpu.memory_space<vmem>>, vector<1x24x128xf32>
    %926 = vector.shape_cast %925 : vector<1x24x128xf32> to vector<24x128xf32>
    %c72_i32_288 = arith.constant 72 : i32
    %927 = arith.addi %5, %c72_i32_288 : i32
    %c6_i32_289 = arith.constant 6 : i32
    %928 = arith.addi %927, %c6_i32_289 : i32
    %929 = arith.index_cast %928 : i32 to index
    %930 = memref.load %arg4[%929] : memref<144xf32, #tpu.memory_space<smem>>
    %931 = vector.broadcast %930 : f32 to vector<24x128xf32>
    %932 = arith.mulf %931, %926 : vector<24x128xf32>
    %933 = arith.addf %875, %932 : vector<24x128xf32>
    %c81_i32_290 = arith.constant 81 : i32
    %934 = arith.addi %5, %c81_i32_290 : i32
    %c6_i32_291 = arith.constant 6 : i32
    %935 = arith.addi %934, %c6_i32_291 : i32
    %936 = arith.index_cast %935 : i32 to index
    %937 = memref.load %arg4[%936] : memref<144xf32, #tpu.memory_space<smem>>
    %938 = vector.broadcast %937 : f32 to vector<24x128xf32>
    %939 = arith.mulf %938, %926 : vector<24x128xf32>
    %940 = arith.addf %882, %939 : vector<24x128xf32>
    %c90_i32_292 = arith.constant 90 : i32
    %941 = arith.addi %5, %c90_i32_292 : i32
    %c6_i32_293 = arith.constant 6 : i32
    %942 = arith.addi %941, %c6_i32_293 : i32
    %943 = arith.index_cast %942 : i32 to index
    %944 = memref.load %arg4[%943] : memref<144xf32, #tpu.memory_space<smem>>
    %945 = vector.broadcast %944 : f32 to vector<24x128xf32>
    %946 = arith.mulf %945, %926 : vector<24x128xf32>
    %947 = arith.addf %889, %946 : vector<24x128xf32>
    %c99_i32_294 = arith.constant 99 : i32
    %948 = arith.addi %5, %c99_i32_294 : i32
    %c6_i32_295 = arith.constant 6 : i32
    %949 = arith.addi %948, %c6_i32_295 : i32
    %950 = arith.index_cast %949 : i32 to index
    %951 = memref.load %arg4[%950] : memref<144xf32, #tpu.memory_space<smem>>
    %952 = vector.broadcast %951 : f32 to vector<24x128xf32>
    %953 = arith.mulf %952, %926 : vector<24x128xf32>
    %954 = arith.addf %896, %953 : vector<24x128xf32>
    %c108_i32_296 = arith.constant 108 : i32
    %955 = arith.addi %5, %c108_i32_296 : i32
    %c6_i32_297 = arith.constant 6 : i32
    %956 = arith.addi %955, %c6_i32_297 : i32
    %957 = arith.index_cast %956 : i32 to index
    %958 = memref.load %arg4[%957] : memref<144xf32, #tpu.memory_space<smem>>
    %959 = vector.broadcast %958 : f32 to vector<24x128xf32>
    %960 = arith.mulf %959, %926 : vector<24x128xf32>
    %961 = arith.addf %903, %960 : vector<24x128xf32>
    %c117_i32_298 = arith.constant 117 : i32
    %962 = arith.addi %5, %c117_i32_298 : i32
    %c6_i32_299 = arith.constant 6 : i32
    %963 = arith.addi %962, %c6_i32_299 : i32
    %964 = arith.index_cast %963 : i32 to index
    %965 = memref.load %arg4[%964] : memref<144xf32, #tpu.memory_space<smem>>
    %966 = vector.broadcast %965 : f32 to vector<24x128xf32>
    %967 = arith.mulf %966, %926 : vector<24x128xf32>
    %968 = arith.addf %910, %967 : vector<24x128xf32>
    %c126_i32_300 = arith.constant 126 : i32
    %969 = arith.addi %5, %c126_i32_300 : i32
    %c6_i32_301 = arith.constant 6 : i32
    %970 = arith.addi %969, %c6_i32_301 : i32
    %971 = arith.index_cast %970 : i32 to index
    %972 = memref.load %arg4[%971] : memref<144xf32, #tpu.memory_space<smem>>
    %973 = vector.broadcast %972 : f32 to vector<24x128xf32>
    %974 = arith.mulf %973, %926 : vector<24x128xf32>
    %975 = arith.addf %917, %974 : vector<24x128xf32>
    %c135_i32_302 = arith.constant 135 : i32
    %976 = arith.addi %5, %c135_i32_302 : i32
    %c6_i32_303 = arith.constant 6 : i32
    %977 = arith.addi %976, %c6_i32_303 : i32
    %978 = arith.index_cast %977 : i32 to index
    %979 = memref.load %arg4[%978] : memref<144xf32, #tpu.memory_space<smem>>
    %980 = vector.broadcast %979 : f32 to vector<24x128xf32>
    %981 = arith.mulf %980, %926 : vector<24x128xf32>
    %982 = arith.addf %924, %981 : vector<24x128xf32>
    %c7_304 = arith.constant 7 : index
    %c0_305 = arith.constant 0 : index
    %c0_306 = arith.constant 0 : index
    %983 = vector.load %arg7[%c7_304, %c0_305, %c0_306] : memref<9x24x128xf32, #tpu.memory_space<vmem>>, vector<1x24x128xf32>
    %984 = vector.shape_cast %983 : vector<1x24x128xf32> to vector<24x128xf32>
    %c72_i32_307 = arith.constant 72 : i32
    %985 = arith.addi %5, %c72_i32_307 : i32
    %c7_i32_308 = arith.constant 7 : i32
    %986 = arith.addi %985, %c7_i32_308 : i32
    %987 = arith.index_cast %986 : i32 to index
    %988 = memref.load %arg4[%987] : memref<144xf32, #tpu.memory_space<smem>>
    %989 = vector.broadcast %988 : f32 to vector<24x128xf32>
    %990 = arith.mulf %989, %984 : vector<24x128xf32>
    %991 = arith.addf %933, %990 : vector<24x128xf32>
    %c81_i32_309 = arith.constant 81 : i32
    %992 = arith.addi %5, %c81_i32_309 : i32
    %c7_i32_310 = arith.constant 7 : i32
    %993 = arith.addi %992, %c7_i32_310 : i32
    %994 = arith.index_cast %993 : i32 to index
    %995 = memref.load %arg4[%994] : memref<144xf32, #tpu.memory_space<smem>>
    %996 = vector.broadcast %995 : f32 to vector<24x128xf32>
    %997 = arith.mulf %996, %984 : vector<24x128xf32>
    %998 = arith.addf %940, %997 : vector<24x128xf32>
    %c90_i32_311 = arith.constant 90 : i32
    %999 = arith.addi %5, %c90_i32_311 : i32
    %c7_i32_312 = arith.constant 7 : i32
    %1000 = arith.addi %999, %c7_i32_312 : i32
    %1001 = arith.index_cast %1000 : i32 to index
    %1002 = memref.load %arg4[%1001] : memref<144xf32, #tpu.memory_space<smem>>
    %1003 = vector.broadcast %1002 : f32 to vector<24x128xf32>
    %1004 = arith.mulf %1003, %984 : vector<24x128xf32>
    %1005 = arith.addf %947, %1004 : vector<24x128xf32>
    %c99_i32_313 = arith.constant 99 : i32
    %1006 = arith.addi %5, %c99_i32_313 : i32
    %c7_i32_314 = arith.constant 7 : i32
    %1007 = arith.addi %1006, %c7_i32_314 : i32
    %1008 = arith.index_cast %1007 : i32 to index
    %1009 = memref.load %arg4[%1008] : memref<144xf32, #tpu.memory_space<smem>>
    %1010 = vector.broadcast %1009 : f32 to vector<24x128xf32>
    %1011 = arith.mulf %1010, %984 : vector<24x128xf32>
    %1012 = arith.addf %954, %1011 : vector<24x128xf32>
    %c108_i32_315 = arith.constant 108 : i32
    %1013 = arith.addi %5, %c108_i32_315 : i32
    %c7_i32_316 = arith.constant 7 : i32
    %1014 = arith.addi %1013, %c7_i32_316 : i32
    %1015 = arith.index_cast %1014 : i32 to index
    %1016 = memref.load %arg4[%1015] : memref<144xf32, #tpu.memory_space<smem>>
    %1017 = vector.broadcast %1016 : f32 to vector<24x128xf32>
    %1018 = arith.mulf %1017, %984 : vector<24x128xf32>
    %1019 = arith.addf %961, %1018 : vector<24x128xf32>
    %c117_i32_317 = arith.constant 117 : i32
    %1020 = arith.addi %5, %c117_i32_317 : i32
    %c7_i32_318 = arith.constant 7 : i32
    %1021 = arith.addi %1020, %c7_i32_318 : i32
    %1022 = arith.index_cast %1021 : i32 to index
    %1023 = memref.load %arg4[%1022] : memref<144xf32, #tpu.memory_space<smem>>
    %1024 = vector.broadcast %1023 : f32 to vector<24x128xf32>
    %1025 = arith.mulf %1024, %984 : vector<24x128xf32>
    %1026 = arith.addf %968, %1025 : vector<24x128xf32>
    %c126_i32_319 = arith.constant 126 : i32
    %1027 = arith.addi %5, %c126_i32_319 : i32
    %c7_i32_320 = arith.constant 7 : i32
    %1028 = arith.addi %1027, %c7_i32_320 : i32
    %1029 = arith.index_cast %1028 : i32 to index
    %1030 = memref.load %arg4[%1029] : memref<144xf32, #tpu.memory_space<smem>>
    %1031 = vector.broadcast %1030 : f32 to vector<24x128xf32>
    %1032 = arith.mulf %1031, %984 : vector<24x128xf32>
    %1033 = arith.addf %975, %1032 : vector<24x128xf32>
    %c135_i32_321 = arith.constant 135 : i32
    %1034 = arith.addi %5, %c135_i32_321 : i32
    %c7_i32_322 = arith.constant 7 : i32
    %1035 = arith.addi %1034, %c7_i32_322 : i32
    %1036 = arith.index_cast %1035 : i32 to index
    %1037 = memref.load %arg4[%1036] : memref<144xf32, #tpu.memory_space<smem>>
    %1038 = vector.broadcast %1037 : f32 to vector<24x128xf32>
    %1039 = arith.mulf %1038, %984 : vector<24x128xf32>
    %1040 = arith.addf %982, %1039 : vector<24x128xf32>
    %c8_323 = arith.constant 8 : index
    %c0_324 = arith.constant 0 : index
    %c0_325 = arith.constant 0 : index
    %1041 = vector.load %arg7[%c8_323, %c0_324, %c0_325] : memref<9x24x128xf32, #tpu.memory_space<vmem>>, vector<1x24x128xf32>
    %1042 = vector.shape_cast %1041 : vector<1x24x128xf32> to vector<24x128xf32>
    %c72_i32_326 = arith.constant 72 : i32
    %1043 = arith.addi %5, %c72_i32_326 : i32
    %c8_i32_327 = arith.constant 8 : i32
    %1044 = arith.addi %1043, %c8_i32_327 : i32
    %1045 = arith.index_cast %1044 : i32 to index
    %1046 = memref.load %arg4[%1045] : memref<144xf32, #tpu.memory_space<smem>>
    %1047 = vector.broadcast %1046 : f32 to vector<24x128xf32>
    %1048 = arith.mulf %1047, %1042 : vector<24x128xf32>
    %1049 = arith.addf %991, %1048 : vector<24x128xf32>
    %c81_i32_328 = arith.constant 81 : i32
    %1050 = arith.addi %5, %c81_i32_328 : i32
    %c8_i32_329 = arith.constant 8 : i32
    %1051 = arith.addi %1050, %c8_i32_329 : i32
    %1052 = arith.index_cast %1051 : i32 to index
    %1053 = memref.load %arg4[%1052] : memref<144xf32, #tpu.memory_space<smem>>
    %1054 = vector.broadcast %1053 : f32 to vector<24x128xf32>
    %1055 = arith.mulf %1054, %1042 : vector<24x128xf32>
    %1056 = arith.addf %998, %1055 : vector<24x128xf32>
    %c90_i32_330 = arith.constant 90 : i32
    %1057 = arith.addi %5, %c90_i32_330 : i32
    %c8_i32_331 = arith.constant 8 : i32
    %1058 = arith.addi %1057, %c8_i32_331 : i32
    %1059 = arith.index_cast %1058 : i32 to index
    %1060 = memref.load %arg4[%1059] : memref<144xf32, #tpu.memory_space<smem>>
    %1061 = vector.broadcast %1060 : f32 to vector<24x128xf32>
    %1062 = arith.mulf %1061, %1042 : vector<24x128xf32>
    %1063 = arith.addf %1005, %1062 : vector<24x128xf32>
    %c99_i32_332 = arith.constant 99 : i32
    %1064 = arith.addi %5, %c99_i32_332 : i32
    %c8_i32_333 = arith.constant 8 : i32
    %1065 = arith.addi %1064, %c8_i32_333 : i32
    %1066 = arith.index_cast %1065 : i32 to index
    %1067 = memref.load %arg4[%1066] : memref<144xf32, #tpu.memory_space<smem>>
    %1068 = vector.broadcast %1067 : f32 to vector<24x128xf32>
    %1069 = arith.mulf %1068, %1042 : vector<24x128xf32>
    %1070 = arith.addf %1012, %1069 : vector<24x128xf32>
    %c108_i32_334 = arith.constant 108 : i32
    %1071 = arith.addi %5, %c108_i32_334 : i32
    %c8_i32_335 = arith.constant 8 : i32
    %1072 = arith.addi %1071, %c8_i32_335 : i32
    %1073 = arith.index_cast %1072 : i32 to index
    %1074 = memref.load %arg4[%1073] : memref<144xf32, #tpu.memory_space<smem>>
    %1075 = vector.broadcast %1074 : f32 to vector<24x128xf32>
    %1076 = arith.mulf %1075, %1042 : vector<24x128xf32>
    %1077 = arith.addf %1019, %1076 : vector<24x128xf32>
    %c117_i32_336 = arith.constant 117 : i32
    %1078 = arith.addi %5, %c117_i32_336 : i32
    %c8_i32_337 = arith.constant 8 : i32
    %1079 = arith.addi %1078, %c8_i32_337 : i32
    %1080 = arith.index_cast %1079 : i32 to index
    %1081 = memref.load %arg4[%1080] : memref<144xf32, #tpu.memory_space<smem>>
    %1082 = vector.broadcast %1081 : f32 to vector<24x128xf32>
    %1083 = arith.mulf %1082, %1042 : vector<24x128xf32>
    %1084 = arith.addf %1026, %1083 : vector<24x128xf32>
    %c126_i32_338 = arith.constant 126 : i32
    %1085 = arith.addi %5, %c126_i32_338 : i32
    %c8_i32_339 = arith.constant 8 : i32
    %1086 = arith.addi %1085, %c8_i32_339 : i32
    %1087 = arith.index_cast %1086 : i32 to index
    %1088 = memref.load %arg4[%1087] : memref<144xf32, #tpu.memory_space<smem>>
    %1089 = vector.broadcast %1088 : f32 to vector<24x128xf32>
    %1090 = arith.mulf %1089, %1042 : vector<24x128xf32>
    %1091 = arith.addf %1033, %1090 : vector<24x128xf32>
    %c135_i32_340 = arith.constant 135 : i32
    %1092 = arith.addi %5, %c135_i32_340 : i32
    %c8_i32_341 = arith.constant 8 : i32
    %1093 = arith.addi %1092, %c8_i32_341 : i32
    %1094 = arith.index_cast %1093 : i32 to index
    %1095 = memref.load %arg4[%1094] : memref<144xf32, #tpu.memory_space<smem>>
    %1096 = vector.broadcast %1095 : f32 to vector<24x128xf32>
    %1097 = arith.mulf %1096, %1042 : vector<24x128xf32>
    %1098 = arith.addf %1040, %1097 : vector<24x128xf32>
    %c8_i32_342 = arith.constant 8 : i32
    %1099 = arith.addi %6, %c8_i32_342 : i32
    %1100 = arith.index_cast %1099 : i32 to index
    %1101 = memref.load %arg5[%1100] : memref<16xf32, #tpu.memory_space<smem>>
    %1102 = vector.broadcast %1101 : f32 to vector<24x128xf32>
    %1103 = arith.addf %1049, %1102 : vector<24x128xf32>
    %cst_343 = arith.constant 0.000000e+00 : f32
    %1104 = vector.broadcast %cst_343 : f32 to vector<24x128xf32>
    %1105 = arith.maximumf %1103, %1104 : vector<24x128xf32>
    %c0_344 = arith.constant 0 : index
    %c8_345 = arith.constant 8 : index
    %c0_346 = arith.constant 0 : index
    %c0_347 = arith.constant 0 : index
    %1106 = vector.load %arg6[%c0_344, %c8_345, %c0_346, %c0_347] : memref<1x16x24x128xf32, #tpu.memory_space<vmem>>, vector<1x1x24x128xf32>
    %1107 = vector.shape_cast %1106 : vector<1x1x24x128xf32> to vector<24x128xf32>
    %1108 = vector.shape_cast %1105 : vector<24x128xf32> to vector<1x1x24x128xf32>
    tpu.vector_store %arg6[%c0_344, %c8_345, %c0_346, %c0_347], %1108 {strides = array<i32>} : memref<1x16x24x128xf32, #tpu.memory_space<vmem>>, vector<1x1x24x128xf32>,
    %c9_i32_348 = arith.constant 9 : i32
    %1109 = arith.addi %6, %c9_i32_348 : i32
    %1110 = arith.index_cast %1109 : i32 to index
    %1111 = memref.load %arg5[%1110] : memref<16xf32, #tpu.memory_space<smem>>
    %1112 = vector.broadcast %1111 : f32 to vector<24x128xf32>
    %1113 = arith.addf %1056, %1112 : vector<24x128xf32>
    %cst_349 = arith.constant 0.000000e+00 : f32
    %1114 = vector.broadcast %cst_349 : f32 to vector<24x128xf32>
    %1115 = arith.maximumf %1113, %1114 : vector<24x128xf32>
    %c0_350 = arith.constant 0 : index
    %c9 = arith.constant 9 : index
    %c0_351 = arith.constant 0 : index
    %c0_352 = arith.constant 0 : index
    %1116 = vector.load %arg6[%c0_350, %c9, %c0_351, %c0_352] : memref<1x16x24x128xf32, #tpu.memory_space<vmem>>, vector<1x1x24x128xf32>
    %1117 = vector.shape_cast %1116 : vector<1x1x24x128xf32> to vector<24x128xf32>
    %1118 = vector.shape_cast %1115 : vector<24x128xf32> to vector<1x1x24x128xf32>
    tpu.vector_store %arg6[%c0_350, %c9, %c0_351, %c0_352], %1118 {strides = array<i32>} : memref<1x16x24x128xf32, #tpu.memory_space<vmem>>, vector<1x1x24x128xf32>,
    %c10_i32 = arith.constant 10 : i32
    %1119 = arith.addi %6, %c10_i32 : i32
    %1120 = arith.index_cast %1119 : i32 to index
    %1121 = memref.load %arg5[%1120] : memref<16xf32, #tpu.memory_space<smem>>
    %1122 = vector.broadcast %1121 : f32 to vector<24x128xf32>
    %1123 = arith.addf %1063, %1122 : vector<24x128xf32>
    %cst_353 = arith.constant 0.000000e+00 : f32
    %1124 = vector.broadcast %cst_353 : f32 to vector<24x128xf32>
    %1125 = arith.maximumf %1123, %1124 : vector<24x128xf32>
    %c0_354 = arith.constant 0 : index
    %c10 = arith.constant 10 : index
    %c0_355 = arith.constant 0 : index
    %c0_356 = arith.constant 0 : index
    %1126 = vector.load %arg6[%c0_354, %c10, %c0_355, %c0_356] : memref<1x16x24x128xf32, #tpu.memory_space<vmem>>, vector<1x1x24x128xf32>
    %1127 = vector.shape_cast %1126 : vector<1x1x24x128xf32> to vector<24x128xf32>
    %1128 = vector.shape_cast %1125 : vector<24x128xf32> to vector<1x1x24x128xf32>
    tpu.vector_store %arg6[%c0_354, %c10, %c0_355, %c0_356], %1128 {strides = array<i32>} : memref<1x16x24x128xf32, #tpu.memory_space<vmem>>, vector<1x1x24x128xf32>,
    %c11_i32 = arith.constant 11 : i32
    %1129 = arith.addi %6, %c11_i32 : i32
    %1130 = arith.index_cast %1129 : i32 to index
    %1131 = memref.load %arg5[%1130] : memref<16xf32, #tpu.memory_space<smem>>
    %1132 = vector.broadcast %1131 : f32 to vector<24x128xf32>
    %1133 = arith.addf %1070, %1132 : vector<24x128xf32>
    %cst_357 = arith.constant 0.000000e+00 : f32
    %1134 = vector.broadcast %cst_357 : f32 to vector<24x128xf32>
    %1135 = arith.maximumf %1133, %1134 : vector<24x128xf32>
    %c0_358 = arith.constant 0 : index
    %c11 = arith.constant 11 : index
    %c0_359 = arith.constant 0 : index
    %c0_360 = arith.constant 0 : index
    %1136 = vector.load %arg6[%c0_358, %c11, %c0_359, %c0_360] : memref<1x16x24x128xf32, #tpu.memory_space<vmem>>, vector<1x1x24x128xf32>
    %1137 = vector.shape_cast %1136 : vector<1x1x24x128xf32> to vector<24x128xf32>
    %1138 = vector.shape_cast %1135 : vector<24x128xf32> to vector<1x1x24x128xf32>
    tpu.vector_store %arg6[%c0_358, %c11, %c0_359, %c0_360], %1138 {strides = array<i32>} : memref<1x16x24x128xf32, #tpu.memory_space<vmem>>, vector<1x1x24x128xf32>,
    %c12_i32 = arith.constant 12 : i32
    %1139 = arith.addi %6, %c12_i32 : i32
    %1140 = arith.index_cast %1139 : i32 to index
    %1141 = memref.load %arg5[%1140] : memref<16xf32, #tpu.memory_space<smem>>
    %1142 = vector.broadcast %1141 : f32 to vector<24x128xf32>
    %1143 = arith.addf %1077, %1142 : vector<24x128xf32>
    %cst_361 = arith.constant 0.000000e+00 : f32
    %1144 = vector.broadcast %cst_361 : f32 to vector<24x128xf32>
    %1145 = arith.maximumf %1143, %1144 : vector<24x128xf32>
    %c0_362 = arith.constant 0 : index
    %c12 = arith.constant 12 : index
    %c0_363 = arith.constant 0 : index
    %c0_364 = arith.constant 0 : index
    %1146 = vector.load %arg6[%c0_362, %c12, %c0_363, %c0_364] : memref<1x16x24x128xf32, #tpu.memory_space<vmem>>, vector<1x1x24x128xf32>
    %1147 = vector.shape_cast %1146 : vector<1x1x24x128xf32> to vector<24x128xf32>
    %1148 = vector.shape_cast %1145 : vector<24x128xf32> to vector<1x1x24x128xf32>
    tpu.vector_store %arg6[%c0_362, %c12, %c0_363, %c0_364], %1148 {strides = array<i32>} : memref<1x16x24x128xf32, #tpu.memory_space<vmem>>, vector<1x1x24x128xf32>,
    %c13_i32 = arith.constant 13 : i32
    %1149 = arith.addi %6, %c13_i32 : i32
    %1150 = arith.index_cast %1149 : i32 to index
    %1151 = memref.load %arg5[%1150] : memref<16xf32, #tpu.memory_space<smem>>
    %1152 = vector.broadcast %1151 : f32 to vector<24x128xf32>
    %1153 = arith.addf %1084, %1152 : vector<24x128xf32>
    %cst_365 = arith.constant 0.000000e+00 : f32
    %1154 = vector.broadcast %cst_365 : f32 to vector<24x128xf32>
    %1155 = arith.maximumf %1153, %1154 : vector<24x128xf32>
    %c0_366 = arith.constant 0 : index
    %c13 = arith.constant 13 : index
    %c0_367 = arith.constant 0 : index
    %c0_368 = arith.constant 0 : index
    %1156 = vector.load %arg6[%c0_366, %c13, %c0_367, %c0_368] : memref<1x16x24x128xf32, #tpu.memory_space<vmem>>, vector<1x1x24x128xf32>
    %1157 = vector.shape_cast %1156 : vector<1x1x24x128xf32> to vector<24x128xf32>
    %1158 = vector.shape_cast %1155 : vector<24x128xf32> to vector<1x1x24x128xf32>
    tpu.vector_store %arg6[%c0_366, %c13, %c0_367, %c0_368], %1158 {strides = array<i32>} : memref<1x16x24x128xf32, #tpu.memory_space<vmem>>, vector<1x1x24x128xf32>,
    %c14_i32 = arith.constant 14 : i32
    %1159 = arith.addi %6, %c14_i32 : i32
    %1160 = arith.index_cast %1159 : i32 to index
    %1161 = memref.load %arg5[%1160] : memref<16xf32, #tpu.memory_space<smem>>
    %1162 = vector.broadcast %1161 : f32 to vector<24x128xf32>
    %1163 = arith.addf %1091, %1162 : vector<24x128xf32>
    %cst_369 = arith.constant 0.000000e+00 : f32
    %1164 = vector.broadcast %cst_369 : f32 to vector<24x128xf32>
    %1165 = arith.maximumf %1163, %1164 : vector<24x128xf32>
    %c0_370 = arith.constant 0 : index
    %c14 = arith.constant 14 : index
    %c0_371 = arith.constant 0 : index
    %c0_372 = arith.constant 0 : index
    %1166 = vector.load %arg6[%c0_370, %c14, %c0_371, %c0_372] : memref<1x16x24x128xf32, #tpu.memory_space<vmem>>, vector<1x1x24x128xf32>
    %1167 = vector.shape_cast %1166 : vector<1x1x24x128xf32> to vector<24x128xf32>
    %1168 = vector.shape_cast %1165 : vector<24x128xf32> to vector<1x1x24x128xf32>
    tpu.vector_store %arg6[%c0_370, %c14, %c0_371, %c0_372], %1168 {strides = array<i32>} : memref<1x16x24x128xf32, #tpu.memory_space<vmem>>, vector<1x1x24x128xf32>,
    %c15_i32 = arith.constant 15 : i32
    %1169 = arith.addi %6, %c15_i32 : i32
    %1170 = arith.index_cast %1169 : i32 to index
    %1171 = memref.load %arg5[%1170] : memref<16xf32, #tpu.memory_space<smem>>
    %1172 = vector.broadcast %1171 : f32 to vector<24x128xf32>
    %1173 = arith.addf %1098, %1172 : vector<24x128xf32>
    %cst_373 = arith.constant 0.000000e+00 : f32
    %1174 = vector.broadcast %cst_373 : f32 to vector<24x128xf32>
    %1175 = arith.maximumf %1173, %1174 : vector<24x128xf32>
    %c0_374 = arith.constant 0 : index
    %c15 = arith.constant 15 : index
    %c0_375 = arith.constant 0 : index
    %c0_376 = arith.constant 0 : index
    %1176 = vector.load %arg6[%c0_374, %c15, %c0_375, %c0_376] : memref<1x16x24x128xf32, #tpu.memory_space<vmem>>, vector<1x1x24x128xf32>
    %1177 = vector.shape_cast %1176 : vector<1x1x24x128xf32> to vector<24x128xf32>
    %1178 = vector.shape_cast %1175 : vector<24x128xf32> to vector<1x1x24x128xf32>
    tpu.vector_store %arg6[%c0_374, %c15, %c0_375, %c0_376], %1178 {strides = array<i32>} : memref<1x16x24x128xf32, #tpu.memory_space<vmem>>, vector<1x1x24x128xf32>,
    return
  }
  func.func @transform_0(%arg0: i32, %arg1: i32, %arg2: i32) -> (i32, i32, i32) {
    %c0_i32 = arith.constant 0 : i32
    %c0_i32_0 = arith.constant 0 : i32
    %c0_i32_1 = arith.constant 0 : i32
    return %arg0, %c0_i32, %c0_i32_0 : i32, i32, i32
  }
  func.func @transform_1(%arg0: i32, %arg1: i32, %arg2: i32) -> i32 {
    %c0_i32 = arith.constant 0 : i32
    %c0_i32_0 = arith.constant 0 : i32
    return %c0_i32 : i32
  }
  func.func @transform_2(%arg0: i32, %arg1: i32, %arg2: i32) -> i32 {
    %c0_i32 = arith.constant 0 : i32
    %c0_i32_0 = arith.constant 0 : i32
    return %c0_i32 : i32
  }
  func.func @transform_3(%arg0: i32, %arg1: i32, %arg2: i32) -> (i32, i32, i32, i32) {
    %c0_i32 = arith.constant 0 : i32
    %c0_i32_0 = arith.constant 0 : i32
    return %arg0, %arg2, %arg1, %c0_i32 : i32, i32, i32, i32
  }
}

</mosaic_0001>

<bundles_post_ra>
// kernel: tpu_custom_call.1
= control target key start
LH: loop header
LB: loop body
LE: loop exit
PB: predicated region body
PF: predicated region fallthrough
CT: control target
= control target key end

     0   :  { %s5323_s0 = inlined_call_operand.hbm [shape: f32[2,48,128], index: 0, kind: input, shape index: {}]   ;;  %s5324_s1 = inlined_call_operand.hbm [shape: f32[144], index: 1, kind: input, shape index: {}]   ;;  %s5325_s2 = inlined_call_operand.vmem [shape: f32[16], index: 2, kind: input, shape index: {}]   ;;  %s5326_s3 = inlined_call_operand.hbm [shape: f32[2,16,48,128], index: 3, kind: output, shape index: {}]  }
   0x1   :  { %5654 = sst [smem:[#allocation219_spill]] %s5323_s0 }
   0x2   :  { %5655 = sst [smem:[#allocation220_spill]] %s5324_s1 }
   0x3   :  { %5656 = sst [smem:[#allocation221_spill]] %s5325_s2 }
   0x4   :  { %5657 = sst [smem:[#allocation222_spill]] %s5326_s3 }
   0x5   :  { %8 = vsyncpa [#allocation4], 0 }
   0x6   :  { %10 = vsyncpa [#allocation4 + $0x1], 0 }
   0x7   :  { %11 = vsyncpa [#allocation6], 0 }
   0x8   :  { %12 = vsyncpa [#allocation7], 0 }
   0x9   :  { %13 = vsyncpa [#allocation5], 0 }
   0xa   :  { %15 = vsyncpa [#allocation5 + $0x1], 0  ;;  %s2639_s12 = smov 0   ;;  %s2641_s13 = smov 0  }
   0xb   :  { %s2643_s14 = smov 0   ;;  %s2645_s15 = smov 0  }
   0xc   :  { %s2647_s16 = smov 0   ;;  %s2649_s17 = smov 0  }
   0xd   :  { %s2651_s18 = smov 0   ;;  %s2653_s19 = smov 0  }
   0xe   :  { %s2655_s20 = smov 0   ;;  %s2657_s21 = smov 0  }
   0xf   :  { %s2659_s22 = smov 0  }
  0x10 LB: > { %5658 = sst [smem:[#allocation17_spill]] %s2564_s12  ;;  %s2078_s23 = sadd.s32 4294967295, %s2604_s22   ;;  %s2604_s22 = sphi %s2659_s22, %s21_s22   ;;  %s2600_s21 = sphi %s2657_s21, %s6412_s21   ;;  %s2596_s20 = sphi %s2655_s20, %s6411_s20   ;;  %s2592_s19 = sphi %s2653_s19, %s6410_s19   ;;  %s2588_s18 = sphi %s2651_s18, %s6409_s18   ;;  %s2584_s17 = sphi %s2649_s17, %s6408_s17   ;;  %s2580_s16 = sphi %s2647_s16, %s6407_s16   ;;  %s2576_s15 = sphi %s2645_s15, %s6406_s15   ;;  %s2572_s14 = sphi %s2643_s14, %s6405_s14   ;;  %s2568_s13 = sphi %s2641_s13, %s6404_s13   ;;  %s2564_s12 = sphi %s2639_s12, %s6403_s12  }
  0x11   : > { %5659 = sst [smem:[#allocation18_spill]] %s2568_s13  ;;  %s2079_s24 = sadd.s32 4294967294, %s2604_s22  }
  0x12   : > { %5660 = sst [smem:[#allocation19_spill]] %s2572_s14  ;;  %p54_p0 = scmp.ne.s32.totalorder %s2584_s17, %s2580_s16 }
  0x13   : > { %5661 = sst [smem:[#allocation20_spill]] %s2580_s16  ;;  %p55_p1 = scmp.eq.s32.totalorder %s2604_s22, 0 }
  0x14   : > { %5662 = sst [smem:[#allocation21_spill]] %s2584_s17  ;;  %p60_p2 = scmp.ne.s32.totalorder %s2580_s16, %s2576_s15 }
  0x15   : > { %5663 = sst [smem:[#allocation22_spill]] %s2588_s18  ;;  %p2699_p3 = scmp.eq.s32.totalorder %s2078_s23, 0 }
  0x16   : > { %5664 = sst [smem:[#allocation23_spill]] %s2592_s19  ;;  %p2704_p4 = por %p55_p1, %p54_p0 }
  0x17   : > { %5665 = sst [smem:[#allocation24_spill]] %s2596_s20  ;;  %p129_p5 = scmp.ne.s32.totalorder %s2572_s14, %s2568_s13 }
  0x18   : > { %5666 = sst [smem:[#allocation25_spill]] %s2600_s21  ;;  %p2712_p6 = por %p2699_p3, %p60_p2 }
  0x19   : > { %5667 = sst [smem:[#allocation26_spill]] %s2604_s22  ;;  %p130_p7 = scmp.eq.s32.totalorder %s2078_s23, 3 }
  0x1a   : > { %p135_p8 = scmp.ne.s32.totalorder %s2568_s13, %s2564_s12  ;;  %p136_p9 = scmp.eq.s32.totalorder %s2079_s24, 3 }
  0x1b   : > { %p2718_p10 = por %p130_p7, %p129_p5  ;;  %p2080_p11 = scmp.ge.s32.totalorder %s2604_s22, 1 }
  0x1c   : > { %p2723_p12 = por %p136_p9, %p135_p8  ;;  %p143_p13 = scmp.lt.s32.totalorder %s2604_s22, 5 }
  0x1d   : > { %s5671_s30 = scalar_select %p2718_p10, 1, 0 }
  0x1e   : > { %s5673_s4 = scalar_select %p2723_p12, 1, 0 }
  0x1f   : > { %5672 = sst [smem:[#allocation27_spill]] %s5671_s30  ;;  %p2731_p0 = pnand %p2080_p11, %p143_p13 }
  0x20   : > { %5674 = sst [smem:[#allocation28_spill]] %s5673_s4  ;;  %p2335_p2 = scmp.lt.s32.totalorder %s2604_s22, 4 }
  0x21   : > { %s5675_s1 = sld [smem:[#allocation220_spill]]  ;;  %p2318_p1 = pneg %p2731_p0 }
  0x22   : > { %s5677_s2 = sld [smem:[#allocation221_spill]]  ;;  %p2745_p7 = pnand %p2335_p2, %p2704_p4 }
  0x23   : > { %p2319_p5 = pnand %p2318_p1, %p2699_p3  ;;  %s2606_s23 = smov [#allocation8]  }
  0x24   : > { %s2607_s24 = smov [#allocation9]   ;;  %s36_s5 = sadd.s32 1, %s2596_s20 }
  0x25   : > { %p38_p8 = scmp.ge.s32.totalorder %s36_s5, 2  ;;  %s40_s6 = sadd.s32 1, %s2600_s21 }
  0x26   : > { %s176_s27 = sand.u32 1, %s2584_s17   ;;  %s2296_s9 = smul.u32 48, %s2600_s21 }
  0x27   : > { %s155_s7 = sshll.u32 %s5675_s1, 4  ;;  %s6414_s5 = smov (%p38_p8, %s36_s5), 0  ;;  %s156_s7 = int_to_ptr.hbm [resolvable:$true] %s155_s7 }
  0x28   : > { %s165_s11 = sshll.u32 %s5677_s2, 4  ;;  %5679 = sst [smem:[#allocation29_spill]] %s6414_s5  ;;  %s166_s11 = int_to_ptr.vmem [resolvable:$true] %s165_s11 }
  0x29   : > { %2321 = dma.hbm_to_smem (!%p2319_p5), %s156_s7, 32, %s2606_s23, [#allocation6]  }
  0x2a   : > { %2324 = dma.vmem_to_smem (!%p2319_p5), %s166_s11, 16, %s2607_s24, [#allocation7]  }
  0x2b   : > { %s6416_s6 = smov (!%p38_p8, %s40_s6), %s2600_s21  ;;  %s115_s28 = ssub.s32 %s2596_s20, %s6414_s5 }
  0x2c   : > { %p42_p4 = scmp.ge.s32.totalorder %s6416_s6, 2  ;;  %s2295_s10 = smul.u32 48, %s176_s27 }
  0x2d   : > { %s5680_s0 = sld [smem:[#allocation219_spill]]  ;;  %s5682_s12 = sadd.s32 1, %s2584_s17 }
  0x2e   : > { %s6418_s6 = smov (%p42_p4, %s6416_s6), 0  ;;  %s180_s2 = scalar_lea.vmem [#allocation3], %s2295_s10 }
  0x2f   : > { %5681 = sst [smem:[#allocation30_spill]] %s6418_s6  ;;  %s44_s25 = ssub.s32 %s2600_s21, %s6418_s6 }
  0x30   : > { %p45_p9 = scmp.eq.s32.totalorder %s44_s25, 0  ;;  %s116_s1 = sor.u32 %s115_s28, %s44_s25 }
  0x31   : > { %p117_p11 = scmp.eq.s32.totalorder %s116_s1, 0  ;;  %s188_s4 = sshll.u32 %s180_s2, 4  ;;  %s189_s4 = int_to_ptr.vmem [resolvable:$true] %s188_s4 }
  0x32   : > { %s2768_s5 = scalar_select %p45_p9, %s2584_s17, %s5682_s12  }
  0x33   : > { %s185_s11 = scalar_lea.hbm %s5680_s0, %s2296_s9  ;;  %s5684_s20 = sadd.s32 1, %s2572_s14 }
  0x34   : > { %s186_s24 = sshll.u32 %s185_s11, 4  ;;  %5683 = sst [smem:[#allocation31_spill]] %s2768_s5  ;;  %s187_s24 = int_to_ptr.hbm [resolvable:$true] %s186_s24 }
  0x35   : > { %s2773_s22 = scalar_select %p117_p11, %s2572_s14, %s5684_s20  }
  0x36   : > { %s177_s9 = scalar_lea.sflag [#allocation4], %s176_s27  ;;  %s2608_s7 = smov 128  }
  0x37   : > { %5685 = sst [smem:[#allocation32_spill]] %s2773_s22  ;;  %s2609_s23 = smov 8  }
  0x38   : > { %2328 = dma.hbm_to_vmem [thread:$0]  (!%p2745_p7), %s187_s24, 768, %s189_s4, %s177_s9, %s2608_s7, %s2608_s7, %s2609_s23  }
  0x39   : > { %200 = sbr.rel (%p2731_p0) target bundleno = 563 (0x233), region = 32 }
  0x3e   : > { %s202_s1 = sand.u32 1, %s2580_s16  }
  0x3f   : > { %s2297_s25 = smul.u32 48, %s202_s1  ;;  %s203_s2 = scalar_lea.sflag [#allocation4], %s202_s1 }
  0x41   : > { %s2780_s28 = scalar_lea.vmem [#allocation3], %s2297_s25 }
  0x42   : > { %2547 = dma.done.wait (%p2712_p6), %s203_s2, 768  }
  0x43   : > { %2549 = vsyncadd (%p2712_p6), %s203_s2, 4294966528 }
  0x44   : > { %2551 = dma.done.wait (%p2699_p3), [#allocation6], 32  }
  0x45   : > { %2553 = vsyncadd (%p2699_p3), [#allocation6], 4294967264 }
  0x46   : > { %2555 = dma.done.wait (%p2699_p3), [#allocation7], 16  }
  0x47   : > { %2557 = vsyncadd (%p2699_p3), [#allocation7], 4294967280 }
  0x48   : > { %222 = sfence }
  0x49   : > { %s243_s12 = smul.u32 24, %s2588_s18  ;;  %v272_v0 = vlaneseq  ;;  %s2610_s29 = smov 1  }
  0x4a   : > { %s5333_s4 = smov 127   ;;  %s2847_s7 = sld [smem:[#allocation8 + $0x2]] }
  0x4b   : > { %s2796_s20 = scalar_lea.vmem %s2780_s28, %s243_s12 [#allocation3]  ;;  %v2799_v1 = vshrl.u32 %v272_v0, 7  ;;  %s2088_s27 = sadd.s32 4294967295, %s243_s12  ;;  %v2993_v28 = vand.u32 127, %v272_v0 }
  0x4c   : > { %5686 = sst [smem:[#allocation33_spill]] %s2796_s20  ;;  %v2802_v2 = vld [vmem:[%s2796_s20 + $0x8] sm:$0xff]  ;;  %v2805_v3 = vld [vmem:[%s2796_s20 + $0x10] sm:$0xff]  ;;  %v2808_v4 = vld [vmem:[%s2796_s20] sm:$0xff]  ;;  %p253_p3 = scmp.gt.s32.totalorder %s2088_s27, 0 }
  0x4d   : > { %p257_p6 = scmp.gt.s32.totalorder %s243_s12, 0  ;;  %v282_v5 = vrot.slane %v2802_v2, 7  ;;  %v283_v6 = vrot.slane %v2805_v3, 7  ;;  %vm284_vm0 = vcmp.lt.s32.totalorder %v2799_v1, 1  ;;  %v281_v7 = vrot.slane %v2808_v4, 7  ;;  %s262_s10 = sadd.s32 24, %s243_s12 }
  0x4e   : > { %s6420_s27 = smov (!%p253_p3, %s2088_s27), 0  ;;  %vm278_vm1 = vcmp.eq.s32.totalorder %v2799_v1, 0  ;;  %p267_p13 = scmp.lt.s32.totalorder %s262_s10, 48  ;;  %v297_v19 = vrot.slane %v2805_v3, 1  ;;  %v275_v20 = vadd.s32 16, %v2799_v1  ;;  %v295_v21 = vrot.slane %v2808_v4, 1 }
  0x4f   : > { %v2816_v8 = vsel %vm284_vm0, %v282_v5, %v283_v6  ;;  %v2820_v9 = vsel %vm284_vm0, %v281_v7, %v282_v5  ;;  %s258_s26 = scalar_select %p257_p6, 1, 0  ;;  %v287_v13 = vsel %vm284_vm0, %v283_v6, %v281_v7  ;;  %vm298_vm2 = vcmp.lt.s32.totalorder %v2799_v1, 7  ;;  %5719 = vst [vmem:[#allocation65_spill] sm:$0xff] %v2993_v28 }
  0x50   : > { %5687 = vst [vmem:[#allocation34_spill] sm:$0xff] %v2820_v9  ;;  %311 = vrot.lane.b32.xlu1 %v2816_v8, %s2610_s29  ;;  %319 = vrot.lane.b32.xlu2 %v2820_v9, %s5333_s4  ;;  %s255_s8 = scalar_lea.vmem %s2780_s28, %s6420_s27 [#allocation3]  ;;  %p263_p0 = scmp.lt.s32.totalorder %s262_s10, 47  ;;  %v296_v23 = vrot.slane %v2802_v2, 1  ;;  %vm294_vm3 = vcmp.eq.s32.totalorder %v275_v20, 23  ;;  %v301_v24 = vsel %vm298_vm2, %v297_v19, %v295_v21  ;;  %v2996_v29 = vstv %s2847_s7 }
  0x51   : > { %309 = vrot.lane.b32.xlu0 %v2820_v9, %s2610_s29  ;;  %v256_v10 = vld [vmem:[%s255_s8] sm:$0x1]  ;;  %s259_s15 = scvt.s32.f32 %s258_s26  ;;  %s2849_s23 = sld [smem:[#allocation8 + $0xb]]  ;;  %5720 = vst [vmem:[#allocation66_spill] sm:$0xff] %v2996_v29  ;;  %vm316_vm4 = vcmp.eq.s32.totalorder %v2993_v28, 127  ;;  %vm306_vm5 = vcmp.eq.s32.totalorder %v2993_v28, 0 }
  0x52   : > { %s268_s11 = scalar_select %p267_p13, 1, 0  ;;  %v2888_v26 = vsel %vm298_vm2, %v296_v23, %v297_v19  ;;  %v2892_v27 = vsel %vm298_vm2, %v295_v21, %v296_v23 }
  0x53   : > { %v260_v11 = vstv %s259_s15  ;;  %s6422_s10 = smov (!%p263_p0, %s262_s10), 47  ;;  %s2851_s1 = sld [smem:[#allocation8 + $0x14]]  ;;  %5690 = vst [vmem:[#allocation37_spill] sm:$0xff] %v2888_v26 }
  0x54   : > { %v261_v12 = vmul.f32 %v260_v11, %v256_v10  ;;  %s269_s24 = scvt.s32.f32 %s268_s11  ;;  %s265_s9 = scalar_lea.vmem %s2780_s28, %s6422_s10 [#allocation3]  ;;  %5691 = vst [vmem:[#allocation38_spill] sm:$0xff] %v2892_v27 }
  0x55   : > { %v266_v16 = vld [vmem:[%s265_s9] sm:$0x1]  ;;  %s2853_s25 = sld [smem:[#allocation8 + $0x1d]]  ;;  %s5694_s22 = smov 127  }
  0x56   : > { %v288_v14 = vperm.slane %v261_v12, 0  ;;  %v270_v17 = vstv %s269_s24  ;;  %s2858_s2 = sld [smem:[#allocation8 + $0x26]] }
  0x57   : > { %v271_v18 = vmul.f32 %v270_v17, %v266_v16  ;;  %s2861_s28 = sld [smem:[#allocation8 + $0x2f]]  ;;  %v2999_v30 = vstv %s2849_s23 }
  0x58   : > { %v2832_v15 = vsel %vm278_vm1, %v288_v14, %v287_v13  ;;  %321 = vrot.lane.b32.xlu2 %v2816_v8, %s5333_s4  ;;  %s2865_s12 = sld [smem:[#allocation8 + $0x38]]  ;;  %5721 = vst [vmem:[#allocation67_spill] sm:$0xff] %v2999_v30 }
  0x59   : > { %5688 = vst [vmem:[#allocation35_spill] sm:$0xff] %v2832_v15  ;;  %317 = vrot.lane.b32.xlu1 %v2832_v15, %s5333_s4  ;;  %307 = vrot.lane.b32.xlu0 %v2832_v15, %s2610_s29  ;;  %v302_v22 = vperm.slane %v271_v18, 0  ;;  %s2871_s27 = sld [smem:[#allocation8 + $0x41]]  ;;  %v3004_v31 = vstv %s2851_s1 }
  0x5a   : > { %s2876_s26 = sld [smem:[#allocation8 + $0x4a]]  ;;  %5722 = vst [vmem:[#allocation68_spill] sm:$0xff] %v3004_v31 }
  0x5b   : > { %s2878_s8 = sld [smem:[#allocation8 + $0x53]]  ;;  %v2882_v25 = vsel %vm294_vm3, %v302_v22, %v301_v24  ;;  %v3007_v32 = vstv %s2853_s25 }
  0x5c   : > { %s2880_s15 = sld [smem:[#allocation8 + $0x5c]]  ;;  %5689 = vst [vmem:[#allocation36_spill] sm:$0xff] %v2882_v25  ;;  %v3010_v33 = vstv %s2858_s2 }
  0x5d   : > { %s2884_s10 = sld [smem:[#allocation8 + $0x65]]  ;;  %5723 = vst [vmem:[#allocation69_spill] sm:$0xff] %v3007_v32  ;;  %v3013_v34 = vstv %s2861_s28 }
  0x5e   : > { %s2894_s11 = sld [smem:[#allocation8 + $0x6e]]  ;;  %5724 = vst [vmem:[#allocation70_spill] sm:$0xff] %v3010_v33  ;;  %v3018_v35 = vstv %s2865_s12 }
  0x5f   : > { %s2896_s24 = sld [smem:[#allocation8 + $0x77]]  ;;  %5725 = vst [vmem:[#allocation71_spill] sm:$0xff] %v3013_v34  ;;  %v3021_v36 = vstv %s2871_s27 }
  0x60   : > { %341 = vrot.lane.b32.xlu2 %v2805_v3, %s2610_s29  ;;  %s2900_s9 = sld [smem:[#allocation8 + $0x80]]  ;;  %5726 = vst [vmem:[#allocation72_spill] sm:$0xff] %v3018_v35  ;;  %v3024_v37 = vstv %s2876_s26 }
  0x61   : > { %339 = vrot.lane.b32.xlu1 %v2802_v2, %s2610_s29  ;;  %337 = vrot.lane.b32.xlu0 %v2808_v4, %s2610_s29  ;;  %s2908_s0 = sld [smem:[#allocation8 + $0x3]]  ;;  %5727 = vst [vmem:[#allocation73_spill] sm:$0xff] %v3021_v36  ;;  %v3027_v38 = vstv %s2878_s8 }
  0x62   : > { %s2910_s6 = sld [smem:[#allocation8 + $0xc]]  ;;  %5729 = vst [vmem:[#allocation74_spill] sm:$0xff] %v3024_v37  ;;  %v3032_v39 = vstv %s2880_s15 }
  0x63   : > { %s2912_s21 = sld [smem:[#allocation8 + $0x15]]  ;;  %5731 = vst [vmem:[#allocation75_spill] sm:$0xff] %v3027_v38  ;;  %v3035_v40 = vstv %s2884_s10 }
  0x64   : > { %s2914_s5 = sld [smem:[#allocation8 + $0x1e]]  ;;  %5734 = vst [vmem:[#allocation76_spill] sm:$0xff] %v3032_v39  ;;  %v3038_v41 = vstv %s2894_s11 }
  0x65   : > { %s2916_s17 = sld [smem:[#allocation8 + $0x27]]  ;;  %5736 = vst [vmem:[#allocation77_spill] sm:$0xff] %v3035_v40  ;;  %v3041_v42 = vstv %s2896_s24 }
  0x66   : > { %s2918_s16 = sld [smem:[#allocation8 + $0x30]]  ;;  %5738 = vst [vmem:[#allocation78_spill] sm:$0xff] %v3038_v41  ;;  %v3046_v43 = vstv %s2900_s9 }
  0x67   : > { %s2922_s14 = sld [smem:[#allocation8 + $0x39]]  ;;  %5740 = vst [vmem:[#allocation79_spill] sm:$0xff] %v3041_v42  ;;  %v3052_v45 = vstv %s2908_s0 }
  0x68   : > { %350 = vrot.lane.b32.xlu2 %v2805_v3, %s5333_s4  ;;  %s2930_s3 = sld [smem:[#allocation8 + $0x4b]]  ;;  %5741 = vst [vmem:[#allocation80_spill] sm:$0xff] %v3046_v43  ;;  %v3055_v46 = vstv %s2910_s6 }
  0x69   : > { %348 = vrot.lane.b32.xlu1 %v2802_v2, %s5333_s4  ;;  %346 = vrot.lane.b32.xlu0 %v2808_v4, %s5333_s4  ;;  %s2906_s4 = sld [smem:[#allocation8 + $0x89]]  ;;  %5745 = vst [vmem:[#allocation82_spill] sm:$0xff] %v3052_v45  ;;  %v3060_v47 = vstv %s2912_s21 }
  0x6a   : > { %s2932_s30 = sld [smem:[#allocation8 + $0x54]]  ;;  %5747 = vst [vmem:[#allocation83_spill] sm:$0xff] %v3055_v46  ;;  %v3063_v48 = vstv %s2914_s5 }
  0x6b   : > { %5692 = sst [smem:[#allocation39_spill]] %s2916_s17  ;;  %5749 = vst [vmem:[#allocation84_spill] sm:$0xff] %v3060_v47 }
  0x6c   : > { %5693 = sst [smem:[#allocation40_spill]] %s2918_s16  ;;  %5750 = vst [vmem:[#allocation85_spill] sm:$0xff] %v3063_v48 }
  0x6d   : > { %5695 = sst [smem:[#allocation41_spill]] %s2922_s14 }
  0x6e   : > { %5697 = sst [smem:[#allocation43_spill]] %s2930_s3 }
  0x6f   : > { %s2934_s19 = sld [smem:[#allocation8 + $0x5d]]  ;;  %v3049_v44 = vstv %s2906_s4 }
  0x70   : > { %371 = vrot.lane.b32.xlu2 %v2882_v25, %s2610_s29  ;;  %5698 = sst [smem:[#allocation44_spill]] %s2932_s30  ;;  %5743 = vst [vmem:[#allocation81_spill] sm:$0xff] %v3049_v44 }
  0x71   : > { %369 = vrot.lane.b32.xlu1 %v2888_v26, %s2610_s29  ;;  %367 = vrot.lane.b32.xlu0 %v2892_v27, %s2610_s29  ;;  %s2928_s29 = sld [smem:[#allocation8 + $0x42]] }
  0x72   : > { %s2936_s18 = sld [smem:[#allocation8 + $0x66]] }
  0x73   : > { %s2938_s20 = sld [smem:[#allocation8 + $0x6f]] }
  0x74   : > { %s2940_s13 = sld [smem:[#allocation8 + $0x78]] }
  0x75   : > { %5699 = sst [smem:[#allocation45_spill]] %s2934_s19 }
  0x76   : > { %s2942_s14 = sld [smem:[#allocation8 + $0x81]] }
  0x77   : > { %5696 = sst [smem:[#allocation42_spill]] %s2928_s29 }
  0x78   : > { %380 = vrot.lane.b32.xlu2 %v2882_v25, %s5694_s22  ;;  %5700 = sst [smem:[#allocation46_spill]] %s2936_s18 }
  0x79   : > { %378 = vrot.lane.b32.xlu1 %v2888_v26, %s5694_s22  ;;  %376 = vrot.lane.b32.xlu0 %v2892_v27, %s5694_s22  ;;  %5701 = sst [smem:[#allocation47_spill]] %s2938_s20 }
  0x7a   : > { %5702 = sst [smem:[#allocation48_spill]] %s2940_s13 }
  0x7b   : > { %s2944_s16 = sld [smem:[#allocation8 + $0x8a]] }
  0x7c   : > { %s2946_s17 = sld [smem:[#allocation8]]  ;;  %v3103_v59 = vstv %s2942_s14 }
  0x7d   : > { %s2948_s22 = sld [smem:[#allocation8 + $0x9]]  ;;  %5775 = vst [vmem:[#allocation96_spill] sm:$0xff] %v3103_v59 }
  0x7e   : > { %s2950_s29 = sld [smem:[#allocation8 + $0x12]] }
  0x7f   : > { %s2952_s3 = sld [smem:[#allocation8 + $0x1b]] }
  0x80   : > { %s2954_s30 = sld [smem:[#allocation8 + $0x24]] }
  0x81   : > { %5703 = sst [smem:[#allocation49_spill]] %s2944_s16 }
  0x82   : > { %5704 = sst [smem:[#allocation50_spill]] %s2946_s17 }
  0x83   : > { %5705 = sst [smem:[#allocation51_spill]] %s2948_s22 }
  0x84   : > { %s2956_s19 = sld [smem:[#allocation8 + $0x2d]]  ;;  %v3117_v63 = vstv %s2950_s29 }
  0x85   : > { %5706 = sst [smem:[#allocation52_spill]] %s2952_s3  ;;  %5781 = vst [vmem:[#allocation100_spill] sm:$0xff] %v3117_v63 }
  0x86   : > { %5707 = sst [smem:[#allocation53_spill]] %s2954_s30 }
  0x87   : > { %s2958_s18 = sld [smem:[#allocation8 + $0x36]] }
  0x88   : > { %s2960_s20 = sld [smem:[#allocation8 + $0x3f]] }
  0x89   : > { %s2962_s13 = sld [smem:[#allocation8 + $0x1]] }
  0x8a   : > { %s2964_s16 = sld [smem:[#allocation8 + $0xa]]  ;;  %v3126_v2 = vstv %s2956_s19 }
  0x8b   : > { %s2966_s17 = sld [smem:[#allocation8 + $0x13]]  ;;  %5785 = vst [vmem:[#allocation103_spill] sm:$0xff] %v3126_v2 }
  0x8c   : > { %s2968_s22 = sld [smem:[#allocation8 + $0x1c]] }
  0x8d   : > { %5708 = sst [smem:[#allocation54_spill]] %s2958_s18 }
  0x8e   : > { %5709 = sst [smem:[#allocation55_spill]] %s2960_s20 }
  0x8f   : > { %5710 = sst [smem:[#allocation56_spill]] %s2962_s13 }
  0x90   : > { %5711 = sst [smem:[#allocation57_spill]] %s2964_s16 }
  0x91   : > { %5712 = sst [smem:[#allocation58_spill]] %s2966_s17 }
  0x92   : > { %5713 = sst [smem:[#allocation59_spill]] %s2968_s22 }
  0x93   : > { %s2970_s3 = sld [smem:[#allocation8 + $0x25]] }
  0x94   : > { %s2972_s30 = sld [smem:[#allocation8 + $0x2e]] }
  0x95   : > { %s2974_s18 = sld [smem:[#allocation8 + $0x37]] }
  0x96   : > { %s2976_s20 = sld [smem:[#allocation8 + $0x40]] }
  0x97   : > { %s2978_s13 = sld [smem:[#allocation8 + $0x48]] }
  0x98   : > { %s2980_s16 = sld [smem:[#allocation8 + $0x51]] }
  0x99   : > { %5714 = sst [smem:[#allocation60_spill]] %s2970_s3 }
  0x9a   : > { %5715 = sst [smem:[#allocation61_spill]] %s2972_s30 }
  0x9b   : > { %5716 = sst [smem:[#allocation62_spill]] %s2974_s18 }
  0x9c   : > { %s2982_s17 = sld [smem:[#allocation8 + $0x5a]]  ;;  %v3158_v16 = vstv %s2976_s20 }
  0x9d   : > { %s2984_s22 = sld [smem:[#allocation8 + $0x63]]  ;;  %5797 = vst [vmem:[#allocation113_spill] sm:$0xff] %v3158_v16  ;;  %v3161_v17 = vstv %s2978_s13 }
  0x9e   : > { %s2986_s3 = sld [smem:[#allocation8 + $0x6c]]  ;;  %5799 = vst [vmem:[#allocation114_spill] sm:$0xff] %v3161_v17  ;;  %v3164_v18 = vstv %s2980_s16 }
  0x9f   : > { %s2988_s30 = sld [smem:[#allocation8 + $0x75]]  ;;  %5801 = vst [vmem:[#allocation115_spill] sm:$0xff] %v3164_v18 }
  0xa0   : > { %s2990_s18 = sld [smem:[#allocation8 + $0x7e]] }
  0xa1   : > { %s5728_s7 = sld [smem:[#allocation39_spill]] }
  0xa2   : > { %5717 = sst [smem:[#allocation63_spill]] %s2982_s17 }
  0xa3   : > { %s3001_s17 = sld [smem:[#allocation8 + $0x87]]  ;;  %v3172_v20 = vstv %s2984_s22 }
  0xa4   : > { %s5730_s23 = sld [smem:[#allocation40_spill]]  ;;  %5803 = vst [vmem:[#allocation117_spill] sm:$0xff] %v3172_v20  ;;  %v3175_v21 = vstv %s2986_s3 }
  0xa5   : > { %s3029_s1 = sld [smem:[#allocation8 + $0x52]]  ;;  %5804 = vst [vmem:[#allocation118_spill] sm:$0xff] %v3175_v21  ;;  %v3178_v22 = vstv %s2988_s30 }
  0xa6   : > { %5718 = sst [smem:[#allocation64_spill]] %s2990_s18  ;;  %5805 = vst [vmem:[#allocation119_spill] sm:$0xff] %v3178_v22 }
  0xa7   : > { %s3015_s18 = sld [smem:[#allocation8 + $0x49]]  ;;  %v3066_v49 = vstv %s5728_s7 }
  0xa8   : > { %s5733_s25 = sld [smem:[#allocation41_spill]]  ;;  %5752 = vst [vmem:[#allocation86_spill] sm:$0xff] %v3066_v49 }
  0xa9   : > { %s5735_s2 = sld [smem:[#allocation42_spill]]  ;;  %v3186_v24 = vstv %s3001_s17 }
  0xaa   : > { %s5737_s28 = sld [smem:[#allocation43_spill]]  ;;  %v3069_v50 = vstv %s5730_s23  ;;  %5807 = vst [vmem:[#allocation121_spill] sm:$0xff] %v3186_v24 }
  0xab   : > { %5732 = sst [smem:[#allocation39_spill]] %s3029_s1  ;;  %5754 = vst [vmem:[#allocation87_spill] sm:$0xff] %v3069_v50 }
  0xac   : > { %s5739_s12 = sld [smem:[#allocation44_spill]] }
  0xad   : > { %s3043_s27 = sld [smem:[#allocation8 + $0x5b]]  ;;  %v3189_v27 = vstv %s3015_s18 }
  0xae   : > { %s5742_s26 = sld [smem:[#allocation45_spill]]  ;;  %v3074_v51 = vstv %s5733_s25  ;;  %5808 = vst [vmem:[#allocation122_spill] sm:$0xff] %v3189_v27 }
  0xaf   : > { %s5744_s8 = sld [smem:[#allocation46_spill]]  ;;  %5757 = vst [vmem:[#allocation88_spill] sm:$0xff] %v3074_v51  ;;  %v3077_v52 = vstv %s5735_s2 }
  0xb0   : > { %s5746_s15 = sld [smem:[#allocation47_spill]]  ;;  %5758 = vst [vmem:[#allocation89_spill] sm:$0xff] %v3077_v52  ;;  %v3080_v53 = vstv %s5737_s28 }
  0xb1   : > { %s5748_s10 = sld [smem:[#allocation48_spill]]  ;;  %5760 = vst [vmem:[#allocation90_spill] sm:$0xff] %v3080_v53 }
  0xb2   : > { %s3057_s1 = sld [smem:[#allocation8 + $0x64]]  ;;  %v3083_v54 = vstv %s5739_s12 }
  0xb3   : > { %s5751_s11 = sld [smem:[#allocation49_spill]]  ;;  %5762 = vst [vmem:[#allocation91_spill] sm:$0xff] %v3083_v54  ;;  %v3197_v25 = vstv %s3043_s27 }
  0xb4   : > { %s5753_s24 = sld [smem:[#allocation50_spill]]  ;;  %v3089_v55 = vstv %s5742_s26  ;;  %5810 = vst [vmem:[#allocation124_spill] sm:$0xff] %v3197_v25 }
  0xb5   : > { %s5755_s4 = sld [smem:[#allocation51_spill]]  ;;  %5766 = vst [vmem:[#allocation92_spill] sm:$0xff] %v3089_v55  ;;  %v3092_v56 = vstv %s5744_s8 }
  0xb6   : > { %s3071_s0 = sld [smem:[#allocation8 + $0x6d]]  ;;  %5768 = vst [vmem:[#allocation93_spill] sm:$0xff] %v3092_v56  ;;  %v3095_v57 = vstv %s5746_s15 }
  0xb7   : > { %s5759_s6 = sld [smem:[#allocation52_spill]]  ;;  %5770 = vst [vmem:[#allocation94_spill] sm:$0xff] %v3095_v57  ;;  %v3098_v58 = vstv %s5748_s10 }
  0xb8   : > { %s5761_s21 = sld [smem:[#allocation53_spill]]  ;;  %5772 = vst [vmem:[#allocation95_spill] sm:$0xff] %v3098_v58  ;;  %v3200_v15 = vstv %s3057_s1 }
  0xb9   : > { %s3085_s5 = sld [smem:[#allocation8 + $0x76]]  ;;  %v3106_v60 = vstv %s5751_s11  ;;  %5811 = vst [vmem:[#allocation125_spill] sm:$0xff] %v3200_v15 }
  0xba   : > { %s5764_s9 = sld [smem:[#allocation54_spill]]  ;;  %5777 = vst [vmem:[#allocation97_spill] sm:$0xff] %v3106_v60  ;;  %v3109_v61 = vstv %s5753_s24 }
  0xbb   : > { %s5765_s7 = sld [smem:[#allocation55_spill]]  ;;  %5778 = vst [vmem:[#allocation98_spill] sm:$0xff] %v3109_v61  ;;  %v3112_v62 = vstv %s5755_s4 }
  0xbc   : > { %5756 = sst [smem:[#allocation40_spill]] %s3071_s0  ;;  %5780 = vst [vmem:[#allocation99_spill] sm:$0xff] %v3112_v62 }
  0xbd   : > { %s5767_s23 = sld [smem:[#allocation56_spill]]  ;;  %v3120_v0 = vstv %s5759_s6 }
  0xbe   : > { %s5769_s25 = sld [smem:[#allocation57_spill]]  ;;  %5782 = vst [vmem:[#allocation101_spill] sm:$0xff] %v3120_v0  ;;  %v3123_v1 = vstv %s5761_s21 }
  0xbf   : > { %5763 = sst [smem:[#allocation41_spill]] %s3085_s5  ;;  %5783 = vst [vmem:[#allocation102_spill] sm:$0xff] %v3123_v1 }
  0xc0   : > { %s5771_s2 = sld [smem:[#allocation58_spill]]  ;;  %v3129_v4 = vstv %s5764_s9 }
  0xc1   : > { %s5773_s28 = sld [smem:[#allocation59_spill]]  ;;  %5786 = vst [vmem:[#allocation104_spill] sm:$0xff] %v3129_v4  ;;  %v3132_v5 = vstv %s5765_s7 }
  0xc2   : > { %s3100_s12 = sld [smem:[#allocation8 + $0x7f]]  ;;  %5787 = vst [vmem:[#allocation105_spill] sm:$0xff] %v3132_v5 }
  0xc3   : > { %s5774_s0 = sld [smem:[#allocation60_spill]]  ;;  %v3135_v6 = vstv %s5767_s23 }
  0xc4   : > { %s5776_s5 = sld [smem:[#allocation61_spill]]  ;;  %5788 = vst [vmem:[#allocation106_spill] sm:$0xff] %v3135_v6  ;;  %v3138_v7 = vstv %s5769_s25  ;;  %v3218_v24 = vmul.f32 %v3135_v6, %v2816_v8 }
  0xc5   : > { %s5779_s26 = sld [smem:[#allocation62_spill]]  ;;  %5789 = vst [vmem:[#allocation107_spill] sm:$0xff] %v3138_v7  ;;  %v3222_v20 = vmul.f32 %v3138_v7, %v2816_v8 }
  0xc6   : > { %s3114_s8 = sld [smem:[#allocation8 + $0x88]]  ;;  %v3141_v10 = vstv %s5771_s2 }
  0xc7   : > { %s5784_s14 = sld [smem:[#allocation63_spill]]  ;;  %5791 = vst [vmem:[#allocation108_spill] sm:$0xff] %v3141_v10  ;;  %v3144_v11 = vstv %s5773_s28  ;;  %v3228_v18 = vmul.f32 %v3141_v10, %v2816_v8 }
  0xc8   : > { %s5790_s29 = sld [smem:[#allocation64_spill]]  ;;  %5792 = vst [vmem:[#allocation109_spill] sm:$0xff] %v3144_v11  ;;  %v3211_v22 = vstv %s3100_s12  ;;  %v3232_v17 = vmul.f32 %v3144_v11, %v2816_v8  ;;  %v3252_v11 = vmul.f32 %v3158_v16, %v2816_v8  ;;  %v3272_v16 = vmul.f32 %v3197_v25, %v2816_v8 }
  0xc9   : > { %v3147_v12 = vstv %s5774_s0  ;;  %s5794_s19 = sld [smem:[#allocation39_spill]]  ;;  %5814 = vst [vmem:[#allocation128_spill] sm:$0xff] %v3211_v22 }
  0xca   : > { %5793 = vst [vmem:[#allocation110_spill] sm:$0xff] %v3147_v12  ;;  %v3150_v13 = vstv %s5776_s5  ;;  %s3152_s15 = sld [smem:[#allocation8 + $0x4]]  ;;  %v3236_v5 = vmul.f32 %v3147_v12, %v2816_v8  ;;  %v3256_v12 = vmul.f32 %v3189_v27, %v2816_v8 }
  0xcb   : > { %5795 = vst [vmem:[#allocation111_spill] sm:$0xff] %v3150_v13  ;;  %v3155_v14 = vstv %s5779_s26  ;;  %s5798_s10 = sld [smem:[#allocation40_spill]]  ;;  %v3240_v6 = vmul.f32 %v3150_v13, %v2816_v8 }
  0xcc   : > { %5796 = vst [vmem:[#allocation112_spill] sm:$0xff] %v3155_v14  ;;  %s5800_s11 = sld [smem:[#allocation41_spill]]  ;;  %v3248_v10 = vmul.f32 %v3155_v14, %v2816_v8 }
  0xcd   : > { %s3166_s24 = sld [smem:[#allocation8 + $0xd]]  ;;  %v3169_v19 = vstv %s5784_s14  ;;  %5816 = vst [vmem:[#allocation130_spill] sm:$0xff] %v3240_v6 }
  0xce   : > { %5802 = vst [vmem:[#allocation116_spill] sm:$0xff] %v3169_v19  ;;  %s3180_s20 = sld [smem:[#allocation8 + $0x16]]  ;;  %v3183_v23 = vstv %s5790_s29  ;;  %v320_v19 = vpop.permute.xlu2 %319 }
  0xcf   : > { %5806 = vst [vmem:[#allocation120_spill] sm:$0xff] %v3183_v23  ;;  %v3192_v26 = vstv %s5794_s19  ;;  %s3194_s13 = sld [smem:[#allocation8 + $0x1f]]  ;;  %v3214_v23 = vstv %s3114_s8  ;;  %v324_v7 = vsel %vm316_vm4, 0.0, %v320_v19 }
  0xd0   : > { %5809 = vst [vmem:[#allocation123_spill] sm:$0xff] %v3192_v26  ;;  %s3208_s3 = sld [smem:[#allocation8 + $0x28]]  ;;  %v3261_v13 = vmul.f32 %v2996_v29, %v324_v7  ;;  %v3264_v6 = vmul.f32 %v2999_v30, %v324_v7  ;;  %v3268_v19 = vmul.f32 %v3192_v26, %v2816_v8  ;;  %v3277_v27 = vmul.f32 %v3004_v31, %v324_v7 }
  0xd1   : > { %v3203_v9 = vstv %s5798_s10  ;;  %5815 = vst [vmem:[#allocation129_spill] sm:$0xff] %v3214_v23  ;;  %s3224_s16 = sld [smem:[#allocation8 + $0x31]]  ;;  %v3280_v14 = vmul.f32 %v3007_v32, %v324_v7  ;;  %v3291_v26 = vmul.f32 %v3018_v35, %v324_v7  ;;  %v3294_v25 = vmul.f32 %v3021_v36, %v324_v7 }
  0xd2   : > { %5812 = vst [vmem:[#allocation126_spill] sm:$0xff] %v3203_v9  ;;  %v3206_v21 = vstv %s5800_s11  ;;  %s3242_s17 = sld [smem:[#allocation8 + $0x3a]] }
  0xd3   : > { %5813 = vst [vmem:[#allocation127_spill] sm:$0xff] %v3206_v21  ;;  %s3258_s18 = sld [smem:[#allocation8 + $0x43]] }
  0xd4   : > { %5817 = vst [vmem:[#allocation131_spill] sm:$0xff] %v3261_v13  ;;  %s3274_s30 = sld [smem:[#allocation8 + $0x5]]  ;;  %v3283_v13 = vmul.f32 %v3010_v33, %v324_v7 }
  0xd5   : > { %5818 = vst [vmem:[#allocation132_spill] sm:$0xff] %v3264_v6  ;;  %v3286_v6 = vmul.f32 %v3013_v34, %v324_v7  ;;  %s3288_s22 = sld [smem:[#allocation8 + $0xe]] }
  0xd6   : > { %5819 = vst [vmem:[#allocation133_spill] sm:$0xff] %v3277_v27  ;;  %v3297_v27 = vmul.f32 %v3024_v37, %v324_v7  ;;  %s3302_s1 = sld [smem:[#allocation8 + $0x17]] }
  0xd7   : > { %5820 = vst [vmem:[#allocation134_spill] sm:$0xff] %v3280_v14  ;;  %v3300_v14 = vmul.f32 %v3027_v38, %v324_v7  ;;  %s3316_s27 = sld [smem:[#allocation8 + $0x20]] }
  0xd8   : > { %5821 = vst [vmem:[#allocation135_spill] sm:$0xff] %v3283_v13  ;;  %v3308_v13 = vmul.f32 %v3035_v40, %v324_v7  ;;  %s3332_s4 = sld [smem:[#allocation8 + $0x29]] }
  0xd9   : > { %5822 = vst [vmem:[#allocation136_spill] sm:$0xff] %v3286_v6  ;;  %v3305_v6 = vmul.f32 %v3032_v39, %v324_v7  ;;  %s3347_s0 = sld [smem:[#allocation8 + $0x32]] }
  0xda   : > { %5823 = vst [vmem:[#allocation137_spill] sm:$0xff] %v3291_v26  ;;  %v3311_v26 = vmul.f32 %v3038_v41, %v324_v7  ;;  %s3365_s6 = sld [smem:[#allocation8 + $0x3b]] }
  0xdb   : > { %5824 = vst [vmem:[#allocation138_spill] sm:$0xff] %v3294_v25  ;;  %v3314_v25 = vmul.f32 %v3041_v42, %v324_v7  ;;  %s3381_s21 = sld [smem:[#allocation8 + $0x44]] }
  0xdc   : > { %5825 = vst [vmem:[#allocation139_spill] sm:$0xff] %v3297_v27  ;;  %v3319_v27 = vmul.f32 %v3046_v43, %v324_v7  ;;  %s3395_s5 = sld [smem:[#allocation8 + $0x4c]] }
  0xdd   : > { %5826 = vst [vmem:[#allocation140_spill] sm:$0xff] %v3300_v14  ;;  %v3322_v14 = vmul.f32 %v3049_v44, %v324_v7  ;;  %v3345_v7 = vstv %s3180_s20  ;;  %s3409_s9 = sld [smem:[#allocation8 + $0x55]] }
  0xde   : > { %5827 = vst [vmem:[#allocation141_spill] sm:$0xff] %v3305_v6  ;;  %v3326_v6 = vmul.f32 %v3200_v15, %v2816_v8  ;;  %s3423_s7 = sld [smem:[#allocation8 + $0x5e]] }
  0xdf   : > { %5828 = vst [vmem:[#allocation142_spill] sm:$0xff] %v3308_v13  ;;  %v3330_v13 = vmul.f32 %v3203_v9, %v2816_v8  ;;  %v3352_v9 = vmul.f32 %v3211_v22, %v2816_v8  ;;  %v3375_v22 = vmul.f32 %v3345_v7, %v2805_v3  ;;  %s3437_s23 = sld [smem:[#allocation8 + $0x67]] }
  0xe0   : > { %5829 = vst [vmem:[#allocation143_spill] sm:$0xff] %v3311_v26  ;;  %v3339_v26 = vstv %s3152_s15  ;;  %s3451_s25 = sld [smem:[#allocation8 + $0x70]] }
  0xe1   : > { %5830 = vst [vmem:[#allocation144_spill] sm:$0xff] %v3314_v25  ;;  %v3336_v25 = vmul.f32 %v3206_v21, %v2816_v8  ;;  %v3356_v21 = vmul.f32 %v3214_v23, %v2816_v8  ;;  %v3360_v15 = vmul.f32 %v3339_v26, %v2805_v3  ;;  %s3469_s2 = sld [smem:[#allocation8 + $0x79]] }
  0xe2   : > { %5831 = vst [vmem:[#allocation145_spill] sm:$0xff] %v3319_v27  ;;  %v3342_v27 = vstv %s3166_s24  ;;  %s3483_s28 = sld [smem:[#allocation8 + $0x82]] }
  0xe3   : > { %5832 = vst [vmem:[#allocation146_spill] sm:$0xff] %v3322_v14  ;;  %v322_v14 = vpop.permute.xlu2 %321  ;;  %s3496_s12 = sld [smem:[#allocation8 + $0x8b]] }
  0xe4   : > { %5833 = vst [vmem:[#allocation147_spill] sm:$0xff] %v3326_v6  ;;  %v3371_v6 = vmul.f32 %v3342_v27, %v2805_v3  ;;  %s3638_s14 = sld [smem:[#allocation8 + $0x4d]] }
  0xe5   : > { %5834 = vst [vmem:[#allocation148_spill] sm:$0xff] %v3330_v13  ;;  %v325_v13 = vsel %vm316_vm4, 0.0, %v322_v14  ;;  %v3390_v14 = vstv %s3208_s3  ;;  %s3644_s29 = sld [smem:[#allocation8 + $0x56]] }
  0xe6   : > { %5835 = vst [vmem:[#allocation149_spill] sm:$0xff] %v3336_v25  ;;  %v3363_v25 = vstv %s3194_s13  ;;  %v3387_v23 = vmul.f32 %v2999_v30, %v325_v13  ;;  %v3407_v30 = vmul.f32 %v3013_v34, %v325_v13  ;;  %v3429_v34 = vmul.f32 %v3035_v40, %v325_v13  ;;  %s3650_s19 = sld [smem:[#allocation8 + $0x5f]] }
  0xe7   : > { %5836 = vst [vmem:[#allocation150_spill] sm:$0xff] %v3339_v26  ;;  %v3379_v8 = vmul.f32 %v3363_v25, %v2805_v3  ;;  %v3384_v26 = vmul.f32 %v2996_v29, %v325_v13  ;;  %v3412_v29 = vmul.f32 %v3018_v35, %v325_v13  ;;  %v3432_v35 = vmul.f32 %v3038_v41, %v325_v13  ;;  %s3656_s15 = sld [smem:[#allocation8 + $0x68]] }
  0xe8   : > { %5837 = vst [vmem:[#allocation151_spill] sm:$0xff] %v3342_v27  ;;  %v3393_v27 = vstv %s3224_s16  ;;  %v3446_v40 = vstv %s3242_s17  ;;  %s3662_s10 = sld [smem:[#allocation8 + $0x71]] }
  0xe9   : > { %5838 = vst [vmem:[#allocation152_spill] sm:$0xff] %v3345_v7  ;;  %v3398_v7 = vmul.f32 %v3004_v31, %v325_v13  ;;  %v3418_v31 = vmul.f32 %v3024_v37, %v325_v13  ;;  %v3435_v37 = vmul.f32 %v3041_v42, %v325_v13  ;;  %v3455_v42 = vmul.f32 %v3390_v14, %v2805_v3  ;;  %s3668_s11 = sld [smem:[#allocation8 + $0x7a]] }
  0xea   : > { %5839 = vst [vmem:[#allocation153_spill] sm:$0xff] %v3363_v25  ;;  %v3401_v25 = vmul.f32 %v3007_v32, %v325_v13  ;;  %v3421_v32 = vmul.f32 %v3027_v38, %v325_v13  ;;  %v3440_v38 = vmul.f32 %v3046_v43, %v325_v13  ;;  %v3459_v43 = vmul.f32 %v3393_v27, %v2805_v3  ;;  %s3674_s24 = sld [smem:[#allocation8 + $0x83]] }
  0xeb   : > { %5840 = vst [vmem:[#allocation154_spill] sm:$0xff] %v3371_v6  ;;  %v342_v41 = vpop.permute.xlu2 %341  ;;  %v3472_v6 = vstv %s3274_s30  ;;  %s3680_s20 = sld [smem:[#allocation8 + $0x8c]] }
  0xec   : > { %5841 = vst [vmem:[#allocation155_spill] sm:$0xff] %v3375_v22  ;;  %v3415_v22 = vmul.f32 %v3021_v36, %v325_v13  ;;  %v3449_v36 = vstv %s3258_s18  ;;  %s3774_s13 = sld [smem:[#allocation8 + $0x6]] }
  0xed   : > { %5842 = vst [vmem:[#allocation156_spill] sm:$0xff] %v3379_v8  ;;  %v3404_v8 = vmul.f32 %v3010_v33, %v325_v13  ;;  %v3426_v33 = vmul.f32 %v3032_v39, %v325_v13  ;;  %v3443_v39 = vmul.f32 %v3049_v44, %v325_v13  ;;  %v3463_v13 = vmul.f32 %v3446_v40, %v2805_v3  ;;  %s3784_s3 = sld [smem:[#allocation8 + $0xf]] }
  0xee   : > { %5843 = vst [vmem:[#allocation157_spill] sm:$0xff] %v3390_v14  ;;  %v3467_v44 = vmul.f32 %v3449_v36, %v2805_v3  ;;  %v3475_v14 = vstv %s3288_s22  ;;  %s3794_s16 = sld [smem:[#allocation8 + $0x18]] }
  0xef   : > { %5844 = vst [vmem:[#allocation158_spill] sm:$0xff] %v3393_v27  ;;  %v3481_v27 = vstv %s3316_s27  ;;  %s3804_s17 = sld [smem:[#allocation8 + $0x21]] }
  0xf0   : > { %5845 = vst [vmem:[#allocation159_spill] sm:$0xff] %v3446_v40  ;;  %v345_v40 = vsel %vm306_vm5, 0.0, %v342_v41  ;;  %s3814_s18 = sld [smem:[#allocation8 + $0x2a]] }
  0xf1   : > { %5846 = vst [vmem:[#allocation160_spill] sm:$0xff] %v3449_v36  ;;  %v3491_v36 = vstv %s3347_s0  ;;  %v3511_v41 = vmul.f32 %v3060_v47, %v345_v40  ;;  %v3532_v47 = vmul.f32 %v3083_v54, %v345_v40  ;;  %v3550_v54 = vstv %s3409_s9  ;;  %s3824_s30 = sld [smem:[#allocation8 + $0x33]] }
  0xf2   : > { %5847 = vst [vmem:[#allocation161_spill] sm:$0xff] %v3455_v42  ;;  %v3478_v42 = vstv %s3302_s1  ;;  %s3834_s22 = sld [smem:[#allocation8 + $0x3c]] }
  0xf3   : > { %5848 = vst [vmem:[#allocation162_spill] sm:$0xff] %v3463_v13  ;;  %v3488_v13 = vstv %s3332_s4  ;;  %s3844_s1 = sld [smem:[#allocation8 + $0x45]] }
  0xf4   : > { %5849 = vst [vmem:[#allocation163_spill] sm:$0xff] %v3467_v44  ;;  %v3494_v44 = vstv %s3365_s6  ;;  %s3854_s27 = sld [smem:[#allocation8 + $0x4e]] }
  0xf5   : > { %5850 = vst [vmem:[#allocation164_spill] sm:$0xff] %v3472_v6  ;;  %v3499_v6 = vmul.f32 %v3052_v45, %v345_v40  ;;  %v3520_v45 = vmul.f32 %v3069_v50, %v345_v40  ;;  %v3538_v50 = vmul.f32 %v3092_v56, %v345_v40  ;;  %v3559_v56 = vmul.f32 %v3106_v60, %v345_v40  ;;  %s3864_s4 = sld [smem:[#allocation8 + $0x57]] }
  0xf6   : > { %5851 = vst [vmem:[#allocation165_spill] sm:$0xff] %v3475_v14  ;;  %v3508_v14 = vstv %s3395_s5  ;;  %s3874_s0 = sld [smem:[#allocation8 + $0x60]] }
  0xf7   : > { %5852 = vst [vmem:[#allocation166_spill] sm:$0xff] %v3478_v42  ;;  %v3502_v42 = vmul.f32 %v3055_v46, %v345_v40  ;;  %v3523_v46 = vmul.f32 %v3074_v51, %v345_v40  ;;  %v3541_v51 = vmul.f32 %v3095_v57, %v345_v40  ;;  %v3563_v57 = vmul.f32 %v3508_v14, %v2805_v3  ;;  %s3884_s6 = sld [smem:[#allocation8 + $0x69]] }
  0xf8   : > { %5853 = vst [vmem:[#allocation167_spill] sm:$0xff] %v3481_v27  ;;  %v3505_v27 = vstv %s3381_s21  ;;  %s3894_s21 = sld [smem:[#allocation8 + $0x72]] }
  0xf9   : > { %5854 = vst [vmem:[#allocation168_spill] sm:$0xff] %v3488_v13  ;;  %v3529_v13 = vmul.f32 %v3080_v53, %v345_v40  ;;  %v3547_v53 = vmul.f32 %v3103_v59, %v345_v40  ;;  %v3570_v59 = vstv %s3451_s25  ;;  %s3904_s5 = sld [smem:[#allocation8 + $0x7b]] }
  0xfa   : > { %5855 = vst [vmem:[#allocation169_spill] sm:$0xff] %v3491_v36  ;;  %v3517_v36 = vmul.f32 %v3066_v49, %v345_v40  ;;  %v3556_v49 = vstv %s3437_s23  ;;  %s3917_s9 = sld [smem:[#allocation8 + $0x84]] }
  0xfb   : > { %5856 = vst [vmem:[#allocation170_spill] sm:$0xff] %v3494_v44  ;;  %v3514_v44 = vmul.f32 %v3063_v48, %v345_v40  ;;  %v3535_v48 = vmul.f32 %v3089_v55, %v345_v40  ;;  %v3553_v55 = vstv %s3423_s7  ;;  %s3931_s7 = sld [smem:[#allocation8 + $0x8d]] }
  0xfc   : > { %5857 = vst [vmem:[#allocation171_spill] sm:$0xff] %v3505_v27  ;;  %v3526_v27 = vmul.f32 %v3077_v52, %v345_v40  ;;  %v3544_v52 = vmul.f32 %v3098_v58, %v345_v40  ;;  %v3567_v58 = vmul.f32 %v3550_v54, %v2805_v3  ;;  %v3582_v40 = vmul.f32 %v3570_v59, %v2805_v3  ;;  %s3981_s23 = sld [smem:[#allocation8 + $0x7]] }
  0xfd   : > { %5858 = vst [vmem:[#allocation172_spill] sm:$0xff] %v3508_v14  ;;  %v3585_v14 = vstv %s3469_s2  ;;  %s3995_s25 = sld [smem:[#allocation8 + $0x10]] }
  0xfe   : > { %5859 = vst [vmem:[#allocation173_spill] sm:$0xff] %v3538_v50  ;;  %v3592_v60 = vmul.f32 %v3585_v14, %v2805_v3  ;;  %v5879_v50 = vld [vmem:[#allocation130_spill] sm:$0xff]  ;;  %s4008_s2 = sld [smem:[#allocation8 + $0x19]] }
  0xff   : > { %5861 = vst [vmem:[#allocation174_spill] sm:$0xff] %v3541_v51  ;;  %v3578_v51 = vmul.f32 %v3556_v49, %v2805_v3  ;;  %s4266_s8 = sld [smem:[#allocation8 + $0x7c]] }
 0x100   : > { %5862 = vst [vmem:[#allocation175_spill] sm:$0xff] %v3544_v52  ;;  %v3574_v52 = vmul.f32 %v3553_v55, %v2805_v3  ;;  %s4276_s26 = sld [smem:[#allocation8 + $0x85]] }
 0x101   : > { %5863 = vst [vmem:[#allocation176_spill] sm:$0xff] %v3547_v53  ;;  %v312_v53 = vpop.permute.xlu1 %311 }
 0x102   : > { %5864 = vst [vmem:[#allocation177_spill] sm:$0xff] %v3550_v54  ;;  %v315_v54 = vsel %vm306_vm5, 0.0, %v312_v53 }
 0x103   : > { %5865 = vst [vmem:[#allocation178_spill] sm:$0xff] %v3553_v55  ;;  %v3595_v55 = vstv %s3483_s28  ;;  %v436_v53 = vmul.f32 %v3126_v2, %v315_v54  ;;  %v442_v28 = vmul.f32 %v3129_v4, %v315_v54  ;;  %s4014_s28 = sld [smem:[#allocation8 + $0x22]] }
 0x104   : > { %5866 = vst [vmem:[#allocation179_spill] sm:$0xff] %v3556_v49  ;;  %v406_v49 = vmul.f32 %v3109_v61, %v315_v54 }
 0x105   : > { %5867 = vst [vmem:[#allocation180_spill] sm:$0xff] %v3559_v56 }
 0x106   : > { %5868 = vst [vmem:[#allocation181_spill] sm:$0xff] %v3563_v57  ;;  %v461_v57 = vadd.f32 %v3218_v24, %v406_v49  ;;  %v515_v49 = vadd.f32 %v3248_v10, %v442_v28  ;;  %v5883_v10 = vld [vmem:[#allocation117_spill] sm:$0xff]  ;;  %6075 = sst [smem:[#allocation43_spill]] %s4276_s26 }
 0x107   : > { %5869 = vst [vmem:[#allocation182_spill] sm:$0xff] %v3567_v58  ;;  %v430_v58 = vmul.f32 %v3123_v1, %v315_v54  ;;  %v3616_v1 = vmul.f32 %v3595_v55, %v2805_v3  ;;  %s4298_s26 = sld [smem:[#allocation8 + $0x50]] }
 0x108   : > { %5870 = vst [vmem:[#allocation183_spill] sm:$0xff] %v3570_v59  ;;  %v418_v59 = vmul.f32 %v3117_v63, %v315_v54 }
 0x109   : > { %5871 = vst [vmem:[#allocation184_spill] sm:$0xff] %v3574_v52  ;;  %v3598_v52 = vstv %s3496_s12  ;;  %v497_v63 = vadd.f32 %v3236_v5, %v430_v58  ;;  %s4024_s12 = sld [smem:[#allocation8 + $0x2b]] }
 0x10a   : > { %5872 = vst [vmem:[#allocation185_spill] sm:$0xff] %v3578_v51  ;;  %v412_v51 = vmul.f32 %v3112_v62, %v315_v54  ;;  %v479_v61 = vadd.f32 %v3228_v18, %v418_v59  ;;  %v3620_v4 = vmul.f32 %v3598_v52, %v2805_v3  ;;  %v537_v59 = vadd.f32 %v3384_v26, %v461_v57  ;;  %v5881_v3 = vld [vmem:[#allocation115_spill] sm:$0xff] }
 0x10b   : > { %5873 = vst [vmem:[#allocation186_spill] sm:$0xff] %v3582_v40  ;;  %v424_v40 = vmul.f32 %v3120_v0, %v315_v54  ;;  %v506_v0 = vadd.f32 %v5879_v50, %v436_v53  ;;  %v573_v5 = vadd.f32 %v3404_v8, %v497_v63  ;;  %v5882_v53 = vld [vmem:[#allocation116_spill] sm:$0xff]  ;;  %v5885_v57 = vld [vmem:[#allocation119_spill] sm:$0xff] }
 0x10c   : > { %5874 = vst [vmem:[#allocation187_spill] sm:$0xff] %v3585_v14  ;;  %v5878_v14 = vld [vmem:[#allocation105_spill] sm:$0xff]  ;;  %v470_v56 = vadd.f32 %v3222_v20, %v412_v51  ;;  %v555_v58 = vadd.f32 %v3398_v7, %v479_v61  ;;  %v5880_v20 = vld [vmem:[#allocation114_spill] sm:$0xff]  ;;  %v1179_v28 = vmul.f32 %v5882_v53, %v315_v54 }
 0x10d   : > { %5875 = vst [vmem:[#allocation188_spill] sm:$0xff] %v3592_v60  ;;  %v448_v60 = vmul.f32 %v5878_v14, %v315_v54  ;;  %v488_v62 = vadd.f32 %v3232_v17, %v424_v40  ;;  %v582_v18 = vadd.f32 %v3407_v30, %v506_v0  ;;  %v1167_v24 = vmul.f32 %v5880_v20, %v315_v54  ;;  %v5887_v7 = vld [vmem:[#allocation121_spill] sm:$0xff]  ;;  %v5888_v0 = vld [vmem:[#allocation147_spill] sm:$0xff]  ;;  %6087 = sst [smem:[#allocation45_spill]] %s4298_s26 }
 0x10e   : > { %5876 = vst [vmem:[#allocation189_spill] sm:$0xff] %v3595_v55  ;;  %v546_v17 = vadd.f32 %v3387_v23, %v470_v56  ;;  %v1173_v40 = vmul.f32 %v5881_v3, %v315_v54  ;;  %v1197_v56 = vmul.f32 %v5885_v57, %v315_v54  ;;  %v5886_v23 = vld [vmem:[#allocation120_spill] sm:$0xff]  ;;  %v1239_v63 = vadd.f32 %v3272_v16, %v1179_v28  ;;  %s4320_s26 = sld [smem:[#allocation8 + $0x62]] }
 0x10f   : > { %5877 = vst [vmem:[#allocation190_spill] sm:$0xff] %v3598_v52  ;;  %v524_v51 = vadd.f32 %v3252_v11, %v448_v60  ;;  %v564_v50 = vadd.f32 %v3401_v25, %v488_v62  ;;  %v1185_v60 = vmul.f32 %v5883_v10, %v315_v54  ;;  %v5884_v11 = vld [vmem:[#allocation118_spill] sm:$0xff]  ;;  %v1203_v61 = vmul.f32 %v5886_v23, %v315_v54  ;;  %v5889_v52 = vld [vmem:[#allocation148_spill] sm:$0xff] }
 0x110   : > { %v1191_v26 = vmul.f32 %v5884_v11, %v315_v54  ;;  %v1209_v25 = vmul.f32 %v5887_v7, %v315_v54  ;;  %v1221_v30 = vadd.f32 %v3256_v12, %v1167_v24  ;;  %v1230_v62 = vadd.f32 %v3268_v19, %v1173_v40  ;;  %v5890_v11 = vld [vmem:[#allocation149_spill] sm:$0xff] }
 0x111   : > { %v1248_v8 = vadd.f32 %v5888_v0, %v1185_v60  ;;  %v1266_v57 = vadd.f32 %v5890_v11, %v1197_v56  ;;  %v1275_v23 = vadd.f32 %v3352_v9, %v1203_v61  ;;  %v591_v12 = vadd.f32 %v3412_v29, %v515_v49  ;;  %v5892_v49 = vld [vmem:[#allocation155_spill] sm:$0xff]  ;;  %v5898_v60 = vld [vmem:[#allocation176_spill] sm:$0xff]  ;;  %v5902_v56 = vld [vmem:[#allocation181_spill] sm:$0xff] }
 0x112   : > { %v1257_v55 = vadd.f32 %v5889_v52, %v1191_v26  ;;  %v1284_v54 = vadd.f32 %v3356_v21, %v1209_v25  ;;  %v600_v19 = vadd.f32 %v3415_v22, %v524_v51  ;;  %v1296_v16 = vadd.f32 %v3418_v31, %v1221_v30  ;;  %v5893_v51 = vld [vmem:[#allocation156_spill] sm:$0xff]  ;;  %v5903_v61 = vld [vmem:[#allocation182_spill] sm:$0xff] }
 0x113   : > { %v1305_v24 = vadd.f32 %v3421_v32, %v1230_v62  ;;  %v1314_v52 = vadd.f32 %v3426_v33, %v1239_v63  ;;  %v1323_v40 = vadd.f32 %v3429_v34, %v1248_v8  ;;  %v1341_v21 = vadd.f32 %v3435_v37, %v1266_v57  ;;  %v5899_v26 = vld [vmem:[#allocation180_spill] sm:$0xff]  ;;  %v5900_v57 = vld [vmem:[#allocation162_spill] sm:$0xff]  ;;  %v5905_v63 = vld [vmem:[#allocation185_spill] sm:$0xff] }
 0x114   : > { %v1332_v9 = vadd.f32 %v3432_v35, %v1257_v55  ;;  %v613_v29 = vadd.f32 %v3499_v6, %v537_v59  ;;  %v622_v22 = vadd.f32 %v3502_v42, %v546_v17  ;;  %v631_v31 = vadd.f32 %v3511_v41, %v555_v58  ;;  %v5891_v41 = vld [vmem:[#allocation154_spill] sm:$0xff]  ;;  %v5894_v59 = vld [vmem:[#allocation161_spill] sm:$0xff]  ;;  %v5904_v30 = vld [vmem:[#allocation184_spill] sm:$0xff]  ;;  %6097 = sst [smem:[#allocation47_spill]] %s4320_s26 }
 0x115   : > { %v640_v32 = vadd.f32 %v3514_v44, %v564_v50  ;;  %v1350_v33 = vadd.f32 %v3440_v38, %v1275_v23  ;;  %v1359_v34 = vadd.f32 %v3443_v39, %v1284_v54  ;;  %v649_v35 = vadd.f32 %v3517_v36, %v573_v5  ;;  %v5895_v58 = vld [vmem:[#allocation173_spill] sm:$0xff]  ;;  %v5896_v50 = vld [vmem:[#allocation174_spill] sm:$0xff]  ;;  %s4344_s26 = sld [smem:[#allocation8 + $0x74]] }
 0x116   : > { %v658_v37 = vadd.f32 %v3520_v45, %v582_v18  ;;  %v667_v55 = vadd.f32 %v3523_v46, %v591_v12  ;;  %v676_v42 = vadd.f32 %v3526_v27, %v600_v19  ;;  %v689_v6 = vadd.f32 %v3360_v15, %v613_v29  ;;  %v5897_v18 = vld [vmem:[#allocation175_spill] sm:$0xff]  ;;  %v5906_v8 = vld [vmem:[#allocation186_spill] sm:$0xff]  ;;  %v5907_v12 = vld [vmem:[#allocation188_spill] sm:$0xff] }
 0x117   : > { %v698_v44 = vadd.f32 %v5891_v41, %v622_v22  ;;  %v707_v38 = vadd.f32 %v5892_v49, %v631_v31  ;;  %v716_v39 = vadd.f32 %v5893_v51, %v640_v32  ;;  %v725_v36 = vadd.f32 %v5894_v59, %v649_v35  ;;  %v351_v32 = vpop.permute.xlu2 %350  ;;  %v5919_v49 = vld [vmem:[#allocation166_spill] sm:$0xff]  ;;  %v5920_v59 = vld [vmem:[#allocation167_spill] sm:$0xff] }
 0x118   : > { %v734_v45 = vadd.f32 %v3459_v43, %v658_v37  ;;  %v1371_v17 = vadd.f32 %v3529_v13, %v1296_v16  ;;  %v1380_v46 = vadd.f32 %v3532_v47, %v1305_v24  ;;  %v1389_v27 = vadd.f32 %v3535_v48, %v1314_v52  ;;  %v5901_v47 = vld [vmem:[#allocation163_spill] sm:$0xff]  ;;  %v310_v16 = vpop.permute.xlu0 %309  ;;  %v5917_v37 = vld [vmem:[#allocation164_spill] sm:$0xff] }
 0x119   : > { %v1398_v15 = vadd.f32 %v5895_v58, %v1323_v40  ;;  %v1407_v5 = vadd.f32 %v5896_v50, %v1332_v9  ;;  %v1416_v28 = vadd.f32 %v5897_v18, %v1341_v21  ;;  %v1425_v11 = vadd.f32 %v5898_v60, %v1350_v33  ;;  %v5922_v58 = vld [vmem:[#allocation169_spill] sm:$0xff]  ;;  %v5923_v50 = vld [vmem:[#allocation34_spill] sm:$0xff] }
 0x11a   : > { %v1434_v43 = vadd.f32 %v5899_v26, %v1359_v34  ;;  %v743_v13 = vadd.f32 %v5900_v57, %v667_v55  ;;  %v752_v48 = vadd.f32 %v5901_v47, %v676_v42  ;;  %v1446_v23 = vadd.f32 %v5902_v56, %v1371_v17  ;;  %v5918_v42 = vld [vmem:[#allocation165_spill] sm:$0xff]  ;;  %v5927_v47 = vld [vmem:[#allocation171_spill] sm:$0xff] }
 0x11b   : > { %v1455_v25 = vadd.f32 %v5903_v61, %v1380_v46  ;;  %v1464_v62 = vadd.f32 %v5904_v30, %v1389_v27  ;;  %v1473_v0 = vadd.f32 %v5905_v63, %v1398_v15  ;;  %v1482_v54 = vadd.f32 %v5906_v8, %v1407_v5  ;;  %v5921_v46 = vld [vmem:[#allocation168_spill] sm:$0xff]  ;;  %v5924_v5 = vld [vmem:[#allocation106_spill] sm:$0xff] }
 0x11c   : > { %v1491_v19 = vadd.f32 %v5907_v12, %v1416_v28  ;;  %v1500_v24 = vadd.f32 %v3616_v1, %v1425_v11  ;;  %v1509_v52 = vadd.f32 %v3620_v4, %v1434_v43  ;;  %v3705_v40 = vstv %s3638_s14  ;;  %v5925_v28 = vld [vmem:[#allocation107_spill] sm:$0xff]  ;;  %v5926_v43 = vld [vmem:[#allocation170_spill] sm:$0xff]  ;;  %s4034_s14 = sld [smem:[#allocation8 + $0x34]] }
 0x11d   : > { %5908 = vst [vmem:[#allocation130_spill] sm:$0xff] %v3705_v40  ;;  %v3708_v9 = vstv %s3644_s29  ;;  %v3711_v21 = vstv %s3650_s19  ;;  %v3714_v29 = vstv %s3656_s15  ;;  %v3717_v22 = vstv %s3662_s10  ;;  %s4048_s29 = sld [smem:[#allocation8 + $0x3d]] }
 0x11e   : > { %5909 = vst [vmem:[#allocation147_spill] sm:$0xff] %v3708_v9  ;;  %v3720_v31 = vstv %s3668_s11  ;;  %v3723_v33 = vstv %s3674_s24  ;;  %v3726_v34 = vstv %s3680_s20  ;;  %v354_v4 = vsel %vm316_vm4, 0.0, %v351_v32  ;;  %s4054_s19 = sld [smem:[#allocation8 + $0x46]] }
 0x11f   : > { %5910 = vst [vmem:[#allocation148_spill] sm:$0xff] %v3711_v21  ;;  %v3732_v35 = vsel %vm306_vm5, 0.0, %v310_v16  ;;  %v762_v55 = vmul.f32 %v5917_v37, %v354_v4  ;;  %v771_v41 = vmul.f32 %v5918_v42, %v354_v4  ;;  %v780_v51 = vmul.f32 %v5919_v49, %v354_v4  ;;  %v5947_v49 = vld [vmem:[#allocation122_spill] sm:$0xff]  ;;  %v5948_v37 = vld [vmem:[#allocation123_spill] sm:$0xff]  ;;  %s4060_s15 = sld [smem:[#allocation8 + $0x8]] }
 0x120   : > { %5911 = vst [vmem:[#allocation149_spill] sm:$0xff] %v3714_v29  ;;  %v789_v17 = vmul.f32 %v5920_v59, %v354_v4  ;;  %v798_v27 = vmul.f32 %v5921_v46, %v354_v4  ;;  %v807_v15 = vmul.f32 %v5922_v58, %v354_v4  ;;  %v457_v18 = vmul.f32 %v5924_v5, %v5923_v50  ;;  %s4074_s10 = sld [smem:[#allocation8 + $0x11]] }
 0x121   : > { %5912 = vst [vmem:[#allocation154_spill] sm:$0xff] %v3717_v22  ;;  %v466_v60 = vmul.f32 %v5925_v28, %v5923_v50  ;;  %v3744_v11 = vadd.f32 %v762_v55, %v689_v6  ;;  %v3746_v26 = vadd.f32 %v771_v41, %v698_v44  ;;  %v816_v57 = vmul.f32 %v5926_v43, %v354_v4  ;;  %s4088_s11 = sld [smem:[#allocation8 + $0x1a]] }
 0x122   : > { %5913 = vst [vmem:[#allocation155_spill] sm:$0xff] %v3720_v31  ;;  %v825_v56 = vmul.f32 %v5927_v47, %v354_v4  ;;  %v3750_v61 = vadd.f32 %v780_v51, %v707_v38  ;;  %v3752_v30 = vadd.f32 %v789_v17, %v716_v39  ;;  %v3754_v63 = vadd.f32 %v798_v27, %v725_v36  ;;  %v5940_v47 = vld [vmem:[#allocation112_spill] sm:$0xff]  ;;  %s4100_s24 = sld [smem:[#allocation8 + $0x23]] }
 0x123   : > { %5914 = vst [vmem:[#allocation156_spill] sm:$0xff] %v3723_v33  ;;  %v3756_v8 = vadd.f32 %v807_v15, %v734_v45  ;;  %v1518_v12 = vmul.f32 %v3705_v40, %v354_v4  ;;  %v1527_v16 = vmul.f32 %v3708_v9, %v354_v4  ;;  %v1536_v6 = vmul.f32 %v3711_v21, %v354_v4  ;;  %s4110_s20 = sld [smem:[#allocation8 + $0x2c]] }
 0x124   : > { %5915 = vst [vmem:[#allocation161_spill] sm:$0xff] %v3726_v34  ;;  %v1545_v44 = vmul.f32 %v3714_v29, %v354_v4  ;;  %v1554_v32 = vmul.f32 %v3717_v22, %v354_v4  ;;  %v1563_v55 = vmul.f32 %v3720_v31, %v354_v4  ;;  %v1572_v38 = vmul.f32 %v3723_v33, %v354_v4  ;;  %v5936_v33 = vld [vmem:[#allocation110_spill] sm:$0xff]  ;;  %v5937_v29 = vld [vmem:[#allocation111_spill] sm:$0xff] }
 0x125   : > { %v1581_v39 = vmul.f32 %v3726_v34, %v354_v4  ;;  %v3766_v36 = vadd.f32 %v816_v57, %v743_v13  ;;  %v3768_v45 = vadd.f32 %v825_v56, %v752_v48  ;;  %v3770_v41 = vadd.f32 %v1518_v12, %v1446_v23  ;;  %v5928_v13 = vld [vmem:[#allocation98_spill] sm:$0xff]  ;;  %v5929_v23 = vld [vmem:[#allocation99_spill] sm:$0xff] }
 0x126   : > { %v3772_v51 = vadd.f32 %v1527_v16, %v1455_v25  ;;  %v3776_v17 = vadd.f32 %v1536_v6, %v1464_v62  ;;  %v3778_v27 = vadd.f32 %v1545_v44, %v1473_v0  ;;  %v3780_v15 = vadd.f32 %v1554_v32, %v1482_v54  ;;  %v5930_v25 = vld [vmem:[#allocation100_spill] sm:$0xff]  ;;  %v5931_v62 = vld [vmem:[#allocation101_spill] sm:$0xff] }
 0x127   : > { %v3782_v31 = vadd.f32 %v1563_v55, %v1491_v19  ;;  %v405_v48 = vmul.f32 %v5928_v13, %v3732_v35  ;;  %v411_v4 = vmul.f32 %v5929_v23, %v3732_v35  ;;  %v417_v57 = vmul.f32 %v5930_v25, %v3732_v35  ;;  %v5932_v19 = vld [vmem:[#allocation102_spill] sm:$0xff]  ;;  %v5933_v6 = vld [vmem:[#allocation104_spill] sm:$0xff] }
 0x128   : > { %v423_v56 = vmul.f32 %v5931_v62, %v3732_v35  ;;  %v3796_v0 = vadd.f32 %v1572_v38, %v1500_v24  ;;  %v3798_v54 = vadd.f32 %v1581_v39, %v1509_v52  ;;  %v429_v12 = vmul.f32 %v5932_v19, %v3732_v35  ;;  %v5934_v55 = vld [vmem:[#allocation108_spill] sm:$0xff]  ;;  %v5935_v52 = vld [vmem:[#allocation109_spill] sm:$0xff] }
 0x129   : > { %v435_v16 = vmul.f32 %v3126_v2, %v3732_v35  ;;  %v441_v44 = vmul.f32 %v5933_v6, %v3732_v35  ;;  %v447_v32 = vmul.f32 %v5878_v14, %v3732_v35  ;;  %v475_v24 = vmul.f32 %v5934_v55, %v5923_v50  ;;  %v5954_v6 = vld [vmem:[#allocation129_spill] sm:$0xff] }
 0x12a   : > { %v484_v38 = vmul.f32 %v5935_v52, %v5923_v50  ;;  %v3816_v39 = vadd.f32 %v457_v18, %v405_v48  ;;  %v3818_v34 = vadd.f32 %v466_v60, %v411_v4  ;;  %v493_v22 = vmul.f32 %v5936_v33, %v5923_v50  ;;  %v5941_v18 = vld [vmem:[#allocation113_spill] sm:$0xff] }
 0x12b   : > { %v502_v21 = vmul.f32 %v5937_v29, %v5923_v50  ;;  %v3826_v9 = vadd.f32 %v475_v24, %v417_v57  ;;  %v511_v43 = vmul.f32 %v5940_v47, %v5923_v50  ;;  %v520_v48 = vmul.f32 %v5941_v18, %v5923_v50 }
 0x12c   : > { %v3828_v40 = vadd.f32 %v484_v38, %v423_v56  ;;  %v3836_v60 = vadd.f32 %v493_v22, %v429_v12  ;;  %v1166_v58 = vmul.f32 %v5880_v20, %v3732_v35  ;;  %v1172_v57 = vmul.f32 %v5881_v3, %v3732_v35  ;;  %v5944_v38 = vld [vmem:[#allocation118_spill] sm:$0xff]  ;;  %v5953_v20 = vld [vmem:[#allocation128_spill] sm:$0xff] }
 0x12d   : > { %5938 = vst [vmem:[#allocation173_spill] sm:$0xff] %v3826_v9  ;;  %v3838_v4 = vadd.f32 %v502_v21, %v435_v16  ;;  %v1178_v56 = vmul.f32 %v5882_v53, %v3732_v35  ;;  %v1184_v24 = vmul.f32 %v5883_v10, %v3732_v35  ;;  %v1190_v22 = vmul.f32 %v5944_v38, %v3732_v35  ;;  %v5945_v21 = vld [vmem:[#allocation119_spill] sm:$0xff]  ;;  %v5946_v16 = vld [vmem:[#allocation120_spill] sm:$0xff]  ;;  %v5950_v9 = vld [vmem:[#allocation125_spill] sm:$0xff] }
 0x12e   : > { %5939 = vst [vmem:[#allocation174_spill] sm:$0xff] %v3828_v40  ;;  %v1196_v12 = vmul.f32 %v5945_v21, %v3732_v35  ;;  %v1202_v46 = vmul.f32 %v5946_v16, %v3732_v35  ;;  %v1208_v59 = vmul.f32 %v5887_v7, %v3732_v35  ;;  %v1217_v42 = vmul.f32 %v5947_v49, %v5923_v50  ;;  %v5951_v38 = vld [vmem:[#allocation126_spill] sm:$0xff]  ;;  %v5952_v10 = vld [vmem:[#allocation127_spill] sm:$0xff]  ;;  %v318_v7 = vpop.permute.xlu1 %317 }
 0x12f   : > { %5942 = vst [vmem:[#allocation175_spill] sm:$0xff] %v3836_v60  ;;  %v5949_v60 = vld [vmem:[#allocation124_spill] sm:$0xff]  ;;  %v1244_v21 = vmul.f32 %v5950_v9, %v5923_v50  ;;  %v1253_v16 = vmul.f32 %v5951_v38, %v5923_v50  ;;  %v1262_v35 = vmul.f32 %v5952_v10, %v5923_v50  ;;  %v3876_v53 = vadd.f32 %v511_v43, %v441_v44 }
 0x130   : > { %5943 = vst [vmem:[#allocation176_spill] sm:$0xff] %v3838_v4  ;;  %v1226_v4 = vmul.f32 %v5948_v37, %v5923_v50  ;;  %v1235_v40 = vmul.f32 %v5949_v60, %v5923_v50  ;;  %v3878_v3 = vadd.f32 %v520_v48, %v447_v32  ;;  %v1271_v14 = vmul.f32 %v5953_v20, %v5923_v50  ;;  %v5963_v48 = vld [vmem:[#allocation67_spill] sm:$0xff] }
 0x131   : > { %v1280_v2 = vmul.f32 %v5954_v6, %v5923_v50  ;;  %v3886_v19 = vadd.f32 %v1217_v42, %v1166_v58  ;;  %v3892_v23 = vadd.f32 %v1244_v21, %v1184_v24  ;;  %v3896_v43 = vadd.f32 %v1253_v16, %v1190_v22  ;;  %v5961_v58 = vld [vmem:[#allocation66_spill] sm:$0xff]  ;;  %v5972_v24 = vld [vmem:[#allocation71_spill] sm:$0xff]  ;;  %v5974_v21 = vld [vmem:[#allocation72_spill] sm:$0xff] }
 0x132   : > { %v3888_v62 = vadd.f32 %v1226_v4, %v1172_v57  ;;  %v3890_v25 = vadd.f32 %v1235_v40, %v1178_v56  ;;  %v3898_v44 = vadd.f32 %v1262_v35, %v1196_v12  ;;  %v3900_v32 = vadd.f32 %v1271_v14, %v1202_v46  ;;  %v5966_v56 = vld [vmem:[#allocation68_spill] sm:$0xff]  ;;  %v5968_v46 = vld [vmem:[#allocation69_spill] sm:$0xff] }
 0x133   : > { %5956 = vst [vmem:[#allocation162_spill] sm:$0xff] %v3892_v23  ;;  %v323_v50 = vsel %vm316_vm4, 0.0, %v318_v7  ;;  %v3906_v42 = vadd.f32 %v1280_v2, %v1208_v59  ;;  %v3915_v57 = vstv %s3774_s13  ;;  %v5970_v2 = vld [vmem:[#allocation70_spill] sm:$0xff]  ;;  %v5976_v16 = vld [vmem:[#allocation73_spill] sm:$0xff]  ;;  %s4120_s13 = sld [smem:[#allocation8 + $0x35]] }
 0x134   : > { %5955 = vst [vmem:[#allocation180_spill] sm:$0xff] %v3890_v25  ;;  %v3909_v40 = vmul.f32 %v5961_v58, %v323_v50  ;;  %v3912_v4 = vmul.f32 %v5963_v48, %v323_v50  ;;  %v3920_v14 = vmul.f32 %v5966_v56, %v323_v50  ;;  %v3923_v7 = vmul.f32 %v5968_v46, %v323_v50  ;;  %v5978_v58 = vld [vmem:[#allocation74_spill] sm:$0xff]  ;;  %v5980_v56 = vld [vmem:[#allocation75_spill] sm:$0xff] }
 0x135   : > { %5957 = vst [vmem:[#allocation163_spill] sm:$0xff] %v3896_v43  ;;  %v3926_v59 = vmul.f32 %v5970_v2, %v323_v50  ;;  %v3929_v22 = vmul.f32 %v5972_v24, %v323_v50  ;;  %v3934_v12 = vmul.f32 %v5974_v21, %v323_v50  ;;  %v3937_v35 = vmul.f32 %v5976_v16, %v323_v50  ;;  %v5982_v2 = vld [vmem:[#allocation76_spill] sm:$0xff]  ;;  %v5986_v21 = vld [vmem:[#allocation78_spill] sm:$0xff]  ;;  %v5988_v16 = vld [vmem:[#allocation79_spill] sm:$0xff] }
 0x136   : > { %5958 = vst [vmem:[#allocation181_spill] sm:$0xff] %v3898_v44  ;;  %v3940_v48 = vmul.f32 %v5978_v58, %v323_v50  ;;  %v3943_v46 = vmul.f32 %v5980_v56, %v323_v50  ;;  %v3946_v24 = vmul.f32 %v5982_v2, %v323_v50  ;;  %v5990_v58 = vld [vmem:[#allocation80_spill] sm:$0xff]  ;;  %v5992_v56 = vld [vmem:[#allocation81_spill] sm:$0xff]  ;;  %v3964_v2 = vstv %s3784_s3  ;;  %s4130_s3 = sld [smem:[#allocation8 + $0x3e]] }
 0x137   : > { %5959 = vst [vmem:[#allocation182_spill] sm:$0xff] %v3900_v32  ;;  %v4017_v44 = vstv %s3917_s9  ;;  %v4020_v43 = vstv %s3931_s7  ;;  %s4246_s9 = sld [smem:[#allocation8 + $0x6a]] }
 0x138   : > { %5960 = vst [vmem:[#allocation184_spill] sm:$0xff] %v3906_v42  ;;  %s4256_s7 = sld [smem:[#allocation8 + $0x73]] }
 0x139   : > { %5962 = vst [vmem:[#allocation185_spill] sm:$0xff] %v3909_v40 }
 0x13a   : > { %5964 = vst [vmem:[#allocation186_spill] sm:$0xff] %v3912_v4 }
 0x13b   : > { %5965 = vst [vmem:[#allocation188_spill] sm:$0xff] %v3915_v57 }
 0x13c   : > { %5967 = vst [vmem:[#allocation34_spill] sm:$0xff] %v3920_v14 }
 0x13d   : > { %5969 = vst [vmem:[#allocation106_spill] sm:$0xff] %v3923_v7  ;;  %v4004_v7 = vstv %s3904_s5  ;;  %s4236_s5 = sld [smem:[#allocation8 + $0x61]] }
 0x13e   : > { %5971 = vst [vmem:[#allocation107_spill] sm:$0xff] %v3926_v59 }
 0x13f   : > { %5973 = vst [vmem:[#allocation98_spill] sm:$0xff] %v3929_v22  ;;  %v5984_v22 = vld [vmem:[#allocation77_spill] sm:$0xff] }
 0x140   : > { %5975 = vst [vmem:[#allocation108_spill] sm:$0xff] %v3934_v12  ;;  %v3949_v59 = vmul.f32 %v5984_v22, %v323_v50  ;;  %v3952_v12 = vmul.f32 %v5986_v21, %v323_v50  ;;  %v3970_v22 = vstv %s3804_s17  ;;  %v3973_v21 = vstv %s3814_s18  ;;  %s4146_s17 = sld [smem:[#allocation9]] }
 0x141   : > { %5977 = vst [vmem:[#allocation109_spill] sm:$0xff] %v3937_v35  ;;  %v3955_v35 = vmul.f32 %v5988_v16, %v323_v50  ;;  %v3979_v16 = vstv %s3834_s22  ;;  %s4152_s18 = sld [smem:[#allocation9 + $0x1]] }
 0x142   : > { %5979 = vst [vmem:[#allocation110_spill] sm:$0xff] %v3940_v48  ;;  %v3958_v48 = vmul.f32 %v5990_v58, %v323_v50  ;;  %v3984_v58 = vstv %s3844_s1  ;;  %s4174_s22 = sld [smem:[#allocation9 + $0x3]] }
 0x143   : > { %5981 = vst [vmem:[#allocation111_spill] sm:$0xff] %v3943_v46  ;;  %v3961_v46 = vmul.f32 %v5992_v56, %v323_v50  ;;  %v3987_v50 = vstv %s3854_s27  ;;  %v3990_v56 = vstv %s3864_s4  ;;  %s4180_s1 = sld [smem:[#allocation9 + $0x4]] }
 0x144   : > { %5983 = vst [vmem:[#allocation112_spill] sm:$0xff] %v3946_v24  ;;  %v3967_v24 = vstv %s3794_s16  ;;  %s4140_s16 = sld [smem:[#allocation8 + $0x47]] }
 0x145   : > { %5985 = vst [vmem:[#allocation113_spill] sm:$0xff] %v3949_v59  ;;  %v4001_v59 = vstv %s3894_s21  ;;  %s4188_s27 = sld [smem:[#allocation9 + $0x5]] }
 0x146   : > { %5987 = vst [vmem:[#allocation122_spill] sm:$0xff] %v3952_v12  ;;  %v3976_v12 = vstv %s3824_s30  ;;  %s4164_s30 = sld [smem:[#allocation9 + $0x2]] }
 0x147   : > { %5989 = vst [vmem:[#allocation123_spill] sm:$0xff] %v3955_v35  ;;  %v3998_v35 = vstv %s3884_s6  ;;  %s4196_s4 = sld [smem:[#allocation9 + $0x6]] }
 0x148   : > { %5991 = vst [vmem:[#allocation124_spill] sm:$0xff] %v3958_v48  ;;  %v372_v48 = vpop.permute.xlu2 %371  ;;  %s4216_s6 = sld [smem:[#allocation8 + $0x4f]] }
 0x149   : > { %5993 = vst [vmem:[#allocation125_spill] sm:$0xff] %v3961_v46  ;;  %v3993_v46 = vstv %s3874_s0  ;;  %v375_v14 = vsel %vm306_vm5, 0.0, %v372_v48  ;;  %s4206_s0 = sld [smem:[#allocation9 + $0x7]] }
 0x14a   : > { %5994 = vst [vmem:[#allocation126_spill] sm:$0xff] %v3964_v2  ;;  %v838_v4 = vmul.f32 %v3915_v57, %v375_v14  ;;  %v847_v40 = vmul.f32 %v3964_v2, %v375_v14  ;;  %v856_v42 = vmul.f32 %v3967_v24, %v375_v14  ;;  %v865_v32 = vmul.f32 %v3970_v22, %v375_v14  ;;  %s4226_s21 = sld [smem:[#allocation8 + $0x58]] }
 0x14b   : > { %5995 = vst [vmem:[#allocation127_spill] sm:$0xff] %v3967_v24  ;;  %v874_v23 = vmul.f32 %v3973_v21, %v375_v14  ;;  %v883_v48 = vmul.f32 %v3976_v12, %v375_v14  ;;  %v901_v24 = vmul.f32 %v3984_v58, %v375_v14 }
 0x14c   : > { %5996 = vst [vmem:[#allocation128_spill] sm:$0xff] %v3970_v22  ;;  %v4027_v57 = vadd.f32 %v838_v4, %v3744_v11  ;;  %v4030_v2 = vadd.f32 %v847_v40, %v3746_v26  ;;  %v892_v22 = vmul.f32 %v3979_v16, %v375_v14  ;;  %v4037_v25 = vadd.f32 %v856_v42, %v3750_v61 }
 0x14d   : > { %5997 = vst [vmem:[#allocation129_spill] sm:$0xff] %v3973_v21  ;;  %v4040_v21 = vadd.f32 %v865_v32, %v3752_v30  ;;  %v4046_v11 = vadd.f32 %v883_v48, %v3756_v8  ;;  %v1593_v26 = vmul.f32 %v3987_v50, %v375_v14  ;;  %v1602_v40 = vmul.f32 %v3990_v56, %v375_v14 }
 0x14e   : > { %5998 = vst [vmem:[#allocation66_spill] sm:$0xff] %v3976_v12  ;;  %v4043_v12 = vadd.f32 %v874_v23, %v3754_v63  ;;  %v1611_v4 = vmul.f32 %v3993_v46, %v375_v14  ;;  %v1620_v61 = vmul.f32 %v3998_v35, %v375_v14  ;;  %v1629_v30 = vmul.f32 %v4001_v59, %v375_v14 }
 0x14f   : > { %5999 = vst [vmem:[#allocation67_spill] sm:$0xff] %v3979_v16  ;;  %v1638_v63 = vmul.f32 %v4004_v7, %v375_v14  ;;  %v1647_v23 = vmul.f32 %v4017_v44, %v375_v14  ;;  %v1656_v8 = vmul.f32 %v4020_v43, %v375_v14  ;;  %v4063_v32 = vadd.f32 %v892_v22, %v3766_v36  ;;  %v308_v22 = vpop.permute.xlu0 %307  ;;  %6038 = sst [smem:[#allocation42_spill]] %s4206_s0 }
 0x150   : > { %6000 = vst [vmem:[#allocation68_spill] sm:$0xff] %v3984_v58  ;;  %v4066_v42 = vadd.f32 %v901_v24, %v3768_v45  ;;  %v4069_v48 = vadd.f32 %v1593_v26, %v3770_v41  ;;  %v4080_v14 = vadd.f32 %v1620_v61, %v3778_v27  ;;  %v4083_v36 = vadd.f32 %v1629_v30, %v3780_v15  ;;  %v6009_v24 = vld [vmem:[#allocation35_spill] sm:$0xff]  ;;  %v340_v26 = vpop.permute.xlu1 %339  ;;  %v6013_v30 = vld [vmem:[#allocation100_spill] sm:$0xff]  ;;  %s4288_s0 = sld [smem:[#allocation8 + $0x8e]] }
 0x151   : > { %6001 = vst [vmem:[#allocation69_spill] sm:$0xff] %v3987_v50  ;;  %v4086_v45 = vadd.f32 %v1638_v63, %v3782_v31  ;;  %v4091_v41 = vadd.f32 %v1647_v23, %v3796_v0  ;;  %v465_v27 = vmul.f32 %v5925_v28, %v6009_v24  ;;  %v474_v31 = vmul.f32 %v5934_v55, %v6009_v24  ;;  %v6014_v23 = vld [vmem:[#allocation101_spill] sm:$0xff] }
 0x152   : > { %6002 = vst [vmem:[#allocation70_spill] sm:$0xff] %v3990_v56  ;;  %v483_v15 = vmul.f32 %v5935_v52, %v6009_v24  ;;  %v492_v0 = vmul.f32 %v5936_v33, %v6009_v24  ;;  %v519_v28 = vmul.f32 %v5941_v18, %v6009_v24  ;;  %v1216_v55 = vmul.f32 %v5947_v49, %v6009_v24 }
 0x153   : > { %6003 = vst [vmem:[#allocation71_spill] sm:$0xff] %v3993_v46  ;;  %v1225_v52 = vmul.f32 %v5948_v37, %v6009_v24  ;;  %v1243_v33 = vmul.f32 %v5950_v9, %v6009_v24  ;;  %v1261_v18 = vmul.f32 %v5952_v10, %v6009_v24  ;;  %v1270_v49 = vmul.f32 %v5953_v20, %v6009_v24  ;;  %v6011_v9 = vld [vmem:[#allocation132_spill] sm:$0xff]  ;;  %v6012_v10 = vld [vmem:[#allocation99_spill] sm:$0xff] }
 0x154   : > { %6004 = vst [vmem:[#allocation72_spill] sm:$0xff] %v3998_v35  ;;  %v4072_v35 = vadd.f32 %v1602_v40, %v3772_v51  ;;  %v4094_v51 = vadd.f32 %v1656_v8, %v3798_v54  ;;  %v501_v54 = vmul.f32 %v5937_v29, %v6009_v24  ;;  %v1234_v29 = vmul.f32 %v5949_v60, %v6009_v24  ;;  %v6010_v60 = vld [vmem:[#allocation131_spill] sm:$0xff]  ;;  %v6015_v8 = vld [vmem:[#allocation102_spill] sm:$0xff] }
 0x155   : > { %6005 = vst [vmem:[#allocation73_spill] sm:$0xff] %v4001_v59  ;;  %v313_v37 = vsel %vm306_vm5, 0.0, %v308_v22  ;;  %v536_v40 = vadd.f32 %v6010_v60, %v3816_v39  ;;  %v6017_v39 = vld [vmem:[#allocation104_spill] sm:$0xff]  ;;  %v6018_v59 = vld [vmem:[#allocation105_spill] sm:$0xff] }
 0x156   : > { %6006 = vst [vmem:[#allocation74_spill] sm:$0xff] %v4004_v7  ;;  %v410_v61 = vmul.f32 %v6012_v10, %v313_v37  ;;  %v416_v63 = vmul.f32 %v6013_v30, %v313_v37  ;;  %v422_v20 = vmul.f32 %v6014_v23, %v313_v37  ;;  %v428_v22 = vmul.f32 %v6015_v8, %v313_v37  ;;  %6082 = sst [smem:[#allocation44_spill]] %s4288_s0 }
 0x157   : > { %6007 = vst [vmem:[#allocation75_spill] sm:$0xff] %v4017_v44  ;;  %v4077_v44 = vadd.f32 %v1611_v4, %v3776_v17  ;;  %v456_v17 = vmul.f32 %v5924_v5, %v6009_v24  ;;  %v510_v5 = vmul.f32 %v5940_v47, %v6009_v24  ;;  %v1252_v47 = vmul.f32 %v5951_v38, %v6009_v24  ;;  %s4308_s0 = sld [smem:[#allocation8 + $0x59]] }
 0x158   : > { %6008 = vst [vmem:[#allocation76_spill] sm:$0xff] %v4020_v43  ;;  %v545_v4 = vadd.f32 %v6011_v9, %v3818_v34  ;;  %v404_v38 = vmul.f32 %v5928_v13, %v313_v37  ;;  %v6016_v43 = vld [vmem:[#allocation103_spill] sm:$0xff]  ;;  %v440_v60 = vmul.f32 %v6017_v39, %v313_v37  ;;  %v446_v34 = vmul.f32 %v6018_v59, %v313_v37 }
 0x159   : > { %v434_v7 = vmul.f32 %v6016_v43, %v313_v37  ;;  %v1279_v13 = vmul.f32 %v5954_v6, %v6009_v24  ;;  %v4158_v10 = vadd.f32 %v465_v27, %v410_v61  ;;  %v4162_v30 = vsel %vm306_vm5, 0.0, %v340_v26  ;;  %v6022_v6 = vld [vmem:[#allocation114_spill] sm:$0xff]  ;;  %v6025_v26 = vld [vmem:[#allocation117_spill] sm:$0xff] }
 0x15a   : > { %v4156_v9 = vadd.f32 %v456_v17, %v404_v38  ;;  %v4166_v43 = vadd.f32 %v474_v31, %v416_v63  ;;  %v4168_v23 = vadd.f32 %v483_v15, %v422_v20  ;;  %v4170_v59 = vadd.f32 %v492_v0, %v428_v22  ;;  %v6023_v17 = vld [vmem:[#allocation115_spill] sm:$0xff]  ;;  %v6024_v38 = vld [vmem:[#allocation116_spill] sm:$0xff]  ;;  %v6028_v0 = vld [vmem:[#allocation118_spill] sm:$0xff] }
 0x15b   : > { %v4172_v8 = vadd.f32 %v501_v54, %v434_v7  ;;  %v1165_v24 = vmul.f32 %v6022_v6, %v313_v37  ;;  %v1171_v27 = vmul.f32 %v6023_v17, %v313_v37  ;;  %v1177_v61 = vmul.f32 %v6024_v38, %v313_v37  ;;  %v6029_v7 = vld [vmem:[#allocation119_spill] sm:$0xff]  ;;  %v6030_v20 = vld [vmem:[#allocation120_spill] sm:$0xff]  ;;  %v6031_v6 = vld [vmem:[#allocation121_spill] sm:$0xff] }
 0x15c   : > { %6019 = vst [vmem:[#allocation77_spill] sm:$0xff] %v4168_v23  ;;  %v1183_v39 = vmul.f32 %v6025_v26, %v313_v37  ;;  %v4182_v31 = vadd.f32 %v510_v5, %v440_v60  ;;  %v4184_v15 = vadd.f32 %v519_v28, %v446_v34  ;;  %v1189_v63 = vmul.f32 %v6028_v0, %v313_v37  ;;  %v6039_v26 = vld [vmem:[#allocation173_spill] sm:$0xff] }
 0x15d   : > { %6020 = vst [vmem:[#allocation78_spill] sm:$0xff] %v4170_v59  ;;  %v1195_v54 = vmul.f32 %v6029_v7, %v313_v37  ;;  %v1201_v22 = vmul.f32 %v6030_v20, %v313_v37  ;;  %v1207_v17 = vmul.f32 %v6031_v6, %v313_v37  ;;  %v4192_v46 = vadd.f32 %v1216_v55, %v1165_v24  ;;  %v6040_v0 = vld [vmem:[#allocation133_spill] sm:$0xff]  ;;  %v6041_v37 = vld [vmem:[#allocation174_spill] sm:$0xff]  ;;  %v6045_v6 = vld [vmem:[#allocation176_spill] sm:$0xff]  ;;  %6092 = sst [smem:[#allocation46_spill]] %s4308_s0 }
 0x15e   : > { %6021 = vst [vmem:[#allocation79_spill] sm:$0xff] %v4172_v8  ;;  %v4194_v38 = vadd.f32 %v1225_v52, %v1171_v27  ;;  %v4198_v5 = vadd.f32 %v1234_v29, %v1177_v61  ;;  %v4200_v28 = vadd.f32 %v1243_v33, %v1183_v39  ;;  %v4202_v60 = vadd.f32 %v1252_v47, %v1189_v63  ;;  %v6042_v55 = vld [vmem:[#allocation134_spill] sm:$0xff]  ;;  %v6043_v52 = vld [vmem:[#allocation175_spill] sm:$0xff]  ;;  %v6046_v29 = vld [vmem:[#allocation136_spill] sm:$0xff]  ;;  %s4332_s0 = sld [smem:[#allocation8 + $0x6b]] }
 0x15f   : > { %6026 = vst [vmem:[#allocation80_spill] sm:$0xff] %v4182_v31  ;;  %v4204_v34 = vadd.f32 %v1261_v18, %v1195_v54  ;;  %v554_v7 = vadd.f32 %v6040_v0, %v6039_v26  ;;  %v563_v24 = vadd.f32 %v6042_v55, %v6041_v37  ;;  %v6044_v27 = vld [vmem:[#allocation135_spill] sm:$0xff]  ;;  %v581_v61 = vadd.f32 %v6046_v29, %v6045_v6  ;;  %v6047_v33 = vld [vmem:[#allocation137_spill] sm:$0xff]  ;;  %v6048_v18 = vld [vmem:[#allocation138_spill] sm:$0xff] }
 0x160   : > { %6027 = vst [vmem:[#allocation81_spill] sm:$0xff] %v4184_v15  ;;  %v572_v20 = vadd.f32 %v6044_v27, %v6043_v52  ;;  %v590_v47 = vadd.f32 %v6047_v33, %v3876_v53  ;;  %v599_v39 = vadd.f32 %v6048_v18, %v3878_v3  ;;  %v6049_v63 = vld [vmem:[#allocation82_spill] sm:$0xff]  ;;  %v6050_v26 = vld [vmem:[#allocation83_spill] sm:$0xff]  ;;  %v6051_v37 = vld [vmem:[#allocation84_spill] sm:$0xff]  ;;  %v4238_v33 = vadd.f32 %v1270_v49, %v1201_v22 }
 0x161   : > { %6032 = vst [vmem:[#allocation35_spill] sm:$0xff] %v4192_v46  ;;  %v609_v54 = vmul.f32 %v6049_v63, %v4162_v30  ;;  %v618_v0 = vmul.f32 %v6050_v26, %v4162_v30  ;;  %v627_v55 = vmul.f32 %v6051_v37, %v4162_v30  ;;  %v6052_v52 = vld [vmem:[#allocation85_spill] sm:$0xff]  ;;  %v6053_v6 = vld [vmem:[#allocation86_spill] sm:$0xff]  ;;  %v6054_v29 = vld [vmem:[#allocation87_spill] sm:$0xff]  ;;  %v4240_v18 = vadd.f32 %v1279_v13, %v1207_v17 }
 0x162   : > { %6033 = vst [vmem:[#allocation131_spill] sm:$0xff] %v4194_v38  ;;  %v636_v27 = vmul.f32 %v6052_v52, %v4162_v30  ;;  %v645_v53 = vmul.f32 %v6053_v6, %v4162_v30  ;;  %v654_v3 = vmul.f32 %v6054_v29, %v4162_v30  ;;  %v6061_v6 = vld [vmem:[#allocation88_spill] sm:$0xff]  ;;  %v6062_v29 = vld [vmem:[#allocation89_spill] sm:$0xff] }
 0x163   : > { %6034 = vst [vmem:[#allocation132_spill] sm:$0xff] %v4198_v5  ;;  %v4242_v56 = vadd.f32 %v609_v54, %v536_v40  ;;  %v4244_v50 = vadd.f32 %v618_v0, %v545_v4  ;;  %v4248_v58 = vadd.f32 %v627_v55, %v554_v7  ;;  %v663_v52 = vmul.f32 %v6061_v6, %v4162_v30  ;;  %v6065_v4 = vld [vmem:[#allocation139_spill] sm:$0xff]  ;;  %v6066_v22 = vld [vmem:[#allocation140_spill] sm:$0xff]  ;;  %v6069_v0 = vld [vmem:[#allocation162_spill] sm:$0xff] }
 0x164   : > { %6035 = vst [vmem:[#allocation99_spill] sm:$0xff] %v4200_v28  ;;  %v4250_v16 = vadd.f32 %v636_v27, %v563_v24  ;;  %v672_v37 = vmul.f32 %v6062_v29, %v4162_v30  ;;  %v4258_v49 = vadd.f32 %v645_v53, %v572_v20  ;;  %v4260_v40 = vadd.f32 %v654_v3, %v581_v61  ;;  %v6067_v7 = vld [vmem:[#allocation180_spill] sm:$0xff]  ;;  %v6068_v24 = vld [vmem:[#allocation141_spill] sm:$0xff]  ;;  %v6070_v55 = vld [vmem:[#allocation142_spill] sm:$0xff] }
 0x165   : > { %6036 = vst [vmem:[#allocation100_spill] sm:$0xff] %v4202_v60  ;;  %v1295_v13 = vadd.f32 %v6065_v4, %v3886_v19  ;;  %v1304_v17 = vadd.f32 %v6066_v22, %v3888_v62  ;;  %v1313_v54 = vadd.f32 %v6068_v24, %v6067_v7  ;;  %v1322_v27 = vadd.f32 %v6070_v55, %v6069_v0  ;;  %v6073_v53 = vld [vmem:[#allocation181_spill] sm:$0xff]  ;;  %v6074_v61 = vld [vmem:[#allocation144_spill] sm:$0xff]  ;;  %v6076_v19 = vld [vmem:[#allocation182_spill] sm:$0xff] }
 0x166   : > { %6037 = vst [vmem:[#allocation101_spill] sm:$0xff] %v4204_v34  ;;  %v1340_v3 = vadd.f32 %v6074_v61, %v6073_v53  ;;  %v6077_v4 = vld [vmem:[#allocation145_spill] sm:$0xff]  ;;  %v6078_v62 = vld [vmem:[#allocation184_spill] sm:$0xff]  ;;  %v6079_v22 = vld [vmem:[#allocation146_spill] sm:$0xff] }
 0x167   : > { %6055 = vst [vmem:[#allocation102_spill] sm:$0xff] %v4238_v33  ;;  %v6080_v7 = vld [vmem:[#allocation90_spill] sm:$0xff]  ;;  %v6081_v0 = vld [vmem:[#allocation91_spill] sm:$0xff]  ;;  %v6084_v53 = vld [vmem:[#allocation93_spill] sm:$0xff] }
 0x168   : > { %6056 = vst [vmem:[#allocation103_spill] sm:$0xff] %v4240_v18  ;;  %v1367_v24 = vmul.f32 %v6080_v7, %v4162_v30  ;;  %v1376_v55 = vmul.f32 %v6081_v0, %v4162_v30  ;;  %v1394_v61 = vmul.f32 %v6084_v53, %v4162_v30 }
 0x169   : > { %6057 = vst [vmem:[#allocation104_spill] sm:$0xff] %v4242_v56  ;;  %v4302_v56 = vadd.f32 %v672_v37, %v599_v39 }
 0x16a   : > { %6058 = vst [vmem:[#allocation105_spill] sm:$0xff] %v4244_v50  ;;  %v4300_v50 = vadd.f32 %v663_v52, %v590_v47  ;;  %v4304_v0 = vadd.f32 %v1367_v24, %v1295_v13  ;;  %v6096_v47 = vld [vmem:[#allocation97_spill] sm:$0xff]  ;;  %v4327_v13 = vstv %s3981_s23  ;;  %s4356_s23 = sld [smem:[#allocation8 + $0x7d]] }
 0x16b   : > { %6059 = vst [vmem:[#allocation114_spill] sm:$0xff] %v4248_v58  ;;  %v6072_v58 = vld [vmem:[#allocation143_spill] sm:$0xff]  ;;  %v4318_v39 = vmul.f32 %v6096_v47, %v4162_v30 }
 0x16c   : > { %6060 = vst [vmem:[#allocation115_spill] sm:$0xff] %v4250_v16  ;;  %v6071_v16 = vld [vmem:[#allocation163_spill] sm:$0xff] }
 0x16d   : > { %6063 = vst [vmem:[#allocation116_spill] sm:$0xff] %v4258_v49  ;;  %v1331_v20 = vadd.f32 %v6072_v58, %v6071_v16  ;;  %v4282_v49 = vadd.f32 %v6079_v22, %v6078_v62  ;;  %v6083_v16 = vld [vmem:[#allocation92_spill] sm:$0xff]  ;;  %v6086_v62 = vld [vmem:[#allocation95_spill] sm:$0xff] }
 0x16e   : > { %6064 = vst [vmem:[#allocation117_spill] sm:$0xff] %v4260_v40  ;;  %v1349_v40 = vadd.f32 %v6077_v4, %v6076_v19  ;;  %v1385_v58 = vmul.f32 %v6083_v16, %v4162_v30  ;;  %v6085_v19 = vld [vmem:[#allocation94_spill] sm:$0xff]  ;;  %v1412_v22 = vmul.f32 %v6086_v62, %v4162_v30  ;;  %v4306_v16 = vadd.f32 %v1376_v55, %v1304_v17  ;;  %v6095_v62 = vld [vmem:[#allocation96_spill] sm:$0xff] }
 0x16f   : > { %v1403_v4 = vmul.f32 %v6085_v19, %v4162_v30  ;;  %6088 = vst [vmem:[#allocation118_spill] sm:$0xff] %v4300_v50  ;;  %v4312_v19 = vadd.f32 %v1394_v61, %v1322_v27  ;;  %v1421_v7 = vmul.f32 %v6095_v62, %v4162_v30  ;;  %v4330_v17 = vstv %s3995_s25  ;;  %s4367_s25 = sld [smem:[#allocation8 + $0x86]] }
 0x170   : > { %6089 = vst [vmem:[#allocation119_spill] sm:$0xff] %v4302_v56  ;;  %v4310_v53 = vadd.f32 %v1385_v58, %v1313_v54  ;;  %v4324_v52 = vadd.f32 %v1412_v22, %v1340_v3  ;;  %v6102_v54 = vld [vmem:[#allocation36_spill] sm:$0xff]  ;;  %v4339_v30 = vstv %s4008_s2  ;;  %v4351_v58 = vstv %s4024_s12  ;;  %s4381_s2 = sld [smem:[#allocation8 + $0x8f]] }
 0x171   : > { %6090 = vst [vmem:[#allocation120_spill] sm:$0xff] %v4304_v0  ;;  %v4322_v37 = vadd.f32 %v1403_v4, %v1331_v20  ;;  %v914_v27 = vmul.f32 %v4327_v13, %v6102_v54  ;;  %v923_v24 = vmul.f32 %v4330_v17, %v6102_v54  ;;  %v4342_v20 = vstv %s4014_s28  ;;  %s4393_s28 = sld [smem:[#allocation9 + $0x8]] }
 0x172   : > { %6091 = vst [vmem:[#allocation121_spill] sm:$0xff] %v4306_v16  ;;  %v932_v3 = vmul.f32 %v4339_v30, %v6102_v54  ;;  %v941_v55 = vmul.f32 %v4342_v20, %v6102_v54  ;;  %v4354_v61 = vstv %s4034_s14  ;;  %v4358_v4 = vadd.f32 %v1421_v7, %v1349_v40  ;;  %s4407_s12 = sld [smem:[#allocation9 + $0x9]] }
 0x173   : > { %6093 = vst [vmem:[#allocation173_spill] sm:$0xff] %v4310_v53  ;;  %v4361_v22 = vadd.f32 %v914_v27, %v4027_v57  ;;  %v4376_v7 = vstv %s4048_s29  ;;  %v4379_v57 = vstv %s4054_s19  ;;  %s4421_s14 = sld [smem:[#allocation9 + $0xa]]  ;;  %v4470_v0 = vstv %s4236_s5 }
 0x174   : > { %6094 = vst [vmem:[#allocation133_spill] sm:$0xff] %v4312_v19  ;;  %v4373_v40 = vadd.f32 %v932_v3, %v4037_v25  ;;  %v4384_v27 = vadd.f32 %v941_v55, %v4040_v21  ;;  %v968_v25 = vmul.f32 %v4376_v7, %v6102_v54  ;;  %v4399_v21 = vstv %s4060_s15  ;;  %s4435_s29 = sld [smem:[#allocation9 + $0xb]] }
 0x175   : > { %6098 = vst [vmem:[#allocation174_spill] sm:$0xff] %v4322_v37  ;;  %s4449_s19 = sld [smem:[#allocation9 + $0xc]]  ;;  %v4458_v37 = vstv %s4216_s6  ;;  %v4461_v19 = vstv %s4226_s21  ;;  %v4473_v56 = vstv %s4246_s9  ;;  %v1686_v50 = vmul.f32 %v4470_v0, %v6102_v54 }
 0x176   : > { %6099 = vst [vmem:[#allocation134_spill] sm:$0xff] %v4324_v52  ;;  %v4410_v3 = vadd.f32 %v968_v25, %v4063_v32  ;;  %v4433_v32 = vstv %s4146_s17  ;;  %v4441_v25 = vstv %s4164_s30  ;;  %s6123_s15 = sld [smem:[#allocation42_spill]]  ;;  %v4455_v52 = vstv %s4196_s4 }
 0x177   : > { %6100 = vst [vmem:[#allocation175_spill] sm:$0xff] %v4327_v13  ;;  %v4447_v13 = vstv %s4180_s1  ;;  %v1668_v53 = vmul.f32 %v4458_v37, %v6102_v54  ;;  %v1677_v16 = vmul.f32 %v4461_v19, %v6102_v54  ;;  %v1695_v47 = vmul.f32 %v4473_v56, %v6102_v54  ;;  %s6136_s17 = sld [smem:[#allocation47_spill]] }
 0x178   : > { %6101 = vst [vmem:[#allocation135_spill] sm:$0xff] %v4330_v17  ;;  %v950_v17 = vmul.f32 %v4351_v58, %v6102_v54  ;;  %v4482_v62 = vstv %s4256_s7  ;;  %v4503_v18 = vadd.f32 %v1686_v50, %v4077_v44  ;;  %v4555_v26 = vstv %s4393_s28 }
 0x179   : > { %6103 = vst [vmem:[#allocation176_spill] sm:$0xff] %v4339_v30  ;;  %v4370_v30 = vadd.f32 %v923_v24, %v4030_v2  ;;  %v977_v2 = vmul.f32 %v4379_v57, %v6102_v54  ;;  %v4493_v29 = vadd.f32 %v1668_v53, %v4069_v48  ;;  %v4500_v6 = vadd.f32 %v1677_v16, %v4072_v35 }
 0x17a   : > { %6104 = vst [vmem:[#allocation136_spill] sm:$0xff] %v4342_v20  ;;  %v959_v20 = vmul.f32 %v4354_v61, %v6102_v54  ;;  %v4512_v53 = vadd.f32 %v1695_v47, %v4080_v14  ;;  %v4558_v63 = vstv %s4407_s12 }
 0x17b   : > { %6105 = vst [vmem:[#allocation137_spill] sm:$0xff] %v4351_v58  ;;  %v4413_v55 = vadd.f32 %v977_v2, %v4066_v42  ;;  %v4430_v58 = vstv %s4140_s16  ;;  %v4438_v42 = vstv %s4152_s18  ;;  %v4444_v2 = vstv %s4174_s22  ;;  %s4487_s16 = sld [smem:[#allocation9 + $0xf]] }
 0x17c   : > { %6106 = vst [vmem:[#allocation138_spill] sm:$0xff] %v4354_v61  ;;  %v4387_v61 = vadd.f32 %v950_v17, %v4043_v12  ;;  %v4396_v24 = vadd.f32 %v959_v20, %v4046_v11  ;;  %v4402_v12 = vstv %s4074_s10  ;;  %v4405_v17 = vstv %s4088_s11  ;;  %s4463_s10 = sld [smem:[#allocation9 + $0xd]] }
 0x17d   : > { %6107 = vst [vmem:[#allocation139_spill] sm:$0xff] %v4358_v4  ;;  %v4416_v11 = vstv %s4100_s24  ;;  %v4419_v20 = vstv %s4110_s20  ;;  %v4452_v4 = vstv %s4188_s27  ;;  %s6128_s11 = sld [smem:[#allocation43_spill]] }
 0x17e   : > { %6108 = vst [vmem:[#allocation140_spill] sm:$0xff] %v4376_v7  ;;  %v4427_v7 = vstv %s4130_s3  ;;  %s6129_s24 = sld [smem:[#allocation44_spill]] }
 0x17f   : > { %6109 = vst [vmem:[#allocation180_spill] sm:$0xff] %v4379_v57  ;;  %v4424_v57 = vstv %s4120_s13  ;;  %s4475_s20 = sld [smem:[#allocation9 + $0xe]] }
 0x180   : > { %6110 = vst [vmem:[#allocation141_spill] sm:$0xff] %v4399_v21  ;;  %s6133_s13 = sld [smem:[#allocation45_spill]] }
 0x181   : > { %6111 = vst [vmem:[#allocation162_spill] sm:$0xff] %v4402_v12  ;;  %s6135_s3 = sld [smem:[#allocation46_spill]]  ;;  %v4576_v60 = vstv %s4487_s16 }
 0x182   : > { %6112 = vst [vmem:[#allocation142_spill] sm:$0xff] %v4405_v17  ;;  %s6200_s22 = sld [smem:[#allocation33_spill]] }
 0x183   : > { %6113 = vst [vmem:[#allocation163_spill] sm:$0xff] %v4416_v11  ;;  %v4506_v33 = vstv %s6128_s11 }
 0x184   : > { %6114 = vst [vmem:[#allocation143_spill] sm:$0xff] %v4419_v20  ;;  %v4509_v48 = vstv %s6129_s24  ;;  %v1722_v35 = vmul.f32 %v4506_v33, %v6102_v54 }
 0x185   : > { %6115 = vst [vmem:[#allocation181_spill] sm:$0xff] %v4424_v57  ;;  %v1731_v44 = vmul.f32 %v4509_v48, %v6102_v54  ;;  %v4573_v34 = vstv %s4475_s20 }
 0x186   : > { %6116 = vst [vmem:[#allocation144_spill] sm:$0xff] %v4427_v7  ;;  %v4525_v16 = vstv %s6133_s13 }
 0x187   : > { %6117 = vst [vmem:[#allocation182_spill] sm:$0xff] %v4430_v58  ;;  %v4528_v14 = vstv %s6135_s3  ;;  %v4537_v47 = vadd.f32 %v1731_v44, %v4094_v51  ;;  %v4564_v51 = vstv %s4435_s29  ;;  %v4570_v44 = vstv %s4463_s10 }
 0x188   : > { %6118 = vst [vmem:[#allocation145_spill] sm:$0xff] %v4433_v32 }
 0x189   : > { %6119 = vst [vmem:[#allocation184_spill] sm:$0xff] %v4438_v42 }
 0x18a   : > { %6120 = vst [vmem:[#allocation146_spill] sm:$0xff] %v4441_v25 }
 0x18b   : > { %6121 = vst [vmem:[#allocation36_spill] sm:$0xff] %v4444_v2 }
 0x18c   : > { %6122 = vst [vmem:[#allocation191_spill] sm:$0xff] %v4447_v13 }
 0x18d   : > { %6124 = vst [vmem:[#allocation192_spill] sm:$0xff] %v4452_v4 }
 0x18e   : > { %6125 = vst [vmem:[#allocation193_spill] sm:$0xff] %v4455_v52 }
 0x18f   : > { %6126 = vst [vmem:[#allocation194_spill] sm:$0xff] %v4458_v37  ;;  %v4485_v37 = vstv %s4266_s8  ;;  %s6146_s8 = sld [smem:[#allocation18_spill]] }
 0x190   : > { %6127 = vst [vmem:[#allocation195_spill] sm:$0xff] %v4461_v19  ;;  %v4490_v19 = vstv %s6123_s15 }
 0x191   : > { %6130 = vst [vmem:[#allocation196_spill] sm:$0xff] %v4470_v0  ;;  %v1704_v0 = vmul.f32 %v4482_v62, %v6102_v54 }
 0x192   : > { %6131 = vst [vmem:[#allocation197_spill] sm:$0xff] %v4473_v56  ;;  %v1713_v56 = vmul.f32 %v4485_v37, %v6102_v54  ;;  %v4540_v54 = vstv %s4332_s0 }
 0x193   : > { %6132 = vst [vmem:[#allocation198_spill] sm:$0xff] %v4482_v62  ;;  %v4552_v62 = vstv %s4381_s2 }
 0x194   : > { %6134 = vst [vmem:[#allocation199_spill] sm:$0xff] %v4485_v37  ;;  %v4515_v37 = vadd.f32 %v1704_v0, %v4083_v36  ;;  %v4522_v50 = vadd.f32 %v1713_v56, %v4086_v45  ;;  %v4531_v36 = vstv %s6136_s17  ;;  %v4534_v0 = vadd.f32 %v1722_v35, %v4091_v41  ;;  %v381_v45 = vpop.permute.xlu2 %380 }
 0x195   : > { %6137 = vst [vmem:[#allocation200_spill] sm:$0xff] %v4490_v19  ;;  %v4543_v56 = vstv %s4344_s26  ;;  %v4561_v41 = vstv %s4421_s14  ;;  %v4567_v35 = vstv %s4449_s19  ;;  %v384_v28 = vsel %vm316_vm4, 0.0, %v381_v45  ;;  %s6157_s26 = sand.u32 1, %s6146_s8  }
 0x196   : > { %6138 = vst [vmem:[#allocation201_spill] sm:$0xff] %v4506_v33  ;;  %v4549_v33 = vstv %s4367_s25  ;;  %v990_v5 = vmul.f32 %v4399_v21, %v384_v28  ;;  %v999_v38 = vmul.f32 %v4402_v12, %v384_v28  ;;  %v1008_v46 = vmul.f32 %v4405_v17, %v384_v28  ;;  %s2298_s18 = smul.u32 384, %s6157_s26  ;;  %s6395_s1 = smov %s6157_s26 }
 0x197   : > { %6139 = vst [vmem:[#allocation202_spill] sm:$0xff] %v4509_v48  ;;  %v4546_v48 = vstv %s4356_s23  ;;  %v1017_v15 = vmul.f32 %v4416_v11, %v384_v28  ;;  %v1026_v31 = vmul.f32 %v4419_v20, %v384_v28  ;;  %v1035_v8 = vmul.f32 %v4424_v57, %v384_v28  ;;  %s1915_s27 = scalar_lea.sflag [#allocation5], %s6395_s1 }
 0x198   : > { %6140 = vst [vmem:[#allocation203_spill] sm:$0xff] %v4525_v16  ;;  %v1044_v59 = vmul.f32 %v4427_v7, %v384_v28  ;;  %v1053_v23 = vmul.f32 %v4430_v58, %v384_v28  ;;  %v993_v45 = vadd.f32 %v990_v5, %v4361_v22  ;;  %v1002_v21 = vadd.f32 %v999_v38, %v4370_v30  ;;  %s4606_s30 = scalar_lea.vmem [#allocation10], %s2298_s18 }
 0x199   : > { %6141 = vst [vmem:[#allocation204_spill] sm:$0xff] %v4528_v14  ;;  %v1011_v12 = vadd.f32 %v1008_v46, %v4373_v40  ;;  %v1020_v17 = vadd.f32 %v1017_v15, %v4384_v27  ;;  %v1029_v11 = vadd.f32 %v1026_v31, %v4387_v61  ;;  %v1038_v1 = vadd.f32 %v1035_v8, %v4396_v24 }
 0x19a   : > { %6142 = vst [vmem:[#allocation205_spill] sm:$0xff] %v4531_v36  ;;  %v1047_v20 = vadd.f32 %v1044_v59, %v4410_v3  ;;  %v1056_v57 = vadd.f32 %v1053_v23, %v4413_v55  ;;  %v1061_v7 = vadd.f32 %v4433_v32, %v993_v45  ;;  %v1073_v58 = vadd.f32 %v4438_v42, %v1002_v21  ;;  %v6233_v32 = vld [vmem:[#allocation117_spill] sm:$0xff] }
 0x19b   : > { %6143 = vst [vmem:[#allocation206_spill] sm:$0xff] %v4540_v54  ;;  %v1086_v5 = vadd.f32 %v4441_v25, %v1011_v12  ;;  %v1099_v38 = vadd.f32 %v4444_v2, %v1020_v17  ;;  %v1112_v46 = vadd.f32 %v4447_v13, %v1029_v11  ;;  %v1125_v15 = vadd.f32 %v4452_v4, %v1038_v1  ;;  %v6231_v13 = vld [vmem:[#allocation115_spill] sm:$0xff]  ;;  %v6232_v25 = vld [vmem:[#allocation116_spill] sm:$0xff] }
 0x19c   : > { %6144 = vst [vmem:[#allocation207_spill] sm:$0xff] %v4543_v56  ;;  %v1138_v31 = vadd.f32 %v4455_v52, %v1047_v20  ;;  %v1151_v8 = vadd.f32 %v4490_v19, %v1056_v57  ;;  %v1064_v30 = vmax.f32 %v1061_v7, 0.0  ;;  %v1076_v59 = vmax.f32 %v1073_v58, 0.0  ;;  %v6230_v52 = vld [vmem:[#allocation114_spill] sm:$0xff] }
 0x19d   : > { %6145 = vst [vmem:[#allocation208_spill] sm:$0xff] %v4546_v48  ;;  %v1089_v61 = vmax.f32 %v1086_v5, 0.0  ;;  %v1102_v23 = vmax.f32 %v1099_v38, 0.0  ;;  %v1115_v22 = vmax.f32 %v1112_v46, 0.0  ;;  %v1128_v40 = vmax.f32 %v1125_v15, 0.0 }
 0x19e   : > { %6147 = vst [vmem:[#allocation209_spill] sm:$0xff] %v4549_v33  ;;  %v1141_v27 = vmax.f32 %v1138_v31, 0.0  ;;  %v1154_v24 = vmax.f32 %v1151_v8, 0.0  ;;  %v1743_v1 = vmul.f32 %v4525_v16, %v384_v28  ;;  %v1752_v21 = vmul.f32 %v4528_v14, %v384_v28  ;;  %v6229_v16 = vld [vmem:[#allocation105_spill] sm:$0xff] }
 0x19f   : > { %6148 = vst [vmem:[#allocation210_spill] sm:$0xff] %v4552_v62  ;;  %v1761_v7 = vmul.f32 %v4531_v36, %v384_v28  ;;  %v1770_v58 = vmul.f32 %v4540_v54, %v384_v28  ;;  %v1779_v57 = vmul.f32 %v4543_v56, %v384_v28  ;;  %v1788_v12 = vmul.f32 %v4546_v48, %v384_v28  ;;  %v6227_v48 = vld [vmem:[#allocation190_spill] sm:$0xff]  ;;  %v6228_v36 = vld [vmem:[#allocation104_spill] sm:$0xff] }
 0x1a0   : > { %6149 = vst [vmem:[#allocation211_spill] sm:$0xff] %v4555_v26  ;;  %v1797_v17 = vmul.f32 %v4549_v33, %v384_v28  ;;  %v1806_v3 = vmul.f32 %v4552_v62, %v384_v28  ;;  %v1746_v55 = vadd.f32 %v1743_v1, %v4493_v29  ;;  %v1755_v11 = vadd.f32 %v1752_v21, %v4500_v6  ;;  %v6226_v62 = vld [vmem:[#allocation189_spill] sm:$0xff] }
 0x1a1   : > { %6150 = vst [vmem:[#allocation212_spill] sm:$0xff] %v4558_v63  ;;  %v1764_v20 = vadd.f32 %v1761_v7, %v4503_v18  ;;  %v1773_v45 = vadd.f32 %v1770_v58, %v4512_v53  ;;  %v1782_v5 = vadd.f32 %v1779_v57, %v4515_v37  ;;  %v1791_v38 = vadd.f32 %v1788_v12, %v4522_v50  ;;  %v338_v58 = vpop.permute.xlu0 %337  ;;  %v6162_v57 = vld [vmem:[#allocation106_spill] sm:$0xff] }
 0x1a2   : > { %6151 = vst [vmem:[#allocation213_spill] sm:$0xff] %v4561_v41  ;;  %v1800_v46 = vadd.f32 %v1797_v17, %v4534_v0  ;;  %v1809_v28 = vadd.f32 %v1806_v3, %v4537_v47  ;;  %v1815_v29 = vadd.f32 %v4555_v26, %v1746_v55  ;;  %v1828_v6 = vadd.f32 %v4558_v63, %v1755_v11  ;;  %v6163_v17 = vld [vmem:[#allocation78_spill] sm:$0xff]  ;;  %v6164_v3 = vld [vmem:[#allocation107_spill] sm:$0xff] }
 0x1a3   : > { %6152 = vst [vmem:[#allocation214_spill] sm:$0xff] %v4564_v51  ;;  %v1841_v18 = vadd.f32 %v4561_v41, %v1764_v20  ;;  %v1854_v53 = vadd.f32 %v4564_v51, %v1773_v45  ;;  %v1867_v37 = vadd.f32 %v4567_v35, %v1782_v5  ;;  %v1880_v50 = vadd.f32 %v4570_v44, %v1791_v38  ;;  %v6166_v11 = vld [vmem:[#allocation98_spill] sm:$0xff]  ;;  %v6167_v45 = vld [vmem:[#allocation80_spill] sm:$0xff]  ;;  %v6224_v51 = vld [vmem:[#allocation183_spill] sm:$0xff] }
 0x1a4   : > { %6153 = vst [vmem:[#allocation215_spill] sm:$0xff] %v4567_v35  ;;  %v1893_v0 = vadd.f32 %v4573_v34, %v1800_v46  ;;  %v1906_v47 = vadd.f32 %v4576_v60, %v1809_v28  ;;  %v4640_v15 = vadd.f32 %v4318_v39, %v4282_v49  ;;  %v1818_v31 = vmax.f32 %v1815_v29, 0.0  ;;  %v6159_v49 = vld [vmem:[#allocation186_spill] sm:$0xff]  ;;  %v6168_v5 = vld [vmem:[#allocation108_spill] sm:$0xff]  ;;  %v6170_v46 = vld [vmem:[#allocation109_spill] sm:$0xff] }
 0x1a5   : > { %6154 = vst [vmem:[#allocation216_spill] sm:$0xff] %v4570_v44  ;;  %v1831_v8 = vmax.f32 %v1828_v6, 0.0  ;;  %v544_v39 = vadd.f32 %v6159_v49, %v4158_v10  ;;  %v571_v55 = vadd.f32 %v6164_v3, %v6163_v17  ;;  %v589_v38 = vadd.f32 %v6168_v5, %v6167_v45  ;;  %v6169_v10 = vld [vmem:[#allocation81_spill] sm:$0xff]  ;;  %v6172_v29 = vld [vmem:[#allocation110_spill] sm:$0xff]  ;;  %v6179_v49 = vld [vmem:[#allocation100_spill] sm:$0xff] }
 0x1a6   : > { %6155 = vst [vmem:[#allocation217_spill] sm:$0xff] %v4573_v34  ;;  %v1896_v1 = vmax.f32 %v1893_v0, 0.0  ;;  %v1909_v21 = vmax.f32 %v1906_v47, 0.0  ;;  %v6171_v28 = vld [vmem:[#allocation35_spill] sm:$0xff]  ;;  %v6176_v0 = vld [vmem:[#allocation112_spill] sm:$0xff]  ;;  %v6185_v5 = vld [vmem:[#allocation83_spill] sm:$0xff] }
 0x1a7   : > { %6156 = vst [vmem:[#allocation218_spill] sm:$0xff] %v4576_v60  ;;  %v1294_v6 = vadd.f32 %v6172_v29, %v6171_v28  ;;  %v6187_v28 = vld [vmem:[#allocation85_spill] sm:$0xff]  ;;  %v6222_v60 = vld [vmem:[#allocation178_spill] sm:$0xff]  ;;  %v6223_v44 = vld [vmem:[#allocation179_spill] sm:$0xff] }
 0x1a8   : > { %1067 = vst [vmem:[%s4606_s30 + $0x10] sm:$0xff] %v1064_v30  ;;  %v1844_v30 = vmax.f32 %v1841_v18, 0.0  ;;  %v6173_v18 = vld [vmem:[#allocation131_spill] sm:$0xff] }
 0x1a9   : > { %2163 = vst [vmem:[%s4606_s30 + $0x28] sm:$0xff] %v1076_v59  ;;  %v1857_v59 = vmax.f32 %v1854_v53, 0.0  ;;  %v6174_v53 = vld [vmem:[#allocation111_spill] sm:$0xff] }
 0x1aa   : > { %2167 = vst [vmem:[%s4606_s30 + $0x40] sm:$0xff] %v1089_v61  ;;  %v1870_v61 = vmax.f32 %v1867_v37, 0.0  ;;  %v1303_v37 = vadd.f32 %v6174_v53, %v6173_v18  ;;  %v6188_v18 = vld [vmem:[#allocation102_spill] sm:$0xff]  ;;  %v6189_v53 = vld [vmem:[#allocation124_spill] sm:$0xff]  ;;  %v6225_v63 = vld [vmem:[#allocation187_spill] sm:$0xff] }
 0x1ab   : > { %2171 = vst [vmem:[%s4606_s30 + $0x58] sm:$0xff] %v1102_v23  ;;  %v1883_v23 = vmax.f32 %v1880_v50, 0.0  ;;  %v6175_v50 = vld [vmem:[#allocation132_spill] sm:$0xff]  ;;  %v6237_v3 = vld [vmem:[#allocation167_spill] sm:$0xff] }
 0x1ac   : > { %2175 = vst [vmem:[%s4606_s30 + $0x70] sm:$0xff] %v1115_v22  ;;  %v6158_v22 = vld [vmem:[#allocation185_spill] sm:$0xff]  ;;  %v1312_v47 = vadd.f32 %v6176_v0, %v6175_v50  ;;  %v1348_v50 = vadd.f32 %v6189_v53, %v6188_v18  ;;  %v6190_v0 = vld [vmem:[#allocation103_spill] sm:$0xff] }
 0x1ad   : > { %2179 = vst [vmem:[%s4606_s30 + $0x88] sm:$0xff] %v1128_v40  ;;  %v535_v40 = vadd.f32 %v6158_v22, %v4156_v9  ;;  %v6165_v9 = vld [vmem:[#allocation79_spill] sm:$0xff] }
 0x1ae   : > { %2183 = vst [vmem:[%s4606_s30 + $0xa0] sm:$0xff] %v1141_v27  ;;  %v6160_v27 = vld [vmem:[#allocation34_spill] sm:$0xff]  ;;  %v580_v20 = vadd.f32 %v6166_v11, %v6165_v9  ;;  %v343_v9 = vsel %vm306_vm5, 0.0, %v338_v58  ;;  %v6184_v11 = vld [vmem:[#allocation82_spill] sm:$0xff]  ;;  %v6193_v58 = vld [vmem:[#allocation87_spill] sm:$0xff] }
 0x1af   : > { %2187 = vst [vmem:[%s4606_s30 + $0xb8] sm:$0xff] %v1154_v24  ;;  %v553_v7 = vadd.f32 %v6160_v27, %v4166_v43  ;;  %v6161_v24 = vld [vmem:[#allocation77_spill] sm:$0xff]  ;;  %v598_v43 = vadd.f32 %v6170_v46, %v6169_v10  ;;  %v6180_v27 = vld [vmem:[#allocation122_spill] sm:$0xff]  ;;  %v608_v45 = vmul.f32 %v6184_v11, %v343_v9  ;;  %v617_v10 = vmul.f32 %v6185_v5, %v343_v9  ;;  %v6186_v46 = vld [vmem:[#allocation84_spill] sm:$0xff] }
 0x1b0   : > { %2263 = vst [vmem:[%s4606_s30 + $0xd0] sm:$0xff] %v1818_v31  ;;  %v562_v12 = vadd.f32 %v6162_v57, %v6161_v24  ;;  %v6177_v31 = vld [vmem:[#allocation99_spill] sm:$0xff]  ;;  %v6181_v24 = vld [vmem:[#allocation101_spill] sm:$0xff]  ;;  %v635_v29 = vmul.f32 %v6187_v28, %v343_v9  ;;  %v6194_v11 = vld [vmem:[#allocation88_spill] sm:$0xff] }
 0x1b1   : > { %2267 = vst [vmem:[%s4606_s30 + $0xe8] sm:$0xff] %v1831_v8  ;;  %v6178_v8 = vld [vmem:[#allocation113_spill] sm:$0xff]  ;;  %v6182_v57 = vld [vmem:[#allocation123_spill] sm:$0xff]  ;;  %v662_v5 = vmul.f32 %v6194_v11, %v343_v9  ;;  %v6201_v11 = vld [vmem:[#allocation94_spill] sm:$0xff] }
 0x1b2   : > { %2271 = vst [vmem:[%s4606_s30 + $0x100] sm:$0xff] %v1844_v30  ;;  %v1321_v22 = vadd.f32 %v6178_v8, %v6177_v31  ;;  %v1330_v30 = vadd.f32 %v6180_v27, %v6179_v49  ;;  %v1339_v17 = vadd.f32 %v6182_v57, %v6181_v24  ;;  %v6191_v31 = vld [vmem:[#allocation125_spill] sm:$0xff]  ;;  %v6192_v49 = vld [vmem:[#allocation86_spill] sm:$0xff]  ;;  %v653_v24 = vmul.f32 %v6193_v58, %v343_v9 }
 0x1b3   : > { %2275 = vst [vmem:[%s4606_s30 + $0x118] sm:$0xff] %v1857_v59  ;;  %v626_v59 = vmul.f32 %v6186_v46, %v343_v9  ;;  %v1357_v8 = vadd.f32 %v6191_v31, %v6190_v0  ;;  %v644_v27 = vmul.f32 %v6192_v49, %v343_v9  ;;  %v4693_v57 = vadd.f32 %v617_v10, %v544_v39  ;;  %v6195_v46 = vld [vmem:[#allocation89_spill] sm:$0xff]  ;;  %v6196_v31 = vld [vmem:[#allocation90_spill] sm:$0xff] }
 0x1b4   : > { %2279 = vst [vmem:[%s4606_s30 + $0x130] sm:$0xff] %v1870_v61  ;;  %v4691_v61 = vadd.f32 %v608_v45, %v535_v40  ;;  %v671_v28 = vmul.f32 %v6195_v46, %v343_v9  ;;  %v4700_v18 = vadd.f32 %v635_v29, %v562_v12  ;;  %v4704_v0 = vadd.f32 %v653_v24, %v580_v20  ;;  %v6198_v45 = vld [vmem:[#allocation92_spill] sm:$0xff]  ;;  %v6199_v10 = vld [vmem:[#allocation93_spill] sm:$0xff] }
 0x1b5   : > { %2283 = vst [vmem:[%s4606_s30 + $0x148] sm:$0xff] %v1883_v23  ;;  %v4698_v23 = vadd.f32 %v626_v59, %v553_v7  ;;  %v4702_v53 = vadd.f32 %v644_v27, %v571_v55  ;;  %v1366_v49 = vmul.f32 %v6196_v31, %v343_v9  ;;  %v1384_v39 = vmul.f32 %v6198_v45, %v343_v9  ;;  %v6203_v59 = vld [vmem:[#allocation96_spill] sm:$0xff]  ;;  %v6204_v29 = vld [vmem:[#allocation97_spill] sm:$0xff] }
 0x1b6   : > { %2287 = vst [vmem:[%s4606_s30 + $0x160] sm:$0xff] %v1896_v1  ;;  %v6197_v1 = vld [vmem:[#allocation91_spill] sm:$0xff]  ;;  %v1393_v58 = vmul.f32 %v6199_v10, %v343_v9  ;;  %v1402_v46 = vmul.f32 %v6201_v11, %v343_v9  ;;  %v1420_v12 = vmul.f32 %v6203_v59, %v343_v9  ;;  %v1429_v55 = vmul.f32 %v6204_v29, %v343_v9  ;;  %v6221_v29 = vld [vmem:[#allocation177_spill] sm:$0xff] }
 0x1b7   : > { %2291 = vst [vmem:[%s4606_s30 + $0x178] sm:$0xff] %v1909_v21  ;;  %v1375_v40 = vmul.f32 %v6197_v1, %v343_v9  ;;  %v6202_v21 = vld [vmem:[#allocation95_spill] sm:$0xff]  ;;  %v4714_v27 = vadd.f32 %v662_v5, %v589_v38  ;;  %v4716_v20 = vadd.f32 %v671_v28, %v598_v43  ;;  %v4718_v24 = vadd.f32 %v1366_v49, %v1294_v6  ;;  %v2440_v38 = vld [vmem:[%s6200_s22 + $0x8] sm:$0xff]  ;;  %v6214_v28 = vld [vmem:[#allocation152_spill] sm:$0xff] }
 0x1b8   : > { %v1411_v7 = vmul.f32 %v6202_v21, %v343_v9  ;;  %v4722_v1 = vadd.f32 %v1384_v39, %v1312_v47  ;;  %v4724_v45 = vadd.f32 %v1393_v58, %v1321_v22  ;;  %v4726_v10 = vadd.f32 %v1402_v46, %v1330_v30  ;;  %v6212_v9 = vld [vmem:[#allocation150_spill] sm:$0xff]  ;;  %v6213_v5 = vld [vmem:[#allocation151_spill] sm:$0xff]  ;;  %v6215_v49 = vld [vmem:[#allocation153_spill] sm:$0xff]  ;;  %v349_v58 = vpop.permute.xlu1 %348 }
 0x1b9   : > { %v4720_v31 = vadd.f32 %v1375_v40, %v1303_v37  ;;  %v4730_v21 = vadd.f32 %v1420_v12, %v1348_v50  ;;  %v4732_v59 = vadd.f32 %v1429_v55, %v1357_v8  ;;  %v685_v43 = vmul.f32 %v2440_v38, %v6212_v9  ;;  %v6216_v40 = vld [vmem:[#allocation157_spill] sm:$0xff]  ;;  %v6217_v39 = vld [vmem:[#allocation158_spill] sm:$0xff]  ;;  %v6219_v50 = vld [vmem:[#allocation160_spill] sm:$0xff] }
 0x1ba   : > { %6206 = vst [vmem:[#allocation186_spill] sm:$0xff] %v4722_v1  ;;  %v4728_v11 = vadd.f32 %v1411_v7, %v1339_v17  ;;  %v694_v6 = vmul.f32 %v2440_v38, %v6213_v5  ;;  %v703_v37 = vmul.f32 %v2440_v38, %v6214_v28  ;;  %v712_v47 = vmul.f32 %v2440_v38, %v6215_v49  ;;  %v6218_v17 = vld [vmem:[#allocation159_spill] sm:$0xff]  ;;  %v6220_v8 = vld [vmem:[#allocation172_spill] sm:$0xff] }
 0x1bb   : > { %6205 = vst [vmem:[#allocation185_spill] sm:$0xff] %v4720_v31  ;;  %v721_v22 = vmul.f32 %v2440_v38, %v6216_v40  ;;  %v730_v30 = vmul.f32 %v2440_v38, %v6217_v39  ;;  %v739_v46 = vmul.f32 %v2440_v38, %v6218_v17  ;;  %v748_v7 = vmul.f32 %v2440_v38, %v6219_v50  ;;  %v6238_v31 = vld [vmem:[#allocation168_spill] sm:$0xff] }
 0x1bc   : > { %6207 = vst [vmem:[#allocation34_spill] sm:$0xff] %v4724_v45  ;;  %v1442_v12 = vmul.f32 %v2440_v38, %v6220_v8  ;;  %v1451_v55 = vmul.f32 %v2440_v38, %v6221_v29  ;;  %v1460_v34 = vmul.f32 %v2440_v38, %v6222_v60  ;;  %v1469_v35 = vmul.f32 %v2440_v38, %v6223_v44 }
 0x1bd   : > { %6208 = vst [vmem:[#allocation77_spill] sm:$0xff] %v4726_v10  ;;  %v1478_v41 = vmul.f32 %v2440_v38, %v6224_v51  ;;  %v1487_v26 = vmul.f32 %v2440_v38, %v6225_v63  ;;  %v1496_v33 = vmul.f32 %v2440_v38, %v6226_v62  ;;  %v1505_v56 = vmul.f32 %v2440_v38, %v6227_v48  ;;  %v6235_v10 = vld [vmem:[#allocation165_spill] sm:$0xff]  ;;  %v6236_v38 = vld [vmem:[#allocation166_spill] sm:$0xff] }
 0x1be   : > { %6209 = vst [vmem:[#allocation106_spill] sm:$0xff] %v4728_v11  ;;  %v353_v54 = vsel %vm316_vm4, 0.0, %v349_v58  ;;  %v688_v14 = vadd.f32 %v685_v43, %v6228_v36  ;;  %v697_v19 = vadd.f32 %v694_v6, %v6229_v16  ;;  %v706_v4 = vadd.f32 %v703_v37, %v6230_v52  ;;  %v6239_v43 = vld [vmem:[#allocation169_spill] sm:$0xff]  ;;  %v6240_v6 = vld [vmem:[#allocation170_spill] sm:$0xff] }
 0x1bf   : > { %6210 = vst [vmem:[#allocation78_spill] sm:$0xff] %v4730_v21  ;;  %v715_v2 = vadd.f32 %v712_v47, %v6231_v13  ;;  %v724_v42 = vadd.f32 %v721_v22, %v6232_v25  ;;  %v6234_v21 = vld [vmem:[#allocation164_spill] sm:$0xff]  ;;  %v770_v45 = vmul.f32 %v6235_v10, %v353_v54  ;;  %v779_v1 = vmul.f32 %v6236_v38, %v353_v54  ;;  %v6241_v37 = vld [vmem:[#allocation118_spill] sm:$0xff]  ;;  %v6242_v47 = vld [vmem:[#allocation119_spill] sm:$0xff] }
 0x1c0   : > { %6211 = vst [vmem:[#allocation107_spill] sm:$0xff] %v4732_v59  ;;  %v733_v59 = vadd.f32 %v730_v30, %v6233_v32  ;;  %v761_v11 = vmul.f32 %v6234_v21, %v353_v54  ;;  %v788_v58 = vmul.f32 %v6237_v3, %v353_v54  ;;  %v797_v36 = vmul.f32 %v6238_v31, %v353_v54  ;;  %v6243_v32 = vld [vmem:[#allocation171_spill] sm:$0xff] }
 0x1c1   : > { %v806_v16 = vmul.f32 %v6239_v43, %v353_v54  ;;  %v815_v52 = vmul.f32 %v6240_v6, %v353_v54  ;;  %v742_v13 = vadd.f32 %v739_v46, %v6241_v37  ;;  %v751_v25 = vadd.f32 %v748_v7, %v6242_v47  ;;  %v6251_v46 = vld [vmem:[#allocation120_spill] sm:$0xff]  ;;  %v6253_v37 = vld [vmem:[#allocation173_spill] sm:$0xff] }
 0x1c2   : > { %v4768_v22 = vadd.f32 %v761_v11, %v688_v14  ;;  %v824_v30 = vmul.f32 %v6243_v32, %v353_v54  ;;  %v4771_v21 = vadd.f32 %v770_v45, %v697_v19  ;;  %v4773_v10 = vadd.f32 %v779_v1, %v706_v4  ;;  %v6252_v14 = vld [vmem:[#allocation121_spill] sm:$0xff]  ;;  %v6255_v4 = vld [vmem:[#allocation174_spill] sm:$0xff] }
 0x1c3   : > { %v4775_v38 = vadd.f32 %v788_v58, %v715_v2  ;;  %v4777_v3 = vadd.f32 %v797_v36, %v724_v42  ;;  %v4779_v31 = vadd.f32 %v806_v16, %v733_v59  ;;  %v4781_v43 = vadd.f32 %v815_v52, %v742_v13  ;;  %v6254_v19 = vld [vmem:[#allocation133_spill] sm:$0xff]  ;;  %v6256_v2 = vld [vmem:[#allocation134_spill] sm:$0xff]  ;;  %v6258_v59 = vld [vmem:[#allocation147_spill] sm:$0xff] }
 0x1c4   : > { %6244 = vst [vmem:[#allocation79_spill] sm:$0xff] %v4771_v21  ;;  %v4783_v6 = vadd.f32 %v824_v30, %v751_v25  ;;  %v1445_v7 = vadd.f32 %v1442_v12, %v6251_v46  ;;  %v1454_v11 = vadd.f32 %v1451_v55, %v6252_v14  ;;  %v1463_v47 = vadd.f32 %v1460_v34, %v6253_v37  ;;  %v6257_v42 = vld [vmem:[#allocation130_spill] sm:$0xff]  ;;  %v6259_v52 = vld [vmem:[#allocation148_spill] sm:$0xff]  ;;  %v6260_v25 = vld [vmem:[#allocation149_spill] sm:$0xff] }
 0x1c5   : > { %6245 = vst [vmem:[#allocation98_spill] sm:$0xff] %v4773_v10  ;;  %v1472_v45 = vadd.f32 %v1469_v35, %v6254_v19  ;;  %v1481_v1 = vadd.f32 %v1478_v41, %v6255_v4  ;;  %v1490_v58 = vadd.f32 %v1487_v26, %v6256_v2  ;;  %v1517_v36 = vmul.f32 %v6257_v42, %v353_v54  ;;  %v6261_v12 = vld [vmem:[#allocation154_spill] sm:$0xff]  ;;  %v6262_v55 = vld [vmem:[#allocation155_spill] sm:$0xff]  ;;  %v6263_v34 = vld [vmem:[#allocation156_spill] sm:$0xff] }
 0x1c6   : > { %6246 = vst [vmem:[#allocation80_spill] sm:$0xff] %v4775_v38  ;;  %v1526_v16 = vmul.f32 %v6258_v59, %v353_v54  ;;  %v1535_v13 = vmul.f32 %v6259_v52, %v353_v54  ;;  %v1544_v30 = vmul.f32 %v6260_v25, %v353_v54  ;;  %v1553_v46 = vmul.f32 %v6261_v12, %v353_v54  ;;  %v6264_v35 = vld [vmem:[#allocation139_spill] sm:$0xff]  ;;  %v6265_v4 = vld [vmem:[#allocation161_spill] sm:$0xff]  ;;  %v2441_v21 = vld [vmem:[%s6200_s22] sm:$0xff] }
 0x1c7   : > { %6247 = vst [vmem:[#allocation108_spill] sm:$0xff] %v4777_v3  ;;  %v1562_v14 = vmul.f32 %v6262_v55, %v353_v54  ;;  %v1571_v37 = vmul.f32 %v6263_v34, %v353_v54  ;;  %v1499_v19 = vadd.f32 %v1496_v33, %v6264_v35  ;;  %v1508_v41 = vadd.f32 %v1505_v56, %v4640_v15  ;;  %v6271_v35 = vld [vmem:[#allocation78_spill] sm:$0xff] }
 0x1c8   : > { %6248 = vst [vmem:[#allocation81_spill] sm:$0xff] %v4779_v31  ;;  %v4800_v26 = vadd.f32 %v1517_v36, %v1445_v7  ;;  %v1580_v2 = vmul.f32 %v6265_v4, %v353_v54  ;;  %v4805_v31 = vadd.f32 %v1535_v13, %v1463_v47  ;;  %v4807_v3 = vadd.f32 %v1544_v30, %v1472_v45  ;;  %v6266_v13 = vld [vmem:[#allocation185_spill] sm:$0xff]  ;;  %v6267_v30 = vld [vmem:[#allocation186_spill] sm:$0xff] }
 0x1c9   : > { %6249 = vst [vmem:[#allocation109_spill] sm:$0xff] %v4781_v43  ;;  %v4803_v43 = vadd.f32 %v1526_v16, %v1454_v11  ;;  %v4809_v38 = vadd.f32 %v1553_v46, %v1481_v1  ;;  %v4811_v10 = vadd.f32 %v1562_v14, %v1490_v58  ;;  %v684_v33 = vmul.f32 %v2441_v21, %v6212_v9  ;;  %v6268_v46 = vld [vmem:[#allocation34_spill] sm:$0xff]  ;;  %v6269_v14 = vld [vmem:[#allocation77_spill] sm:$0xff] }
 0x1ca   : > { %6250 = vst [vmem:[#allocation35_spill] sm:$0xff] %v4783_v6  ;;  %v347_v6 = vpop.permute.xlu0 %346  ;;  %v693_v56 = vmul.f32 %v2441_v21, %v6213_v5  ;;  %v702_v15 = vmul.f32 %v2441_v21, %v6214_v28  ;;  %v4817_v7 = vadd.f32 %v1571_v37, %v1499_v19  ;;  %v711_v54 = vmul.f32 %v2441_v21, %v6215_v49  ;;  %v6270_v37 = vld [vmem:[#allocation106_spill] sm:$0xff]  ;;  %v6272_v19 = vld [vmem:[#allocation107_spill] sm:$0xff] }
 0x1cb   : > { %v720_v11 = vmul.f32 %v2441_v21, %v6216_v40  ;;  %v729_v47 = vmul.f32 %v2441_v21, %v6217_v39  ;;  %v4822_v45 = vadd.f32 %v1580_v2, %v1508_v41  ;;  %v687_v1 = vadd.f32 %v684_v33, %v4691_v61  ;;  %v6275_v33 = vld [vmem:[#allocation165_spill] sm:$0xff] }
 0x1cc   : > { %v738_v58 = vmul.f32 %v2441_v21, %v6218_v17  ;;  %v747_v9 = vmul.f32 %v2441_v21, %v6219_v50  ;;  %v696_v5 = vadd.f32 %v693_v56, %v4693_v57  ;;  %v705_v28 = vadd.f32 %v702_v15, %v4698_v23  ;;  %v6276_v15 = vld [vmem:[#allocation166_spill] sm:$0xff]  ;;  %v6333_v41 = vld [vmem:[#allocation141_spill] sm:$0xff] }
 0x1cd   : > { %v714_v36 = vadd.f32 %v711_v54, %v4700_v18  ;;  %v723_v49 = vadd.f32 %v720_v11, %v4702_v53  ;;  %v732_v40 = vadd.f32 %v729_v47, %v4704_v0  ;;  %v1441_v39 = vmul.f32 %v2441_v21, %v6220_v8  ;;  %v6277_v11 = vld [vmem:[#allocation167_spill] sm:$0xff] }
 0x1ce   : > { %v1450_v16 = vmul.f32 %v2441_v21, %v6221_v29  ;;  %v1459_v61 = vmul.f32 %v2441_v21, %v6222_v60  ;;  %v1468_v17 = vmul.f32 %v2441_v21, %v6223_v44  ;;  %v1477_v50 = vmul.f32 %v2441_v21, %v6224_v51 }
 0x1cf   : > { %v1486_v57 = vmul.f32 %v2441_v21, %v6225_v63  ;;  %v1495_v23 = vmul.f32 %v2441_v21, %v6226_v62  ;;  %v741_v18 = vadd.f32 %v738_v58, %v4714_v27  ;;  %v750_v53 = vadd.f32 %v747_v9, %v4716_v20  ;;  %v6278_v58 = vld [vmem:[#allocation168_spill] sm:$0xff] }
 0x1d0   : > { %v1444_v0 = vadd.f32 %v1441_v39, %v4718_v24  ;;  %v1504_v8 = vmul.f32 %v2441_v21, %v6227_v48  ;;  %v1453_v29 = vadd.f32 %v1450_v16, %v6266_v13  ;;  %v1462_v60 = vadd.f32 %v1459_v61, %v6267_v30  ;;  %v370_v24 = vpop.permute.xlu1 %369  ;;  %v6274_v48 = vld [vmem:[#allocation164_spill] sm:$0xff]  ;;  %v6279_v39 = vld [vmem:[#allocation169_spill] sm:$0xff]  ;;  %v6280_v61 = vld [vmem:[#allocation170_spill] sm:$0xff] }
 0x1d1   : > { %v1471_v44 = vadd.f32 %v1468_v17, %v6268_v46  ;;  %v1480_v51 = vadd.f32 %v1477_v50, %v6269_v14  ;;  %v1489_v63 = vadd.f32 %v1486_v57, %v6270_v37  ;;  %v1498_v62 = vadd.f32 %v1495_v23, %v6271_v35 }
 0x1d2   : > { %v1507_v27 = vadd.f32 %v1504_v8, %v6272_v19  ;;  %v352_v20 = vsel %vm316_vm4, 0.0, %v347_v6  ;;  %v368_v2 = vpop.permute.xlu0 %367  ;;  %v374_v23 = vsel %vm306_vm5, 0.0, %v370_v24 }
 0x1d3   : > { %v760_v21 = vmul.f32 %v6274_v48, %v352_v20  ;;  %v769_v56 = vmul.f32 %v6275_v33, %v352_v20  ;;  %v778_v54 = vmul.f32 %v6276_v15, %v352_v20  ;;  %v787_v47 = vmul.f32 %v6277_v11, %v352_v20  ;;  %v6285_v33 = vld [vmem:[#allocation129_spill] sm:$0xff]  ;;  %v6290_v11 = vld [vmem:[#allocation79_spill] sm:$0xff] }
 0x1d4   : > { %v796_v9 = vmul.f32 %v6278_v58, %v352_v20  ;;  %v805_v16 = vmul.f32 %v6279_v39, %v352_v20  ;;  %v814_v17 = vmul.f32 %v6280_v61, %v352_v20  ;;  %v823_v50 = vmul.f32 %v6243_v32, %v352_v20  ;;  %v6291_v58 = vld [vmem:[#allocation98_spill] sm:$0xff]  ;;  %v6292_v39 = vld [vmem:[#allocation80_spill] sm:$0xff] }
 0x1d5   : > { %v4860_v57 = vadd.f32 %v760_v21, %v687_v1  ;;  %v4862_v6 = vadd.f32 %v769_v56, %v696_v5  ;;  %v4868_v8 = vsel %vm306_vm5, 0.0, %v368_v2  ;;  %v4870_v13 = vadd.f32 %v778_v54, %v705_v28  ;;  %v6282_v2 = vld [vmem:[#allocation126_spill] sm:$0xff]  ;;  %v6293_v61 = vld [vmem:[#allocation108_spill] sm:$0xff] }
 0x1d6   : > { %v4872_v30 = vadd.f32 %v787_v47, %v714_v36  ;;  %v4874_v46 = vadd.f32 %v796_v9, %v723_v49  ;;  %v4876_v14 = vadd.f32 %v805_v16, %v732_v40  ;;  %v1516_v32 = vmul.f32 %v6257_v42, %v352_v20  ;;  %v6286_v56 = vld [vmem:[#allocation66_spill] sm:$0xff] }
 0x1d7   : > { %v1525_v1 = vmul.f32 %v6258_v59, %v352_v20  ;;  %v1534_v5 = vmul.f32 %v6259_v52, %v352_v20  ;;  %v1543_v37 = vmul.f32 %v6260_v25, %v352_v20  ;;  %v4882_v35 = vadd.f32 %v814_v17, %v741_v18 }
 0x1d8   : > { %v4884_v19 = vadd.f32 %v823_v50, %v750_v53  ;;  %v1552_v28 = vmul.f32 %v6261_v12, %v352_v20  ;;  %v1561_v36 = vmul.f32 %v6262_v55, %v352_v20  ;;  %v4888_v49 = vadd.f32 %v1516_v32, %v1444_v0  ;;  %v6281_v53 = vld [vmem:[#allocation188_spill] sm:$0xff]  ;;  %v6283_v0 = vld [vmem:[#allocation127_spill] sm:$0xff]  ;;  %v6294_v50 = vld [vmem:[#allocation81_spill] sm:$0xff] }
 0x1d9   : > { %v4890_v40 = vadd.f32 %v1525_v1, %v1453_v29  ;;  %v1570_v42 = vmul.f32 %v6263_v34, %v352_v20  ;;  %v1579_v59 = vmul.f32 %v6265_v4, %v352_v20  ;;  %v4894_v24 = vadd.f32 %v1534_v5, %v1462_v60  ;;  %v6284_v29 = vld [vmem:[#allocation128_spill] sm:$0xff]  ;;  %v6287_v60 = vld [vmem:[#allocation67_spill] sm:$0xff]  ;;  %v6296_v1 = vld [vmem:[#allocation70_spill] sm:$0xff] }
 0x1da   : > { %v4896_v52 = vadd.f32 %v1543_v37, %v1471_v44  ;;  %v4898_v25 = vadd.f32 %v1552_v28, %v1480_v51  ;;  %v4900_v18 = vadd.f32 %v1561_v36, %v1489_v63  ;;  %v837_v12 = vmul.f32 %v6281_v53, %v374_v23  ;;  %v6288_v44 = vld [vmem:[#allocation68_spill] sm:$0xff]  ;;  %v6297_v5 = vld [vmem:[#allocation71_spill] sm:$0xff] }
 0x1db   : > { %v846_v55 = vmul.f32 %v6282_v2, %v374_v23  ;;  %v855_v48 = vmul.f32 %v6283_v0, %v374_v23  ;;  %v864_v21 = vmul.f32 %v6284_v29, %v374_v23  ;;  %v873_v34 = vmul.f32 %v6285_v33, %v374_v23  ;;  %v6298_v28 = vld [vmem:[#allocation72_spill] sm:$0xff] }
 0x1dc   : > { %v882_v4 = vmul.f32 %v6286_v56, %v374_v23  ;;  %v891_v20 = vmul.f32 %v6287_v60, %v374_v23  ;;  %v900_v15 = vmul.f32 %v6288_v44, %v374_v23  ;;  %v4910_v51 = vadd.f32 %v1570_v42, %v1498_v62  ;;  %v6299_v42 = vld [vmem:[#allocation109_spill] sm:$0xff] }
 0x1dd   : > { %v4912_v63 = vadd.f32 %v1579_v59, %v1507_v27  ;;  %v4915_v54 = vadd.f32 %v837_v12, %v4768_v22  ;;  %v4918_v47 = vadd.f32 %v846_v55, %v6290_v11  ;;  %v4921_v9 = vadd.f32 %v855_v48, %v6291_v58  ;;  %v6295_v27 = vld [vmem:[#allocation69_spill] sm:$0xff] }
 0x1de   : > { %v4924_v16 = vadd.f32 %v864_v21, %v6292_v39  ;;  %v4927_v17 = vadd.f32 %v873_v34, %v6293_v61  ;;  %v4930_v62 = vadd.f32 %v882_v4, %v6294_v50  ;;  %v1592_v32 = vmul.f32 %v6295_v27, %v374_v23  ;;  %v6300_v12 = vld [vmem:[#allocation35_spill] sm:$0xff]  ;;  %v6302_v34 = vld [vmem:[#allocation74_spill] sm:$0xff]  ;;  %v6303_v39 = vld [vmem:[#allocation75_spill] sm:$0xff] }
 0x1df   : > { %6289 = vst [vmem:[#allocation110_spill] sm:$0xff] %v4912_v63  ;;  %v1601_v22 = vmul.f32 %v6296_v1, %v374_v23  ;;  %v1610_v37 = vmul.f32 %v6297_v5, %v374_v23  ;;  %v1619_v36 = vmul.f32 %v6298_v28, %v374_v23  ;;  %v4937_v59 = vadd.f32 %v891_v20, %v6299_v42  ;;  %v6301_v48 = vld [vmem:[#allocation73_spill] sm:$0xff]  ;;  %v6304_v50 = vld [vmem:[#allocation76_spill] sm:$0xff] }
 0x1e0   : > { %v4940_v55 = vadd.f32 %v900_v15, %v6300_v12  ;;  %v1628_v21 = vmul.f32 %v6301_v48, %v374_v23  ;;  %v1637_v11 = vmul.f32 %v6302_v34, %v374_v23  ;;  %v4945_v4 = vadd.f32 %v1592_v32, %v4800_v26 }
 0x1e1   : > { %v4948_v58 = vadd.f32 %v1601_v22, %v4803_v43  ;;  %v1646_v61 = vmul.f32 %v6303_v39, %v374_v23  ;;  %v1655_v63 = vmul.f32 %v6304_v50, %v374_v23  ;;  %v4953_v20 = vadd.f32 %v1610_v37, %v4805_v31  ;;  %v6317_v37 = vld [vmem:[#allocation175_spill] sm:$0xff] }
 0x1e2   : > { %v4956_v15 = vadd.f32 %v1619_v36, %v4807_v3  ;;  %v4959_v42 = vadd.f32 %v1628_v21, %v4809_v38  ;;  %v4962_v12 = vadd.f32 %v1637_v11, %v4811_v10  ;;  %v836_v43 = vmul.f32 %v6281_v53, %v4868_v8  ;;  %v6318_v36 = vld [vmem:[#allocation135_spill] sm:$0xff] }
 0x1e3   : > { %v845_v26 = vmul.f32 %v6282_v2, %v4868_v8  ;;  %v854_v23 = vmul.f32 %v6283_v0, %v4868_v8  ;;  %v863_v31 = vmul.f32 %v6284_v29, %v4868_v8  ;;  %v872_v3 = vmul.f32 %v6285_v33, %v4868_v8 }
 0x1e4   : > { %v881_v38 = vmul.f32 %v6286_v56, %v4868_v8  ;;  %v890_v10 = vmul.f32 %v6287_v60, %v4868_v8  ;;  %v899_v53 = vmul.f32 %v6288_v44, %v4868_v8  ;;  %v4981_v2 = vadd.f32 %v1646_v61, %v4817_v7 }
 0x1e5   : > { %v4984_v0 = vadd.f32 %v1655_v63, %v4822_v45  ;;  %v4987_v29 = vadd.f32 %v836_v43, %v4860_v57  ;;  %v4990_v33 = vadd.f32 %v845_v26, %v4862_v6  ;;  %v4993_v56 = vadd.f32 %v854_v23, %v4870_v13  ;;  %v379_v26 = vpop.permute.xlu1 %378  ;;  %v6325_v23 = vld [vmem:[#allocation194_spill] sm:$0xff] }
 0x1e6   : > { %v4996_v60 = vadd.f32 %v863_v31, %v4872_v30  ;;  %v4999_v44 = vadd.f32 %v872_v3, %v4874_v46  ;;  %v5002_v7 = vadd.f32 %v881_v38, %v4876_v14  ;;  %v1591_v45 = vmul.f32 %v6295_v27, %v4868_v8  ;;  %v6326_v3 = vld [vmem:[#allocation195_spill] sm:$0xff] }
 0x1e7   : > { %v1600_v57 = vmul.f32 %v6296_v1, %v4868_v8  ;;  %v1609_v6 = vmul.f32 %v6297_v5, %v4868_v8  ;;  %v1618_v13 = vmul.f32 %v6298_v28, %v4868_v8  ;;  %v5013_v30 = vadd.f32 %v890_v10, %v4882_v35  ;;  %v6316_v5 = vld [vmem:[#allocation37_spill] sm:$0xff]  ;;  %v6327_v10 = vld [vmem:[#allocation196_spill] sm:$0xff] }
 0x1e8   : > { %6305 = vst [vmem:[#allocation131_spill] sm:$0xff] %v4996_v60  ;;  %v5016_v46 = vadd.f32 %v899_v53, %v4884_v19  ;;  %v1627_v14 = vmul.f32 %v6301_v48, %v4868_v8  ;;  %v1636_v63 = vmul.f32 %v6302_v34, %v4868_v8  ;;  %v5023_v27 = vadd.f32 %v1591_v45, %v4888_v49  ;;  %v6328_v45 = vld [vmem:[#allocation197_spill] sm:$0xff]  ;;  %v6344_v60 = vld [vmem:[#allocation36_spill] sm:$0xff] }
 0x1e9   : > { %6306 = vst [vmem:[#allocation111_spill] sm:$0xff] %v4999_v44  ;;  %v5026_v32 = vadd.f32 %v1600_v57, %v4890_v40  ;;  %v5030_v1 = vmul.f32 %v6303_v39, %v4868_v8  ;;  %v5034_v35 = vmul.f32 %v6304_v50, %v4868_v8  ;;  %v5037_v19 = vadd.f32 %v1609_v6, %v4894_v24  ;;  %v6319_v8 = vld [vmem:[#allocation176_spill] sm:$0xff]  ;;  %v6329_v6 = vld [vmem:[#allocation198_spill] sm:$0xff] }
 0x1ea   : > { %6307 = vst [vmem:[#allocation132_spill] sm:$0xff] %v5002_v7  ;;  %v5040_v22 = vadd.f32 %v1618_v13, %v4896_v52  ;;  %v5043_v49 = vadd.f32 %v1627_v14, %v4898_v25  ;;  %v5046_v40 = vadd.f32 %v1636_v63, %v4900_v18  ;;  %v913_v28 = vmul.f32 %v6317_v37, %v6316_v5  ;;  %v6320_v24 = vld [vmem:[#allocation136_spill] sm:$0xff]  ;;  %v6321_v52 = vld [vmem:[#allocation137_spill] sm:$0xff]  ;;  %v6322_v25 = vld [vmem:[#allocation138_spill] sm:$0xff] }
 0x1eb   : > { %6308 = vst [vmem:[#allocation112_spill] sm:$0xff] %v5013_v30  ;;  %v922_v48 = vmul.f32 %v6318_v36, %v6316_v5  ;;  %v931_v21 = vmul.f32 %v6319_v8, %v6316_v5  ;;  %v940_v34 = vmul.f32 %v6320_v24, %v6316_v5  ;;  %v949_v11 = vmul.f32 %v6321_v52, %v6316_v5  ;;  %v6323_v18 = vld [vmem:[#allocation140_spill] sm:$0xff]  ;;  %v6330_v14 = vld [vmem:[#allocation199_spill] sm:$0xff] }
 0x1ec   : > { %6309 = vst [vmem:[#allocation99_spill] sm:$0xff] %v5016_v46  ;;  %v958_v39 = vmul.f32 %v6322_v25, %v6316_v5  ;;  %v967_v61 = vmul.f32 %v6323_v18, %v6316_v5  ;;  %v6324_v50 = vld [vmem:[#allocation180_spill] sm:$0xff]  ;;  %v1667_v31 = vmul.f32 %v6325_v23, %v6316_v5  ;;  %v1676_v38 = vmul.f32 %v6326_v3, %v6316_v5  ;;  %v6341_v3 = vld [vmem:[#allocation145_spill] sm:$0xff] }
 0x1ed   : > { %6310 = vst [vmem:[#allocation113_spill] sm:$0xff] %v5023_v27  ;;  %v976_v43 = vmul.f32 %v6324_v50, %v6316_v5  ;;  %v1685_v53 = vmul.f32 %v6327_v10, %v6316_v5  ;;  %v1694_v57 = vmul.f32 %v6328_v45, %v6316_v5  ;;  %v1703_v13 = vmul.f32 %v6329_v6, %v6316_v5  ;;  %v6342_v23 = vld [vmem:[#allocation184_spill] sm:$0xff] }
 0x1ee   : > { %6311 = vst [vmem:[#allocation100_spill] sm:$0xff] %v5026_v32  ;;  %v1712_v63 = vmul.f32 %v6330_v14, %v6316_v5  ;;  %v5082_v32 = vsel %vm316_vm4, 0.0, %v379_v26  ;;  %v916_v27 = vadd.f32 %v913_v28, %v4915_v54  ;;  %v925_v46 = vadd.f32 %v922_v48, %v4918_v47  ;;  %v6335_v47 = vld [vmem:[#allocation142_spill] sm:$0xff] }
 0x1ef   : > { %6312 = vst [vmem:[#allocation122_spill] sm:$0xff] %v5037_v19  ;;  %v934_v30 = vadd.f32 %v931_v21, %v4921_v9  ;;  %v943_v6 = vadd.f32 %v940_v34, %v4924_v16  ;;  %v952_v14 = vadd.f32 %v949_v11, %v4927_v17  ;;  %v961_v45 = vadd.f32 %v958_v39, %v4930_v62  ;;  %v6336_v9 = vld [vmem:[#allocation163_spill] sm:$0xff]  ;;  %v6338_v62 = vld [vmem:[#allocation181_spill] sm:$0xff] }
 0x1f0   : > { %6313 = vst [vmem:[#allocation101_spill] sm:$0xff] %v5040_v22  ;;  %v6332_v22 = vld [vmem:[#allocation202_spill] sm:$0xff]  ;;  %v989_v26 = vmul.f32 %v6333_v41, %v5082_v32  ;;  %v1007_v28 = vmul.f32 %v6335_v47, %v5082_v32  ;;  %v1016_v16 = vmul.f32 %v6336_v9, %v5082_v32  ;;  %v6337_v17 = vld [vmem:[#allocation143_spill] sm:$0xff] }
 0x1f1   : > { %6314 = vst [vmem:[#allocation123_spill] sm:$0xff] %v5043_v49  ;;  %v1730_v19 = vmul.f32 %v6332_v22, %v6316_v5  ;;  %v6334_v22 = vld [vmem:[#allocation162_spill] sm:$0xff]  ;;  %v1025_v48 = vmul.f32 %v6337_v17, %v5082_v32 }
 0x1f2   : > { %6315 = vst [vmem:[#allocation82_spill] sm:$0xff] %v5046_v40  ;;  %v6331_v40 = vld [vmem:[#allocation201_spill] sm:$0xff]  ;;  %v998_v54 = vmul.f32 %v6334_v22, %v5082_v32  ;;  %v992_v34 = vadd.f32 %v989_v26, %v916_v27  ;;  %v1010_v39 = vadd.f32 %v1007_v28, %v934_v30  ;;  %v1019_v22 = vadd.f32 %v1016_v16, %v943_v6  ;;  %v6345_v27 = vld [vmem:[#allocation191_spill] sm:$0xff]  ;;  %v6346_v30 = vld [vmem:[#allocation192_spill] sm:$0xff] }
 0x1f3   : > { %v1721_v49 = vmul.f32 %v6331_v40, %v6316_v5  ;;  %v970_v40 = vadd.f32 %v967_v61, %v4937_v59  ;;  %v979_v5 = vadd.f32 %v976_v43, %v4940_v55  ;;  %v1034_v59 = vmul.f32 %v6338_v62, %v5082_v32  ;;  %v6339_v55 = vld [vmem:[#allocation144_spill] sm:$0xff]  ;;  %v6340_v61 = vld [vmem:[#allocation182_spill] sm:$0xff] }
 0x1f4   : > { %v1043_v21 = vmul.f32 %v6339_v55, %v5082_v32  ;;  %v1001_v11 = vadd.f32 %v998_v54, %v925_v46  ;;  %v1052_v43 = vmul.f32 %v6340_v61, %v5082_v32  ;;  %v1028_v47 = vadd.f32 %v1025_v48, %v952_v14  ;;  %v6343_v62 = vld [vmem:[#allocation146_spill] sm:$0xff]  ;;  %v6347_v54 = vld [vmem:[#allocation193_spill] sm:$0xff] }
 0x1f5   : > { %v1037_v41 = vadd.f32 %v1034_v59, %v961_v45  ;;  %v1060_v17 = vadd.f32 %v6341_v3, %v992_v34  ;;  %v1085_v44 = vadd.f32 %v6343_v62, %v1010_v39  ;;  %v1098_v55 = vadd.f32 %v6344_v60, %v1019_v22 }
 0x1f6   : > { %v1046_v10 = vadd.f32 %v1043_v21, %v970_v40  ;;  %v1055_v9 = vadd.f32 %v1052_v43, %v979_v5  ;;  %v1072_v7 = vadd.f32 %v6342_v23, %v1001_v11  ;;  %v1111_v46 = vadd.f32 %v6345_v27, %v1028_v47  ;;  %v6348_v5 = vld [vmem:[#allocation200_spill] sm:$0xff]  ;;  %v6356_v11 = vld [vmem:[#allocation210_spill] sm:$0xff] }
 0x1f7   : > { %v1124_v26 = vadd.f32 %v6346_v30, %v1037_v41  ;;  %v1063_v14 = vmax.f32 %v1060_v17, 0.0  ;;  %v1088_v40 = vmax.f32 %v1085_v44, 0.0  ;;  %v1101_v16 = vmax.f32 %v1098_v55, 0.0 }
 0x1f8   : > { %v1137_v6 = vadd.f32 %v6347_v54, %v1046_v10  ;;  %v1075_v45 = vmax.f32 %v1072_v7, 0.0  ;;  %v1150_v28 = vadd.f32 %v6348_v5, %v1055_v9  ;;  %v1114_v48 = vmax.f32 %v1111_v46, 0.0 }
 0x1f9   : > { %v1127_v59 = vmax.f32 %v1124_v26, 0.0  ;;  %1066 = vst [vmem:[%s4606_s30 + $0x8] sm:$0xff] %v1063_v14  ;;  %v1670_v47 = vadd.f32 %v1667_v31, %v4945_v4  ;;  %v1679_v34 = vadd.f32 %v1676_v38, %v4948_v58  ;;  %v1688_v41 = vadd.f32 %v1685_v53, %v4953_v20  ;;  %v6349_v4 = vld [vmem:[#allocation203_spill] sm:$0xff]  ;;  %v6350_v58 = vld [vmem:[#allocation204_spill] sm:$0xff]  ;;  %v6351_v38 = vld [vmem:[#allocation205_spill] sm:$0xff] }
 0x1fa   : > { %v1140_v21 = vmax.f32 %v1137_v6, 0.0  ;;  %v1153_v22 = vmax.f32 %v1150_v28, 0.0  ;;  %2162 = vst [vmem:[%s4606_s30 + $0x20] sm:$0xff] %v1075_v45  ;;  %v1697_v44 = vadd.f32 %v1694_v57, %v4956_v15  ;;  %v1706_v7 = vadd.f32 %v1703_v13, %v4959_v42  ;;  %v6352_v15 = vld [vmem:[#allocation206_spill] sm:$0xff]  ;;  %v6357_v45 = vld [vmem:[#allocation211_spill] sm:$0xff]  ;;  %v6358_v28 = vld [vmem:[#allocation212_spill] sm:$0xff] }
 0x1fb   : > { %v1715_v10 = vadd.f32 %v1712_v63, %v4962_v12  ;;  %v1724_v9 = vadd.f32 %v1721_v49, %v4981_v2  ;;  %2166 = vst [vmem:[%s4606_s30 + $0x38] sm:$0xff] %v1088_v40  ;;  %v1733_v17 = vadd.f32 %v1730_v19, %v4984_v0  ;;  %v1742_v31 = vmul.f32 %v6349_v4, %v5082_v32  ;;  %v6353_v12 = vld [vmem:[#allocation207_spill] sm:$0xff]  ;;  %v6354_v49 = vld [vmem:[#allocation208_spill] sm:$0xff]  ;;  %v6355_v19 = vld [vmem:[#allocation209_spill] sm:$0xff] }
 0x1fc   : > { %v1751_v20 = vmul.f32 %v6350_v58, %v5082_v32  ;;  %v1760_v53 = vmul.f32 %v6351_v38, %v5082_v32  ;;  %2170 = vst [vmem:[%s4606_s30 + $0x50] sm:$0xff] %v1101_v16  ;;  %v1769_v42 = vmul.f32 %v6352_v15, %v5082_v32  ;;  %v1778_v2 = vmul.f32 %v6353_v12, %v5082_v32 }
 0x1fd   : > { %v1787_v0 = vmul.f32 %v6354_v49, %v5082_v32  ;;  %v1796_v57 = vmul.f32 %v6355_v19, %v5082_v32  ;;  %2174 = vst [vmem:[%s4606_s30 + $0x68] sm:$0xff] %v1114_v48  ;;  %v1745_v13 = vadd.f32 %v1742_v31, %v1670_v47  ;;  %v1805_v39 = vmul.f32 %v6356_v11, %v5082_v32  ;;  %v6359_v19 = vld [vmem:[#allocation213_spill] sm:$0xff]  ;;  %v6360_v47 = vld [vmem:[#allocation214_spill] sm:$0xff]  ;;  %v6362_v32 = vld [vmem:[#allocation216_spill] sm:$0xff] }
 0x1fe   : > { %v1754_v63 = vadd.f32 %v1751_v20, %v1679_v34  ;;  %v1763_v55 = vadd.f32 %v1760_v53, %v1688_v41  ;;  %2178 = vst [vmem:[%s4606_s30 + $0x80] sm:$0xff] %v1127_v59  ;;  %v1772_v43 = vadd.f32 %v1769_v42, %v1697_v44  ;;  %v1781_v46 = vadd.f32 %v1778_v2, %v1706_v7  ;;  %v6361_v41 = vld [vmem:[#allocation215_spill] sm:$0xff]  ;;  %v6363_v44 = vld [vmem:[#allocation217_spill] sm:$0xff]  ;;  %v6365_v42 = vld [vmem:[#allocation110_spill] sm:$0xff] }
 0x1ff   : > { %v1790_v26 = vadd.f32 %v1787_v0, %v1715_v10  ;;  %v1799_v6 = vadd.f32 %v1796_v57, %v1724_v9  ;;  %2182 = vst [vmem:[%s4606_s30 + $0x98] sm:$0xff] %v1140_v21  ;;  %v1808_v14 = vadd.f32 %v1805_v39, %v1733_v17  ;;  %v1814_v40 = vadd.f32 %v6357_v45, %v1745_v13  ;;  %v6364_v17 = vld [vmem:[#allocation218_spill] sm:$0xff]  ;;  %v6366_v13 = vld [vmem:[#allocation38_spill] sm:$0xff] }
 0x200   : > { %v1827_v16 = vadd.f32 %v6358_v28, %v1754_v63  ;;  %v1840_v48 = vadd.f32 %v6359_v19, %v1763_v55  ;;  %2186 = vst [vmem:[%s4606_s30 + $0xb0] sm:$0xff] %v1153_v22  ;;  %v1853_v34 = vadd.f32 %v6360_v47, %v1772_v43  ;;  %v1866_v31 = vadd.f32 %v6361_v41, %v1781_v46 }
 0x201   : > { %v1879_v59 = vadd.f32 %v6362_v32, %v1790_v26  ;;  %v1892_v7 = vadd.f32 %v6363_v44, %v1799_v6  ;;  %v1817_v10 = vmax.f32 %v1814_v40, 0.0  ;;  %v1905_v20 = vadd.f32 %v6364_v17, %v1808_v14  ;;  %v6367_v26 = vld [vmem:[#allocation131_spill] sm:$0xff]  ;;  %v6369_v40 = vld [vmem:[#allocation132_spill] sm:$0xff] }
 0x202   : > { %v1830_v21 = vmax.f32 %v1827_v16, 0.0  ;;  %v1843_v9 = vmax.f32 %v1840_v48, 0.0  ;;  %v1648_v53 = vadd.f32 %v5030_v1, %v4910_v51  ;;  %v1657_v22 = vadd.f32 %v5034_v35, %v6365_v42  ;;  %v6370_v16 = vld [vmem:[#allocation194_spill] sm:$0xff]  ;;  %v6371_v48 = vld [vmem:[#allocation195_spill] sm:$0xff]  ;;  %v377_v42 = vpop.permute.xlu0 %376 }
 0x203   : > { %v1856_v2 = vmax.f32 %v1853_v34, 0.0  ;;  %v1869_v0 = vmax.f32 %v1866_v31, 0.0  ;;  %2262 = vst [vmem:[%s4606_s30 + $0xc8] sm:$0xff] %v1817_v10  ;;  %v1882_v57 = vmax.f32 %v1879_v59, 0.0  ;;  %v912_v63 = vmul.f32 %v6317_v37, %v6366_v13  ;;  %v6372_v34 = vld [vmem:[#allocation196_spill] sm:$0xff]  ;;  %v6374_v59 = vld [vmem:[#allocation198_spill] sm:$0xff] }
 0x204   : > { %v921_v55 = vmul.f32 %v6318_v36, %v6366_v13  ;;  %v930_v39 = vmul.f32 %v6319_v8, %v6366_v13  ;;  %2266 = vst [vmem:[%s4606_s30 + $0xe0] sm:$0xff] %v1830_v21  ;;  %v1895_v51 = vmax.f32 %v1892_v7, 0.0  ;;  %v939_v1 = vmul.f32 %v6320_v24, %v6366_v13  ;;  %v6375_v10 = vld [vmem:[#allocation199_spill] sm:$0xff] }
 0x205   : > { %v948_v35 = vmul.f32 %v6321_v52, %v6366_v13  ;;  %v957_v43 = vmul.f32 %v6322_v25, %v6366_v13  ;;  %2270 = vst [vmem:[%s4606_s30 + $0xf8] sm:$0xff] %v1843_v9  ;;  %v1908_v37 = vmax.f32 %v1905_v20, 0.0  ;;  %v915_v36 = vadd.f32 %v912_v63, %v4987_v29  ;;  %v6368_v25 = vld [vmem:[#allocation111_spill] sm:$0xff]  ;;  %v6376_v9 = vld [vmem:[#allocation201_spill] sm:$0xff] }
 0x206   : > { %v966_v8 = vmul.f32 %v6323_v18, %v6366_v13  ;;  %v975_v46 = vmul.f32 %v6324_v50, %v6366_v13  ;;  %2274 = vst [vmem:[%s4606_s30 + $0x110] sm:$0xff] %v1856_v2  ;;  %v924_v24 = vadd.f32 %v921_v55, %v4990_v33  ;;  %v933_v52 = vadd.f32 %v930_v39, %v4993_v56  ;;  %v6373_v33 = vld [vmem:[#allocation197_spill] sm:$0xff]  ;;  %v6377_v2 = vld [vmem:[#allocation112_spill] sm:$0xff]  ;;  %v6378_v63 = vld [vmem:[#allocation99_spill] sm:$0xff] }
 0x207   : > { %v942_v6 = vadd.f32 %v939_v1, %v6367_v26  ;;  %v951_v14 = vadd.f32 %v948_v35, %v6368_v25  ;;  %2278 = vst [vmem:[%s4606_s30 + $0x128] sm:$0xff] %v1869_v0  ;;  %v960_v29 = vadd.f32 %v957_v43, %v6369_v40  ;;  %v1666_v18 = vmul.f32 %v6370_v16, %v6366_v13  ;;  %v6379_v39 = vld [vmem:[#allocation113_spill] sm:$0xff]  ;;  %v6380_v1 = vld [vmem:[#allocation202_spill] sm:$0xff]  ;;  %v6381_v43 = vld [vmem:[#allocation100_spill] sm:$0xff] }
 0x208   : > { %v1675_v50 = vmul.f32 %v6371_v48, %v6366_v13  ;;  %v1684_v31 = vmul.f32 %v6372_v34, %v6366_v13  ;;  %2282 = vst [vmem:[%s4606_s30 + $0x140] sm:$0xff] %v1882_v57  ;;  %v1693_v56 = vmul.f32 %v6373_v33, %v6366_v13  ;;  %v1702_v7 = vmul.f32 %v6374_v59, %v6366_v13  ;;  %v6382_v25 = vld [vmem:[#allocation122_spill] sm:$0xff]  ;;  %v6383_v16 = vld [vmem:[#allocation101_spill] sm:$0xff]  ;;  %v6384_v34 = vld [vmem:[#allocation123_spill] sm:$0xff] }
 0x209   : > { %v1711_v21 = vmul.f32 %v6375_v10, %v6366_v13  ;;  %v1720_v20 = vmul.f32 %v6376_v9, %v6366_v13  ;;  %2286 = vst [vmem:[%s4606_s30 + $0x158] sm:$0xff] %v1895_v51  ;;  %v969_v0 = vadd.f32 %v966_v8, %v6377_v2  ;;  %v978_v55 = vadd.f32 %v975_v46, %v6378_v63  ;;  %v6385_v59 = vld [vmem:[#allocation82_spill] sm:$0xff] }
 0x20a   : > { %v1669_v57 = vadd.f32 %v1666_v18, %v6379_v39  ;;  %v1729_v35 = vmul.f32 %v6380_v1, %v6366_v13  ;;  %2290 = vst [vmem:[%s4606_s30 + $0x170] sm:$0xff] %v1908_v37  ;;  %v1678_v26 = vadd.f32 %v1675_v50, %v6381_v43  ;;  %v1687_v40 = vadd.f32 %v1684_v31, %v6382_v25  ;;  %v6387_v18 = vld [vmem:[#allocation141_spill] sm:$0xff]  ;;  %v6388_v63 = vld [vmem:[#allocation162_spill] sm:$0xff]  ;;  %v6390_v50 = vld [vmem:[#allocation163_spill] sm:$0xff] }
 0x20b   : > { %v1696_v48 = vadd.f32 %v1693_v56, %v6383_v16  ;;  %v1705_v33 = vadd.f32 %v1702_v7, %v6384_v34  ;;  %v1714_v51 = vadd.f32 %v1711_v21, %v6385_v59  ;;  %v1723_v10 = vadd.f32 %v1720_v20, %v1648_v53  ;;  %v6389_v37 = vld [vmem:[#allocation142_spill] sm:$0xff]  ;;  %v6391_v31 = vld [vmem:[#allocation143_spill] sm:$0xff]  ;;  %v6392_v56 = vld [vmem:[#allocation181_spill] sm:$0xff] }
 0x20c   : > { %v1732_v8 = vadd.f32 %v1729_v35, %v1657_v22  ;;  %v382_v46 = vsel %vm316_vm4, 0.0, %v377_v42  ;;  %v6393_v7 = vld [vmem:[#allocation144_spill] sm:$0xff] }
 0x20d   : > { %v988_v2 = vmul.f32 %v6387_v18, %v382_v46  ;;  %v997_v13 = vmul.f32 %v6388_v63, %v382_v46  ;;  %v1006_v39 = vmul.f32 %v6389_v37, %v382_v46  ;;  %v1015_v1 = vmul.f32 %v6390_v50, %v382_v46 }
 0x20e   : > { %v1024_v43 = vmul.f32 %v6391_v31, %v382_v46  ;;  %v1033_v25 = vmul.f32 %v6392_v56, %v382_v46  ;;  %v1042_v16 = vmul.f32 %v6393_v7, %v382_v46  ;;  %v1051_v53 = vmul.f32 %v6340_v61, %v382_v46 }
 0x20f   : > { %v991_v22 = vadd.f32 %v988_v2, %v915_v36  ;;  %v1000_v21 = vadd.f32 %v997_v13, %v924_v24  ;;  %v1009_v20 = vadd.f32 %v1006_v39, %v933_v52  ;;  %v1018_v42 = vadd.f32 %v1015_v1, %v942_v6  ;;  %v6394_v2 = vld [vmem:[#allocation209_spill] sm:$0xff] }
 0x210   : > { %v1027_v35 = vadd.f32 %v1024_v43, %v951_v14  ;;  %v1036_v34 = vadd.f32 %v1033_v25, %v960_v29  ;;  %v1045_v59 = vadd.f32 %v1042_v16, %v969_v0  ;;  %v1054_v9 = vadd.f32 %v1051_v53, %v978_v55 }
 0x211   : > { %v1059_v18 = vadd.f32 %v6341_v3, %v991_v22  ;;  %v1071_v63 = vadd.f32 %v6342_v23, %v1000_v21  ;;  %v1084_v37 = vadd.f32 %v6343_v62, %v1009_v20  ;;  %v1097_v50 = vadd.f32 %v6344_v60, %v1018_v42 }
 0x212   : > { %v1110_v31 = vadd.f32 %v6345_v27, %v1027_v35  ;;  %v1123_v61 = vadd.f32 %v6346_v30, %v1036_v34  ;;  %v1136_v36 = vadd.f32 %v6347_v54, %v1045_v59  ;;  %v1149_v24 = vadd.f32 %v6348_v5, %v1054_v9 }
 0x213   : > { %v1062_v52 = vmax.f32 %v1059_v18, 0.0  ;;  %v1074_v6 = vmax.f32 %v1071_v63, 0.0  ;;  %v1087_v14 = vmax.f32 %v1084_v37, 0.0  ;;  %v1100_v3 = vmax.f32 %v1097_v50, 0.0 }
 0x214   : > { %v1113_v29 = vmax.f32 %v1110_v31, 0.0  ;;  %v1126_v23 = vmax.f32 %v1123_v61, 0.0  ;;  %v1139_v0 = vmax.f32 %v1136_v36, 0.0  ;;  %v1152_v62 = vmax.f32 %v1149_v24, 0.0 }
 0x215   : > { %1065 = vst [vmem:[%s4606_s30] sm:$0xff] %v1062_v52  ;;  %v1741_v60 = vmul.f32 %v6349_v4, %v382_v46  ;;  %v1750_v27 = vmul.f32 %v6350_v58, %v382_v46  ;;  %v1759_v30 = vmul.f32 %v6351_v38, %v382_v46  ;;  %v1768_v54 = vmul.f32 %v6352_v15, %v382_v46 }
 0x216   : > { %2161 = vst [vmem:[%s4606_s30 + $0x18] sm:$0xff] %v1074_v6  ;;  %v1777_v5 = vmul.f32 %v6353_v12, %v382_v46  ;;  %v1786_v55 = vmul.f32 %v6354_v49, %v382_v46  ;;  %v1795_v13 = vmul.f32 %v6394_v2, %v382_v46  ;;  %v1804_v39 = vmul.f32 %v6356_v11, %v382_v46 }
 0x217   : > { %2165 = vst [vmem:[%s4606_s30 + $0x30] sm:$0xff] %v1087_v14  ;;  %v1744_v1 = vadd.f32 %v1741_v60, %v1669_v57  ;;  %v1753_v4 = vadd.f32 %v1750_v27, %v1678_v26  ;;  %v1762_v58 = vadd.f32 %v1759_v30, %v1687_v40  ;;  %v1771_v43 = vadd.f32 %v1768_v54, %v1696_v48 }
 0x218   : > { %2169 = vst [vmem:[%s4606_s30 + $0x48] sm:$0xff] %v1100_v3  ;;  %v1780_v38 = vadd.f32 %v1777_v5, %v1705_v33  ;;  %v1789_v15 = vadd.f32 %v1786_v55, %v1714_v51  ;;  %v1798_v56 = vadd.f32 %v1795_v13, %v1723_v10  ;;  %v1807_v25 = vadd.f32 %v1804_v39, %v1732_v8 }
 0x219   : > { %2173 = vst [vmem:[%s4606_s30 + $0x60] sm:$0xff] %v1113_v29  ;;  %v1813_v12 = vadd.f32 %v6357_v45, %v1744_v1  ;;  %v1826_v49 = vadd.f32 %v6358_v28, %v1753_v4  ;;  %v1839_v11 = vadd.f32 %v6359_v19, %v1762_v58  ;;  %v1852_v57 = vadd.f32 %v6360_v47, %v1771_v43 }
 0x21a   : > { %2177 = vst [vmem:[%s4606_s30 + $0x78] sm:$0xff] %v1126_v23  ;;  %v1865_v26 = vadd.f32 %v6361_v41, %v1780_v38  ;;  %v1878_v40 = vadd.f32 %v6362_v32, %v1789_v15  ;;  %v1891_v28 = vadd.f32 %v6363_v44, %v1798_v56  ;;  %v1904_v47 = vadd.f32 %v6364_v17, %v1807_v25 }
 0x21b   : > { %2181 = vst [vmem:[%s4606_s30 + $0x90] sm:$0xff] %v1139_v0  ;;  %v1816_v48 = vmax.f32 %v1813_v12, 0.0  ;;  %v1829_v33 = vmax.f32 %v1826_v49, 0.0  ;;  %v1842_v45 = vmax.f32 %v1839_v11, 0.0  ;;  %v1855_v19 = vmax.f32 %v1852_v57, 0.0 }
 0x21c   : > { %2185 = vst [vmem:[%s4606_s30 + $0xa8] sm:$0xff] %v1152_v62  ;;  %v1868_v41 = vmax.f32 %v1865_v26, 0.0  ;;  %v1881_v51 = vmax.f32 %v1878_v40, 0.0  ;;  %v1894_v32 = vmax.f32 %v1891_v28, 0.0  ;;  %v1907_v10 = vmax.f32 %v1904_v47, 0.0 }
 0x21d   : > { %2261 = vst [vmem:[%s4606_s30 + $0xc0] sm:$0xff] %v1816_v48 }
 0x21e   : > { %2265 = vst [vmem:[%s4606_s30 + $0xd8] sm:$0xff] %v1829_v33 }
 0x21f   : > { %2269 = vst [vmem:[%s4606_s30 + $0xf0] sm:$0xff] %v1842_v45 }
 0x220   : > { %2273 = vst [vmem:[%s4606_s30 + $0x108] sm:$0xff] %v1855_v19 }
 0x221   : > { %2277 = vst [vmem:[%s4606_s30 + $0x120] sm:$0xff] %v1868_v41 }
 0x222   : > { %2281 = vst [vmem:[%s4606_s30 + $0x138] sm:$0xff] %v1881_v51 }
 0x223   : > { %2285 = vst [vmem:[%s4606_s30 + $0x150] sm:$0xff] %v1894_v32 }
 0x224   : > { %2289 = vst [vmem:[%s4606_s30 + $0x168] sm:$0xff] %v1907_v10 }
 0x225   : > { %s6396_s4 = sld [smem:[#allocation22_spill]]  ;;  %s1942_s5 = sshll.u32 %s4606_s30, 4  ;;  %s1943_s5 = int_to_ptr.vmem [resolvable:$true] %s1942_s5 }
 0x226   : > { %s6397_s0 = sld [smem:[#allocation23_spill]]  ;;  %s2612_s23 = smov 384  }
 0x227   : > { %2310 = sst [smem:[#allocation12]] (%p2718_p10), %s2612_s23  ;;  %s2613_s2 = smov 768  }
 0x228   : > { %2311 = sst [smem:[#allocation12 + $0x1]] (%p2718_p10), %s2613_s2  ;;  %s2614_s15 = smov 3  }
 0x229   : > { %s6399_s14 = sld [smem:[#allocation222_spill]]  ;;  %s2615_s10 = smov 128  }
 0x22a   : > { %2312 = sst [smem:[#allocation12 + $0x2]] (%p2718_p10), %s2614_s15  ;;  %s2616_s11 = smov 8  }
 0x22b   : > { %s1923_s21 = smul.u32 3, %s6396_s4  ;;  %2313 = sst [smem:[#allocation12 + $0x3]] (%p2718_p10), %s2615_s10 }
 0x22c   : > { %s2299_s9 = smul.u32 96, %s6397_s0  ;;  %2314 = sst [smem:[#allocation12 + $0x4]] (%p2718_p10), %s2615_s10 }
 0x22d   : > { %2315 = sst [smem:[#allocation12 + $0x5]] (%p2718_p10), %s2616_s11  ;;  %s2617_s24 = smov [#allocation11]  }
 0x22e   : > { %s1929_s7 = sadd.s32 %s2299_s9, %s1923_s21  ;;  %s2618_s20 = smov 0  }
 0x22f   : > { %s2292_s25 = sshll.u32 %s1929_s7, 3 }
 0x230   : > { %s1931_s29 = scalar_lea.hbm %s6399_s14, %s2292_s25 }
 0x231   : > { %s1944_s19 = sshll.u32 %s1931_s29, 4  ;;  %s1945_s19 = int_to_ptr.hbm [resolvable:$true] %s1944_s19 }
 0x232   : > { %2316 = dma.general (%p2718_p10), %s1943_s5, 6144, %s1945_s19, %s1915_s27, %s2617_s24, [#allocation12], %s2618_s20, 0  }
 0x233 PF: > { %s6400_s13 = sld [smem:[#allocation26_spill]] }
 0x234   : > { %s6401_s3 = sld [smem:[#allocation17_spill]] }
 0x239   : > { %p2338_p1 = scmp.ge.s32.totalorder %s6400_s13, 2 }
 0x23a   : > { %s1972_s17 = sand.u32 1, %s6401_s3  }
 0x23b   : > { %p2330_p2 = pnand %p2338_p1, %p2723_p12  ;;  %s1973_s8 = scalar_lea.sflag [#allocation5], %s1972_s17 }
 0x23d   : > { %p2331_p5 = pneg %p2330_p2 }
 0x23f   : > { %2559 = dma.done.wait (%p2331_p5), %s1973_s8, 6144  }
 0x240   : > { %2561 = vsyncadd (%p2331_p5), %s1973_s8, 4294961152  ;;  %s21_s22 = sadd.s32 1, %s6400_s13   ;;  %s6403_s12 = sld [smem:[#allocation18_spill]] }
 0x241   : > { %p18_p7 = scmp.ge.s32.totalorder %s21_s22, 6   ;;  %s6404_s13 = sld [smem:[#allocation19_spill]] }
 0x242   : > { %s6405_s14 = sld [smem:[#allocation32_spill]] }
 0x243   : > { %s6406_s15 = sld [smem:[#allocation20_spill]] }
 0x244   : > { %s6407_s16 = sld [smem:[#allocation21_spill]] }
 0x245   : > { %s6408_s17 = sld [smem:[#allocation31_spill]]  ;;  %20 = sbr.rel (!%p18_p7) target bundleno = 16 (0x10), region = 130 }
 0x246   : > { %s6409_s18 = sld [smem:[#allocation24_spill]] }
 0x247   : > { %s6410_s19 = sld [smem:[#allocation25_spill]] }
 0x248   : > { %s6411_s20 = sld [smem:[#allocation29_spill]] }
 0x249   : > { %s6412_s21 = sld [smem:[#allocation30_spill]] }
 0x24a   :  { %1979 = vsyncpa [#allocation4], 1 }
 0x24b   :  { %1981 = vsyncpa [#allocation4 + $0x1], 1 }
 0x24c   :  { %1982 = vsyncpa [#allocation5], 1 }
 0x24d   :  { %1984 = vsyncpa [#allocation5 + $0x1], 1 }
 0x24e   :  { %1985 = vsyncpa [#allocation6], 1 }
 0x24f   :  { %1987 = vsyncpa [#allocation6 + $0x1], 1 }
 0x250   :  { %1988 = vsyncpa [#allocation7], 1 }
 0x251   :  { %1990 = vsyncpa [#allocation7 + $0x1], 1 }

</bundles_post_ra>
